<compile_context>
chip_gen: v6e
topology: v6e:2x2x1
jax: 0.10.0
libtpu: 0.0.40
codegen_flags: <defaults>
</compile_context>

<pallas_src>
import math

import jax
import jax.numpy as jnp
from jax.experimental import pallas as pl
from jax.experimental.pallas import tpu as pltpu

# ---- scaled-down BERT config (same structure as bert-base-uncased) ----
VOCAB = 1000
TYPE_VOCAB = 2
MAX_POS = 64
HIDDEN = 256
NUM_LAYERS = 2
NUM_HEADS = 4
HEAD_DIM = HIDDEN // NUM_HEADS
INTERMEDIATE = 512
NUM_LABELS = 6
CLS_PAD = 128          # lane-dense classifier output (sliced to NUM_LABELS outside the kernel)
LN_EPS = 1e-12


# ---------------------------------------------------------------------------
# In-kernel helpers (f32 math)
# ---------------------------------------------------------------------------
def _gelu(x):
    # TODO(synk): HF BERT uses exact erf-GELU; tanh-approximate GELU is used here.
    return jax.nn.gelu(x, approximate=True)


def _layernorm_f32(x, g, b):
    mu = jnp.mean(x, axis=-1, keepdims=True)
    var = jnp.mean((x - mu) * (x - mu), axis=-1, keepdims=True)
    return (x - mu) * jax.lax.rsqrt(var + LN_EPS) * g + b


# ---------------------------------------------------------------------------
# Pallas kernels
# ---------------------------------------------------------------------------
def embed_ln_kernel(w_ref, p_ref, t_ref, g_ref, b_ref, o_ref):
    """Fused embedding sum (word + position + type) + LayerNorm; emits bf16 activations."""
    x = (w_ref[...].astype(jnp.float32)
         + p_ref[...].astype(jnp.float32)
         + t_ref[...].astype(jnp.float32))
    o_ref[...] = _layernorm_f32(x, g_ref[...], b_ref[...]).astype(o_ref.dtype)


def encoder_layer_kernel(x_ref, m_ref, wqkv_ref, bqkv_ref, wo_ref, bo_ref,
                         ln1g_ref, ln1b_ref, wi_ref, bi_ref, wff_ref, bff_ref,
                         ln2g_ref, ln2b_ref, o_ref, ctx_scratch):
    """One full encoder layer per batch element:
       QKV proj + MHA + out-proj + residual + LN1 + FFN(GELU) + residual + LN2."""
    x = x_ref[...]                                   # (S, H) bf16
    amask = m_ref[...]                               # (1, S) additive mask, f32

    # --- fused QKV projection (1/sqrt(HEAD_DIM) pre-folded into the Q columns at init) ---
    qkv = (jnp.dot(x, wqkv_ref[...], preferred_element_type=jnp.float32)
           + bqkv_ref[...]).astype(x.dtype)          # (S, 3H) bf16

    # --- multi-head attention; per-head contexts land in a VMEM scratch (no lane-concat) ---
    for h in range(NUM_HEADS):
        lo = h * HEAD_DIM
        qh = qkv[:, lo:lo + HEAD_DIM]
        kh = qkv[:, HIDDEN + lo:HIDDEN + lo + HEAD_DIM]
        vh = qkv[:, 2 * HIDDEN + lo:2 * HIDDEN + lo + HEAD_DIM]
        s = jax.lax.dot_general(qh, kh, (((1,), (1,)), ((), ())),
                                preferred_element_type=jnp.float32)     # (S, S)
        s = s + amask                                # scale already folded into Wq
        s = s - jnp.max(s, axis=-1, keepdims=True)
        p = jnp.exp(s)
        p = p * pl.reciprocal(jnp.sum(p, axis=-1, keepdims=True), approx=True)
        ctx_scratch[:, lo:lo + HEAD_DIM] = jnp.dot(
            p.astype(x.dtype), vh, preferred_element_type=jnp.float32)  # (S, HEAD_DIM) f32

    ctx = ctx_scratch[...].astype(x.dtype)           # (S, H) bf16

    # --- attention output projection + residual + LayerNorm (f32) ---
    y = jnp.dot(ctx, wo_ref[...], preferred_element_type=jnp.float32) + bo_ref[...]
    y = y + x.astype(jnp.float32)
    h1 = _layernorm_f32(y, ln1g_ref[...], ln1b_ref[...])                # (S, H) f32

    # --- FFN: gelu(h1@Wi + bi)@Wff + bff + h1, then LayerNorm ---
    h1b = h1.astype(x.dtype)
    ff = jnp.dot(h1b, wi_ref[...], preferred_element_type=jnp.float32) + bi_ref[...]
    ff = _gelu(ff).astype(x.dtype)
    y2 = jnp.dot(ff, wff_ref[...], preferred_element_type=jnp.float32) + bff_ref[...]
    y2 = y2 + h1
    o_ref[...] = _layernorm_f32(y2, ln2g_ref[...], ln2b_ref[...]).astype(o_ref.dtype)


def pool_cls_kernel(cls_ref, pw_ref, pb_ref, cw_ref, cb_ref, o_ref):
    """Fused pooler (dense + tanh on [CLS]) + classifier (padded to 128 output lanes)."""
    pooled = jnp.dot(cls_ref[...], pw_ref[...], preferred_element_type=jnp.float32) + pb_ref[...]
    pooled = jnp.tanh(pooled).astype(cw_ref.dtype)
    o_ref[...] = jnp.dot(pooled, cw_ref[...], preferred_element_type=jnp.float32) + cb_ref[...]


# ---------------------------------------------------------------------------
# pallas_call wrappers
# ---------------------------------------------------------------------------
def embed_layernorm(word_g, pos, type_g, gamma, beta):
    B, S, H = word_g.shape
    return pl.pallas_call(
        embed_ln_kernel,
        out_shape=jax.ShapeDtypeStruct((B, S, H), jnp.bfloat16),
        grid_spec=pltpu.PrefetchScalarGridSpec(
            num_scalar_prefetch=0,
            grid=(B,),
            in_specs=[
                pl.BlockSpec((pl.Squeezed(), S, H), lambda b: (b, 0, 0)),   # word emb gather
                pl.BlockSpec((S, H), lambda b: (0, 0)),                     # position emb
                pl.BlockSpec((pl.Squeezed(), S, H), lambda b: (b, 0, 0)),   # type emb gather
                pl.BlockSpec((1, H), lambda b: (0, 0)),
                pl.BlockSpec((1, H), lambda b: (0, 0)),
            ],
            out_specs=pl.BlockSpec((pl.Squeezed(), S, H), lambda b: (b, 0, 0)),
        ),
        compiler_params=pltpu.CompilerParams(dimension_semantics=("parallel",)),
    )(word_g, pos, type_g, gamma, beta)


def encoder_layer(x, ext_mask, layer):
    B, S, H = x.shape
    return pl.pallas_call(
        encoder_layer_kernel,
        out_shape=jax.ShapeDtypeStruct((B, S, H), jnp.bfloat16),
        grid_spec=pltpu.PrefetchScalarGridSpec(
            num_scalar_prefetch=0,
            grid=(B,),
            in_specs=[
                pl.BlockSpec((pl.Squeezed(), S, H), lambda b: (b, 0, 0)),       # x
                pl.BlockSpec((pl.Squeezed(), 1, S), lambda b: (b, 0, 0)),       # additive mask
                pl.BlockSpec((H, 3 * H), lambda b: (0, 0)),                     # wqkv
                pl.BlockSpec((1, 3 * H), lambda b: (0, 0)),                     # bqkv
                pl.BlockSpec((H, H), lambda b: (0, 0)),                         # wo
                pl.BlockSpec((1, H), lambda b: (0, 0)),                         # bo
                pl.BlockSpec((1, H), lambda b: (0, 0)),                         # ln1 gamma
                pl.BlockSpec((1, H), lambda b: (0, 0)),                         # ln1 beta
                pl.BlockSpec((H, INTERMEDIATE), lambda b: (0, 0)),              # wi
                pl.BlockSpec((1, INTERMEDIATE), lambda b: (0, 0)),              # bi
                pl.BlockSpec((INTERMEDIATE, H), lambda b: (0, 0)),              # wff
                pl.BlockSpec((1, H), lambda b: (0, 0)),                         # bff
                pl.BlockSpec((1, H), lambda b: (0, 0)),                         # ln2 gamma
                pl.BlockSpec((1, H), lambda b: (0, 0)),                         # ln2 beta
            ],
            out_specs=pl.BlockSpec((pl.Squeezed(), S, H), lambda b: (b, 0, 0)),
            scratch_shapes=[pltpu.VMEM((S, H), jnp.float32)],                   # per-head context
        ),
        compiler_params=pltpu.CompilerParams(dimension_semantics=("parallel",)),
    )(x, ext_mask, layer["wqkv"], layer["bqkv"], layer["wo"], layer["bo"],
      layer["ln1_g"], layer["ln1_b"], layer["wi"], layer["bi"],
      layer["wff"], layer["bff"], layer["ln2_g"], layer["ln2_b"])


def pool_classify(x_flat, pool_w, pool_b, cls_w_pad, cls_b_pad):
    """x_flat is the encoder output viewed as (B, S*H); the (B,H) block at column 0 is [CLS]."""
    B = x_flat.shape[0]
    H = pool_w.shape[0]
    P = cls_w_pad.shape[1]
    return pl.pallas_call(
        pool_cls_kernel,
        out_shape=jax.ShapeDtypeStruct((B, P), jnp.float32),
        grid_spec=pltpu.PrefetchScalarGridSpec(
            num_scalar_prefetch=0,
            grid=(1,),
            in_specs=[
                pl.BlockSpec((B, H), lambda i: (0, 0)),   # columns [0:H] == [CLS] row per batch
                pl.BlockSpec((H, H), lambda i: (0, 0)),
                pl.BlockSpec((1, H), lambda i: (0, 0)),
                pl.BlockSpec((H, P), lambda i: (0, 0)),
                pl.BlockSpec((1, P), lambda i: (0, 0)),
            ],
            out_specs=pl.BlockSpec((B, P), lambda i: (0, 0)),
        ),
        compiler_params=pltpu.CompilerParams(dimension_semantics=("arbitrary",)),
    )(x_flat, pool_w, pool_b, cls_w_pad, cls_b_pad)


# ---------------------------------------------------------------------------
# Parameters (weights stored in bf16 MXU layout once, at init — no per-call casts)
# ---------------------------------------------------------------------------
def init_params(key):
    keys = iter(jax.random.split(key, 64))

    def w(shape):
        return jax.random.normal(next(keys), shape, jnp.float32) * 0.02

    def zeros(shape):
        return jnp.zeros(shape, jnp.float32)

    params = {
        "word_emb": w((VOCAB, HIDDEN)),
        "pos_emb": w((MAX_POS, HIDDEN)),
        "type_emb": w((TYPE_VOCAB, HIDDEN)),
        "emb_ln_g": jnp.ones((1, HIDDEN), jnp.float32),
        "emb_ln_b": zeros((1, HIDDEN)),
        "layers": [],
        "pool_w": w((HIDDEN, HIDDEN)).astype(jnp.bfloat16),
        "pool_b": zeros((1, HIDDEN)),
    }

    # Classifier weight/bias padded to 128 output lanes (lane-dense store; slice outside).
    cls_w = w((HIDDEN, NUM_LABELS))
    cls_b = zeros((NUM_LABELS,))
    params["cls_w"] = (jnp.zeros((HIDDEN, CLS_PAD), jnp.float32)
                       .at[:, :NUM_LABELS].set(cls_w)).astype(jnp.bfloat16)
    params["cls_b"] = jnp.zeros((1, CLS_PAD), jnp.float32).at[0, :NUM_LABELS].set(cls_b)

    # 1/sqrt(HEAD_DIM) attention scale folded into the Q columns of Wqkv / bqkv at init.
    scale = 1.0 / math.sqrt(HEAD_DIM)
    for _ in range(NUM_LAYERS):
        wq, wk, wv = w((HIDDEN, HIDDEN)), w((HIDDEN, HIDDEN)), w((HIDDEN, HIDDEN))
        bq, bk, bv = zeros((1, HIDDEN)), zeros((1, HIDDEN)), zeros((1, HIDDEN))
        params["layers"].append({
            "wqkv": jnp.concatenate([wq * scale, wk, wv], axis=1).astype(jnp.bfloat16),
            "bqkv": jnp.concatenate([bq * scale, bk, bv], axis=1),
            "wo": w((HIDDEN, HIDDEN)).astype(jnp.bfloat16), "bo": zeros((1, HIDDEN)),
            "ln1_g": jnp.ones((1, HIDDEN), jnp.float32), "ln1_b": zeros((1, HIDDEN)),
            "wi": w((HIDDEN, INTERMEDIATE)).astype(jnp.bfloat16), "bi": zeros((1, INTERMEDIATE)),
            "wff": w((INTERMEDIATE, HIDDEN)).astype(jnp.bfloat16), "bff": zeros((1, HIDDEN)),
            "ln2_g": jnp.ones((1, HIDDEN), jnp.float32), "ln2_b": zeros((1, HIDDEN)),
        })
    return params


# ---------------------------------------------------------------------------
# Forward pass (glue in plain JAX; all hot paths in 4 fused Pallas kernels)
# ---------------------------------------------------------------------------
def bert_class_forward(params, ids, mask, token_type_ids):
    """Equivalent of BERTClass.forward(ids, mask, token_type_ids) in eval mode."""
    B, S = ids.shape

    # --- embedding table gathers stay in XLA; sum + LayerNorm fused in one Pallas kernel ---
    word_g = jnp.take(params["word_emb"], ids, axis=0)                 # (B, S, H) f32
    type_g = jnp.take(params["type_emb"], token_type_ids, axis=0)      # (B, S, H) f32
    pos = params["pos_emb"][:S]                                        # (S, H) f32
    x = embed_layernorm(word_g, pos, type_g, params["emb_ln_g"], params["emb_ln_b"])
    # embedding dropout: identity in eval mode

    ext_mask = (1.0 - mask.astype(jnp.float32)).reshape(B, 1, S) * -10000.0

    # --- encoder: one fused Pallas kernel per layer ---
    for layer in params["layers"]:
        x = encoder_layer(x, ext_mask, layer)                          # (B, S, H) bf16

    # --- pooler (dense+tanh on [CLS]) fused with classifier; Dropout(0.3) = identity (eval) ---
    # TODO(synk): training-mode stochastic dropout not implemented (inference semantics).
    x_flat = x.reshape(B, S * HIDDEN)            # contiguous view; [CLS] extracted by BlockSpec
    logits_pad = pool_classify(x_flat, params["pool_w"], params["pool_b"],
                               params["cls_w"], params["cls_b"])       # (B, 128) f32
    return logits_pad[:, :NUM_LABELS]


if __name__ == "__main__":
    B, S = 2, 8
    key = jax.random.PRNGKey(0)
    pkey, ikey = jax.random.split(key)

    params = init_params(pkey)
    ids = jax.random.randint(ikey, (B, S), 0, VOCAB, dtype=jnp.int32)
    mask = jnp.array([[1] * S, [1] * (S - 2) + [0, 0]], dtype=jnp.int32)
    token_type_ids = jnp.zeros((B, S), dtype=jnp.int32)

    forward = jax.jit(bert_class_forward)
    logits = forward(params, ids, mask, token_type_ids)
    jax.block_until_ready(logits)
    assert logits.shape == (B, NUM_LABELS)
    assert bool(jnp.all(jnp.isfinite(logits)))
    print("KERNEL_OK")
</pallas_src>

<mosaic_0001>
module attributes {stable_mosaic.version = 11 : i64} {
  func.func @embed_ln_kernel(%arg0: i32, %arg1: memref<1x8x256xf32, #tpu.memory_space<vmem>>, %arg2: memref<8x256xf32, #tpu.memory_space<vmem>>, %arg3: memref<1x8x256xf32, #tpu.memory_space<vmem>>, %arg4: memref<1x256xf32, #tpu.memory_space<vmem>>, %arg5: memref<1x256xf32, #tpu.memory_space<vmem>>, %arg6: memref<1x8x256xbf16, #tpu.memory_space<vmem>>) attributes {dimension_semantics = [#tpu.dimension_semantics<parallel>], iteration_bounds = array<i64: 2>, scalar_prefetch = 0 : i64, scratch_operands = 0 : i64, tpu.core_type = #tpu.core_type<tc>, window_params = [{transform_indices = @transform_0, window_bounds = array<i64: 1, 8, 256>}, {pipeline_mode = #tpu.pipeline_mode<synchronous>, transform_indices = @transform_1, window_bounds = array<i64: 8, 256>}, {transform_indices = @transform_2, window_bounds = array<i64: 1, 8, 256>}, {pipeline_mode = #tpu.pipeline_mode<synchronous>, transform_indices = @transform_3, window_bounds = array<i64: 1, 256>}, {pipeline_mode = #tpu.pipeline_mode<synchronous>, transform_indices = @transform_4, window_bounds = array<i64: 1, 256>}, {transform_indices = @transform_5, window_bounds = array<i64: 1, 8, 256>}]} {
    %c0 = arith.constant 0 : index
    %c0_0 = arith.constant 0 : index
    %c0_1 = arith.constant 0 : index
    %0 = vector.load %arg1[%c0, %c0_0, %c0_1] : memref<1x8x256xf32, #tpu.memory_space<vmem>>, vector<1x8x256xf32>
    %1 = vector.shape_cast %0 : vector<1x8x256xf32> to vector<8x256xf32>
    %c0_2 = arith.constant 0 : index
    %c0_3 = arith.constant 0 : index
    %2 = vector.load %arg2[%c0_2, %c0_3] : memref<8x256xf32, #tpu.memory_space<vmem>>, vector<8x256xf32>
    %3 = arith.addf %1, %2 : vector<8x256xf32>
    %c0_4 = arith.constant 0 : index
    %c0_5 = arith.constant 0 : index
    %c0_6 = arith.constant 0 : index
    %4 = vector.load %arg3[%c0_4, %c0_5, %c0_6] : memref<1x8x256xf32, #tpu.memory_space<vmem>>, vector<1x8x256xf32>
    %5 = vector.shape_cast %4 : vector<1x8x256xf32> to vector<8x256xf32>
    %6 = arith.addf %3, %5 : vector<8x256xf32>
    %c0_7 = arith.constant 0 : index
    %c0_8 = arith.constant 0 : index
    %7 = vector.load %arg4[%c0_7, %c0_8] : memref<1x256xf32, #tpu.memory_space<vmem>>, vector<1x256xf32>
    %c0_9 = arith.constant 0 : index
    %c0_10 = arith.constant 0 : index
    %8 = vector.load %arg5[%c0_9, %c0_10] : memref<1x256xf32, #tpu.memory_space<vmem>>, vector<1x256xf32>
    %cst = arith.constant dense<0.000000e+00> : vector<8xf32>
    %9 = vector.multi_reduction <add>, %6, %cst [1] : vector<8x256xf32> to vector<8xf32>
    %10 = vector.shape_cast %9 : vector<8xf32> to vector<8x1xf32>
    %cst_11 = arith.constant 2.560000e+02 : f32
    %11 = vector.broadcast %cst_11 : f32 to vector<8x1xf32>
    %12 = arith.divf %10, %11 : vector<8x1xf32>
    %13 = vector.broadcast %12 : vector<8x1xf32> to vector<8x256xf32>
    %14 = arith.subf %6, %13 : vector<8x256xf32>
    %15 = vector.broadcast %12 : vector<8x1xf32> to vector<8x256xf32>
    %16 = arith.subf %6, %15 : vector<8x256xf32>
    %17 = arith.mulf %14, %16 : vector<8x256xf32>
    %cst_12 = arith.constant dense<0.000000e+00> : vector<8xf32>
    %18 = vector.multi_reduction <add>, %17, %cst_12 [1] : vector<8x256xf32> to vector<8xf32>
    %19 = vector.shape_cast %18 : vector<8xf32> to vector<8x1xf32>
    %cst_13 = arith.constant 2.560000e+02 : f32
    %20 = vector.broadcast %cst_13 : f32 to vector<8x1xf32>
    %21 = arith.divf %19, %20 : vector<8x1xf32>
    %22 = vector.broadcast %12 : vector<8x1xf32> to vector<8x256xf32>
    %23 = arith.subf %6, %22 : vector<8x256xf32>
    %cst_14 = arith.constant 9.99999996E-13 : f32
    %24 = vector.broadcast %cst_14 : f32 to vector<8x1xf32>
    %25 = arith.addf %21, %24 : vector<8x1xf32>
    %26 = math.rsqrt %25 : vector<8x1xf32>
    %27 = vector.broadcast %26 : vector<8x1xf32> to vector<8x256xf32>
    %28 = arith.mulf %23, %27 : vector<8x256xf32>
    %29 = vector.broadcast %7 : vector<1x256xf32> to vector<8x256xf32>
    %30 = arith.mulf %28, %29 : vector<8x256xf32>
    %31 = vector.broadcast %8 : vector<1x256xf32> to vector<8x256xf32>
    %32 = arith.addf %30, %31 : vector<8x256xf32>
    %33 = arith.truncf %32 : vector<8x256xf32> to vector<8x256xbf16>
    %c0_15 = arith.constant 0 : index
    %c0_16 = arith.constant 0 : index
    %c0_17 = arith.constant 0 : index
    %34 = vector.load %arg6[%c0_15, %c0_16, %c0_17] : memref<1x8x256xbf16, #tpu.memory_space<vmem>>, vector<1x8x256xbf16>
    %35 = vector.shape_cast %34 : vector<1x8x256xbf16> to vector<8x256xbf16>
    %36 = vector.shape_cast %33 : vector<8x256xbf16> to vector<1x8x256xbf16>
    tpu.vector_store %arg6[%c0_15, %c0_16, %c0_17], %36 {strides = array<i32>} : memref<1x8x256xbf16, #tpu.memory_space<vmem>>, vector<1x8x256xbf16>,
    return
  }
  func.func @transform_0(%arg0: i32) -> (i32, i32, i32) {
    %c0_i32 = arith.constant 0 : i32
    %c0_i32_0 = arith.constant 0 : i32
    %c0_i32_1 = arith.constant 0 : i32
    return %arg0, %c0_i32, %c0_i32_0 : i32, i32, i32
  }
  func.func @transform_1(%arg0: i32) -> (i32, i32) {
    %c0_i32 = arith.constant 0 : i32
    %c0_i32_0 = arith.constant 0 : i32
    %c0_i32_1 = arith.constant 0 : i32
    return %c0_i32, %c0_i32_0 : i32, i32
  }
  func.func @transform_2(%arg0: i32) -> (i32, i32, i32) {
    %c0_i32 = arith.constant 0 : i32
    %c0_i32_0 = arith.constant 0 : i32
    %c0_i32_1 = arith.constant 0 : i32
    return %arg0, %c0_i32, %c0_i32_0 : i32, i32, i32
  }
  func.func @transform_3(%arg0: i32) -> (i32, i32) {
    %c0_i32 = arith.constant 0 : i32
    %c0_i32_0 = arith.constant 0 : i32
    %c0_i32_1 = arith.constant 0 : i32
    return %c0_i32, %c0_i32_0 : i32, i32
  }
  func.func @transform_4(%arg0: i32) -> (i32, i32) {
    %c0_i32 = arith.constant 0 : i32
    %c0_i32_0 = arith.constant 0 : i32
    %c0_i32_1 = arith.constant 0 : i32
    return %c0_i32, %c0_i32_0 : i32, i32
  }
  func.func @transform_5(%arg0: i32) -> (i32, i32, i32) {
    %c0_i32 = arith.constant 0 : i32
    %c0_i32_0 = arith.constant 0 : i32
    %c0_i32_1 = arith.constant 0 : i32
    return %arg0, %c0_i32, %c0_i32_0 : i32, i32, i32
  }
}

module attributes {stable_mosaic.version = 11 : i64} {
  func.func @encoder_layer_kernel(%arg0: i32, %arg1: memref<1x8x256xbf16, #tpu.memory_space<vmem>>, %arg2: memref<1x1x8xf32, #tpu.memory_space<vmem>>, %arg3: memref<256x768xbf16, #tpu.memory_space<vmem>>, %arg4: memref<1x768xf32, #tpu.memory_space<vmem>>, %arg5: memref<256x256xbf16, #tpu.memory_space<vmem>>, %arg6: memref<1x256xf32, #tpu.memory_space<vmem>>, %arg7: memref<1x256xf32, #tpu.memory_space<vmem>>, %arg8: memref<1x256xf32, #tpu.memory_space<vmem>>, %arg9: memref<256x512xbf16, #tpu.memory_space<vmem>>, %arg10: memref<1x512xf32, #tpu.memory_space<vmem>>, %arg11: memref<512x256xbf16, #tpu.memory_space<vmem>>, %arg12: memref<1x256xf32, #tpu.memory_space<vmem>>, %arg13: memref<1x256xf32, #tpu.memory_space<vmem>>, %arg14: memref<1x256xf32, #tpu.memory_space<vmem>>, %arg15: memref<1x8x256xbf16, #tpu.memory_space<vmem>>, %arg16: memref<8x256xf32, #tpu.memory_space<vmem>>) attributes {dimension_semantics = [#tpu.dimension_semantics<parallel>], iteration_bounds = array<i64: 2>, scalar_prefetch = 0 : i64, scratch_operands = 1 : i64, tpu.core_type = #tpu.core_type<tc>, window_params = [{transform_indices = @transform_0, window_bounds = array<i64: 1, 8, 256>}, {transform_indices = @transform_1, window_bounds = array<i64: 1, 1, 8>}, {pipeline_mode = #tpu.pipeline_mode<synchronous>, transform_indices = @transform_2, window_bounds = array<i64: 256, 768>}, {pipeline_mode = #tpu.pipeline_mode<synchronous>, transform_indices = @transform_3, window_bounds = array<i64: 1, 768>}, {pipeline_mode = #tpu.pipeline_mode<synchronous>, transform_indices = @transform_4, window_bounds = array<i64: 256, 256>}, {pipeline_mode = #tpu.pipeline_mode<synchronous>, transform_indices = @transform_5, window_bounds = array<i64: 1, 256>}, {pipeline_mode = #tpu.pipeline_mode<synchronous>, transform_indices = @transform_6, window_bounds = array<i64: 1, 256>}, {pipeline_mode = #tpu.pipeline_mode<synchronous>, transform_indices = @transform_7, window_bounds = array<i64: 1, 256>}, {pipeline_mode = #tpu.pipeline_mode<synchronous>, transform_indices = @transform_8, window_bounds = array<i64: 256, 512>}, {pipeline_mode = #tpu.pipeline_mode<synchronous>, transform_indices = @transform_9, window_bounds = array<i64: 1, 512>}, {pipeline_mode = #tpu.pipeline_mode<synchronous>, transform_indices = @transform_10, window_bounds = array<i64: 512, 256>}, {pipeline_mode = #tpu.pipeline_mode<synchronous>, transform_indices = @transform_11, window_bounds = array<i64: 1, 256>}, {pipeline_mode = #tpu.pipeline_mode<synchronous>, transform_indices = @transform_12, window_bounds = array<i64: 1, 256>}, {pipeline_mode = #tpu.pipeline_mode<synchronous>, transform_indices = @transform_13, window_bounds = array<i64: 1, 256>}, {transform_indices = @transform_14, window_bounds = array<i64: 1, 8, 256>}]} {
    %c0 = arith.constant 0 : index
    %c0_0 = arith.constant 0 : index
    %c0_1 = arith.constant 0 : index
    %0 = vector.load %arg1[%c0, %c0_0, %c0_1] : memref<1x8x256xbf16, #tpu.memory_space<vmem>>, vector<1x8x256xbf16>
    %1 = vector.shape_cast %0 : vector<1x8x256xbf16> to vector<8x256xbf16>
    %c0_2 = arith.constant 0 : index
    %c0_3 = arith.constant 0 : index
    %c0_4 = arith.constant 0 : index
    %2 = vector.load %arg2[%c0_2, %c0_3, %c0_4] : memref<1x1x8xf32, #tpu.memory_space<vmem>>, vector<1x1x8xf32>
    %3 = vector.shape_cast %2 : vector<1x1x8xf32> to vector<1x8xf32>
    %c0_5 = arith.constant 0 : index
    %c0_6 = arith.constant 0 : index
    %4 = vector.load %arg3[%c0_5, %c0_6] : memref<256x768xbf16, #tpu.memory_space<vmem>>, vector<256x768xbf16>
    %cst = arith.constant dense<0.000000e+00> : vector<8x768xf32>
    %5 = tpu.matmul %1, %4, %cst {dimension_numbers = #tpu.dot_dimension_numbers<[1], [0], [0], [1], [0, 0, 1, 1], [], []>} : vector<8x256xbf16>, vector<256x768xbf16>, vector<8x768xf32> -> vector<8x768xf32>
    %c0_7 = arith.constant 0 : index
    %c0_8 = arith.constant 0 : index
    %6 = vector.load %arg4[%c0_7, %c0_8] : memref<1x768xf32, #tpu.memory_space<vmem>>, vector<1x768xf32>
    %7 = vector.broadcast %6 : vector<1x768xf32> to vector<8x768xf32>
    %8 = arith.addf %5, %7 : vector<8x768xf32>
    %9 = arith.truncf %8 : vector<8x768xf32> to vector<8x768xbf16>
    %10 = vector.extract_strided_slice %9 {offsets = [0, 0], sizes = [8, 64], strides = [1, 1]} : vector<8x768xbf16> to vector<8x64xbf16>
    %11 = vector.extract_strided_slice %9 {offsets = [0, 256], sizes = [8, 64], strides = [1, 1]} : vector<8x768xbf16> to vector<8x64xbf16>
    %12 = vector.extract_strided_slice %9 {offsets = [0, 512], sizes = [8, 64], strides = [1, 1]} : vector<8x768xbf16> to vector<8x64xbf16>
    %cst_9 = arith.constant dense<0.000000e+00> : vector<8x8xf32>
    %13 = tpu.matmul %10, %11, %cst_9 {dimension_numbers = #tpu.dot_dimension_numbers<[1], [1], [0], [0], [0, 0, 1, 0], [], []>} : vector<8x64xbf16>, vector<8x64xbf16>, vector<8x8xf32> -> vector<8x8xf32>
    %14 = vector.broadcast %3 : vector<1x8xf32> to vector<8x8xf32>
    %15 = arith.addf %13, %14 : vector<8x8xf32>
    %cst_10 = arith.constant dense<0xFF800000> : vector<8xf32>
    %16 = vector.multi_reduction <maximumf>, %15, %cst_10 [1] : vector<8x8xf32> to vector<8xf32>
    %17 = vector.shape_cast %16 : vector<8xf32> to vector<8x1xf32>
    %18 = vector.broadcast %17 : vector<8x1xf32> to vector<8x8xf32>
    %19 = arith.subf %15, %18 : vector<8x8xf32>
    %20 = math.exp %19 : vector<8x8xf32>
    %cst_11 = arith.constant dense<0.000000e+00> : vector<8xf32>
    %21 = vector.multi_reduction <add>, %20, %cst_11 [1] : vector<8x8xf32> to vector<8xf32>
    %22 = vector.shape_cast %21 : vector<8xf32> to vector<8x1xf32>
    %23 = tpu.reciprocal %22 {approx = true} : vector<8x1xf32> -> vector<8x1xf32>
    %24 = vector.broadcast %23 : vector<8x1xf32> to vector<8x8xf32>
    %25 = arith.mulf %20, %24 : vector<8x8xf32>
    %26 = arith.truncf %25 : vector<8x8xf32> to vector<8x8xbf16>
    %cst_12 = arith.constant dense<0.000000e+00> : vector<8x64xf32>
    %27 = tpu.matmul %26, %12, %cst_12 {dimension_numbers = #tpu.dot_dimension_numbers<[1], [0], [0], [1], [0, 0, 1, 1], [], []>} : vector<8x8xbf16>, vector<8x64xbf16>, vector<8x64xf32> -> vector<8x64xf32>
    %c0_13 = arith.constant 0 : index
    %c0_14 = arith.constant 0 : index
    %28 = vector.load %arg16[%c0_13, %c0_14] : memref<8x256xf32, #tpu.memory_space<vmem>>, vector<8x64xf32>
    tpu.vector_store %arg16[%c0_13, %c0_14], %27 {strides = array<i32>} : memref<8x256xf32, #tpu.memory_space<vmem>>, vector<8x64xf32>,
    %29 = vector.extract_strided_slice %9 {offsets = [0, 64], sizes = [8, 64], strides = [1, 1]} : vector<8x768xbf16> to vector<8x64xbf16>
    %30 = vector.extract_strided_slice %9 {offsets = [0, 320], sizes = [8, 64], strides = [1, 1]} : vector<8x768xbf16> to vector<8x64xbf16>
    %31 = vector.extract_strided_slice %9 {offsets = [0, 576], sizes = [8, 64], strides = [1, 1]} : vector<8x768xbf16> to vector<8x64xbf16>
    %cst_15 = arith.constant dense<0.000000e+00> : vector<8x8xf32>
    %32 = tpu.matmul %29, %30, %cst_15 {dimension_numbers = #tpu.dot_dimension_numbers<[1], [1], [0], [0], [0, 0, 1, 0], [], []>} : vector<8x64xbf16>, vector<8x64xbf16>, vector<8x8xf32> -> vector<8x8xf32>
    %33 = vector.broadcast %3 : vector<1x8xf32> to vector<8x8xf32>
    %34 = arith.addf %32, %33 : vector<8x8xf32>
    %cst_16 = arith.constant dense<0xFF800000> : vector<8xf32>
    %35 = vector.multi_reduction <maximumf>, %34, %cst_16 [1] : vector<8x8xf32> to vector<8xf32>
    %36 = vector.shape_cast %35 : vector<8xf32> to vector<8x1xf32>
    %37 = vector.broadcast %36 : vector<8x1xf32> to vector<8x8xf32>
    %38 = arith.subf %34, %37 : vector<8x8xf32>
    %39 = math.exp %38 : vector<8x8xf32>
    %cst_17 = arith.constant dense<0.000000e+00> : vector<8xf32>
    %40 = vector.multi_reduction <add>, %39, %cst_17 [1] : vector<8x8xf32> to vector<8xf32>
    %41 = vector.shape_cast %40 : vector<8xf32> to vector<8x1xf32>
    %42 = tpu.reciprocal %41 {approx = true} : vector<8x1xf32> -> vector<8x1xf32>
    %43 = vector.broadcast %42 : vector<8x1xf32> to vector<8x8xf32>
    %44 = arith.mulf %39, %43 : vector<8x8xf32>
    %45 = arith.truncf %44 : vector<8x8xf32> to vector<8x8xbf16>
    %cst_18 = arith.constant dense<0.000000e+00> : vector<8x64xf32>
    %46 = tpu.matmul %45, %31, %cst_18 {dimension_numbers = #tpu.dot_dimension_numbers<[1], [0], [0], [1], [0, 0, 1, 1], [], []>} : vector<8x8xbf16>, vector<8x64xbf16>, vector<8x64xf32> -> vector<8x64xf32>
    %c0_19 = arith.constant 0 : index
    %c64 = arith.constant 64 : index
    %47 = vector.load %arg16[%c0_19, %c64] : memref<8x256xf32, #tpu.memory_space<vmem>>, vector<8x64xf32>
    tpu.vector_store %arg16[%c0_19, %c64], %46 {strides = array<i32>} : memref<8x256xf32, #tpu.memory_space<vmem>>, vector<8x64xf32>,
    %48 = vector.extract_strided_slice %9 {offsets = [0, 128], sizes = [8, 64], strides = [1, 1]} : vector<8x768xbf16> to vector<8x64xbf16>
    %49 = vector.extract_strided_slice %9 {offsets = [0, 384], sizes = [8, 64], strides = [1, 1]} : vector<8x768xbf16> to vector<8x64xbf16>
    %50 = vector.extract_strided_slice %9 {offsets = [0, 640], sizes = [8, 64], strides = [1, 1]} : vector<8x768xbf16> to vector<8x64xbf16>
    %cst_20 = arith.constant dense<0.000000e+00> : vector<8x8xf32>
    %51 = tpu.matmul %48, %49, %cst_20 {dimension_numbers = #tpu.dot_dimension_numbers<[1], [1], [0], [0], [0, 0, 1, 0], [], []>} : vector<8x64xbf16>, vector<8x64xbf16>, vector<8x8xf32> -> vector<8x8xf32>
    %52 = vector.broadcast %3 : vector<1x8xf32> to vector<8x8xf32>
    %53 = arith.addf %51, %52 : vector<8x8xf32>
    %cst_21 = arith.constant dense<0xFF800000> : vector<8xf32>
    %54 = vector.multi_reduction <maximumf>, %53, %cst_21 [1] : vector<8x8xf32> to vector<8xf32>
    %55 = vector.shape_cast %54 : vector<8xf32> to vector<8x1xf32>
    %56 = vector.broadcast %55 : vector<8x1xf32> to vector<8x8xf32>
    %57 = arith.subf %53, %56 : vector<8x8xf32>
    %58 = math.exp %57 : vector<8x8xf32>
    %cst_22 = arith.constant dense<0.000000e+00> : vector<8xf32>
    %59 = vector.multi_reduction <add>, %58, %cst_22 [1] : vector<8x8xf32> to vector<8xf32>
    %60 = vector.shape_cast %59 : vector<8xf32> to vector<8x1xf32>
    %61 = tpu.reciprocal %60 {approx = true} : vector<8x1xf32> -> vector<8x1xf32>
    %62 = vector.broadcast %61 : vector<8x1xf32> to vector<8x8xf32>
    %63 = arith.mulf %58, %62 : vector<8x8xf32>
    %64 = arith.truncf %63 : vector<8x8xf32> to vector<8x8xbf16>
    %cst_23 = arith.constant dense<0.000000e+00> : vector<8x64xf32>
    %65 = tpu.matmul %64, %50, %cst_23 {dimension_numbers = #tpu.dot_dimension_numbers<[1], [0], [0], [1], [0, 0, 1, 1], [], []>} : vector<8x8xbf16>, vector<8x64xbf16>, vector<8x64xf32> -> vector<8x64xf32>
    %c0_24 = arith.constant 0 : index
    %c128 = arith.constant 128 : index
    %66 = vector.load %arg16[%c0_24, %c128] : memref<8x256xf32, #tpu.memory_space<vmem>>, vector<8x64xf32>
    tpu.vector_store %arg16[%c0_24, %c128], %65 {strides = array<i32>} : memref<8x256xf32, #tpu.memory_space<vmem>>, vector<8x64xf32>,
    %67 = vector.extract_strided_slice %9 {offsets = [0, 192], sizes = [8, 64], strides = [1, 1]} : vector<8x768xbf16> to vector<8x64xbf16>
    %68 = vector.extract_strided_slice %9 {offsets = [0, 448], sizes = [8, 64], strides = [1, 1]} : vector<8x768xbf16> to vector<8x64xbf16>
    %69 = vector.extract_strided_slice %9 {offsets = [0, 704], sizes = [8, 64], strides = [1, 1]} : vector<8x768xbf16> to vector<8x64xbf16>
    %cst_25 = arith.constant dense<0.000000e+00> : vector<8x8xf32>
    %70 = tpu.matmul %67, %68, %cst_25 {dimension_numbers = #tpu.dot_dimension_numbers<[1], [1], [0], [0], [0, 0, 1, 0], [], []>} : vector<8x64xbf16>, vector<8x64xbf16>, vector<8x8xf32> -> vector<8x8xf32>
    %71 = vector.broadcast %3 : vector<1x8xf32> to vector<8x8xf32>
    %72 = arith.addf %70, %71 : vector<8x8xf32>
    %cst_26 = arith.constant dense<0xFF800000> : vector<8xf32>
    %73 = vector.multi_reduction <maximumf>, %72, %cst_26 [1] : vector<8x8xf32> to vector<8xf32>
    %74 = vector.shape_cast %73 : vector<8xf32> to vector<8x1xf32>
    %75 = vector.broadcast %74 : vector<8x1xf32> to vector<8x8xf32>
    %76 = arith.subf %72, %75 : vector<8x8xf32>
    %77 = math.exp %76 : vector<8x8xf32>
    %cst_27 = arith.constant dense<0.000000e+00> : vector<8xf32>
    %78 = vector.multi_reduction <add>, %77, %cst_27 [1] : vector<8x8xf32> to vector<8xf32>
    %79 = vector.shape_cast %78 : vector<8xf32> to vector<8x1xf32>
    %80 = tpu.reciprocal %79 {approx = true} : vector<8x1xf32> -> vector<8x1xf32>
    %81 = vector.broadcast %80 : vector<8x1xf32> to vector<8x8xf32>
    %82 = arith.mulf %77, %81 : vector<8x8xf32>
    %83 = arith.truncf %82 : vector<8x8xf32> to vector<8x8xbf16>
    %cst_28 = arith.constant dense<0.000000e+00> : vector<8x64xf32>
    %84 = tpu.matmul %83, %69, %cst_28 {dimension_numbers = #tpu.dot_dimension_numbers<[1], [0], [0], [1], [0, 0, 1, 1], [], []>} : vector<8x8xbf16>, vector<8x64xbf16>, vector<8x64xf32> -> vector<8x64xf32>
    %c0_29 = arith.constant 0 : index
    %c192 = arith.constant 192 : index
    %85 = vector.load %arg16[%c0_29, %c192] : memref<8x256xf32, #tpu.memory_space<vmem>>, vector<8x64xf32>
    tpu.vector_store %arg16[%c0_29, %c192], %84 {strides = array<i32>} : memref<8x256xf32, #tpu.memory_space<vmem>>, vector<8x64xf32>,
    %c0_30 = arith.constant 0 : index
    %c0_31 = arith.constant 0 : index
    %86 = vector.load %arg16[%c0_30, %c0_31] : memref<8x256xf32, #tpu.memory_space<vmem>>, vector<8x256xf32>
    %87 = arith.truncf %86 : vector<8x256xf32> to vector<8x256xbf16>
    %c0_32 = arith.constant 0 : index
    %c0_33 = arith.constant 0 : index
    %88 = vector.load %arg5[%c0_32, %c0_33] : memref<256x256xbf16, #tpu.memory_space<vmem>>, vector<256x256xbf16>
    %cst_34 = arith.constant dense<0.000000e+00> : vector<8x256xf32>
    %89 = tpu.matmul %87, %88, %cst_34 {dimension_numbers = #tpu.dot_dimension_numbers<[1], [0], [0], [1], [0, 0, 1, 1], [], []>} : vector<8x256xbf16>, vector<256x256xbf16>, vector<8x256xf32> -> vector<8x256xf32>
    %c0_35 = arith.constant 0 : index
    %c0_36 = arith.constant 0 : index
    %90 = vector.load %arg6[%c0_35, %c0_36] : memref<1x256xf32, #tpu.memory_space<vmem>>, vector<1x256xf32>
    %91 = vector.broadcast %90 : vector<1x256xf32> to vector<8x256xf32>
    %92 = arith.addf %89, %91 : vector<8x256xf32>
    %93 = arith.extf %1 : vector<8x256xbf16> to vector<8x256xf32>
    %94 = arith.addf %92, %93 : vector<8x256xf32>
    %c0_37 = arith.constant 0 : index
    %c0_38 = arith.constant 0 : index
    %95 = vector.load %arg7[%c0_37, %c0_38] : memref<1x256xf32, #tpu.memory_space<vmem>>, vector<1x256xf32>
    %c0_39 = arith.constant 0 : index
    %c0_40 = arith.constant 0 : index
    %96 = vector.load %arg8[%c0_39, %c0_40] : memref<1x256xf32, #tpu.memory_space<vmem>>, vector<1x256xf32>
    %cst_41 = arith.constant dense<0.000000e+00> : vector<8xf32>
    %97 = vector.multi_reduction <add>, %94, %cst_41 [1] : vector<8x256xf32> to vector<8xf32>
    %98 = vector.shape_cast %97 : vector<8xf32> to vector<8x1xf32>
    %cst_42 = arith.constant 2.560000e+02 : f32
    %99 = vector.broadcast %cst_42 : f32 to vector<8x1xf32>
    %100 = arith.divf %98, %99 : vector<8x1xf32>
    %101 = vector.broadcast %100 : vector<8x1xf32> to vector<8x256xf32>
    %102 = arith.subf %94, %101 : vector<8x256xf32>
    %103 = vector.broadcast %100 : vector<8x1xf32> to vector<8x256xf32>
    %104 = arith.subf %94, %103 : vector<8x256xf32>
    %105 = arith.mulf %102, %104 : vector<8x256xf32>
    %cst_43 = arith.constant dense<0.000000e+00> : vector<8xf32>
    %106 = vector.multi_reduction <add>, %105, %cst_43 [1] : vector<8x256xf32> to vector<8xf32>
    %107 = vector.shape_cast %106 : vector<8xf32> to vector<8x1xf32>
    %cst_44 = arith.constant 2.560000e+02 : f32
    %108 = vector.broadcast %cst_44 : f32 to vector<8x1xf32>
    %109 = arith.divf %107, %108 : vector<8x1xf32>
    %110 = vector.broadcast %100 : vector<8x1xf32> to vector<8x256xf32>
    %111 = arith.subf %94, %110 : vector<8x256xf32>
    %cst_45 = arith.constant 9.99999996E-13 : f32
    %112 = vector.broadcast %cst_45 : f32 to vector<8x1xf32>
    %113 = arith.addf %109, %112 : vector<8x1xf32>
    %114 = math.rsqrt %113 : vector<8x1xf32>
    %115 = vector.broadcast %114 : vector<8x1xf32> to vector<8x256xf32>
    %116 = arith.mulf %111, %115 : vector<8x256xf32>
    %117 = vector.broadcast %95 : vector<1x256xf32> to vector<8x256xf32>
    %118 = arith.mulf %116, %117 : vector<8x256xf32>
    %119 = vector.broadcast %96 : vector<1x256xf32> to vector<8x256xf32>
    %120 = arith.addf %118, %119 : vector<8x256xf32>
    %121 = arith.truncf %120 : vector<8x256xf32> to vector<8x256xbf16>
    %c0_46 = arith.constant 0 : index
    %c0_47 = arith.constant 0 : index
    %122 = vector.load %arg9[%c0_46, %c0_47] : memref<256x512xbf16, #tpu.memory_space<vmem>>, vector<256x512xbf16>
    %cst_48 = arith.constant dense<0.000000e+00> : vector<8x512xf32>
    %123 = tpu.matmul %121, %122, %cst_48 {dimension_numbers = #tpu.dot_dimension_numbers<[1], [0], [0], [1], [0, 0, 1, 1], [], []>} : vector<8x256xbf16>, vector<256x512xbf16>, vector<8x512xf32> -> vector<8x512xf32>
    %c0_49 = arith.constant 0 : index
    %c0_50 = arith.constant 0 : index
    %124 = vector.load %arg10[%c0_49, %c0_50] : memref<1x512xf32, #tpu.memory_space<vmem>>, vector<1x512xf32>
    %125 = vector.broadcast %124 : vector<1x512xf32> to vector<8x512xf32>
    %126 = arith.addf %123, %125 : vector<8x512xf32>
    %127 = arith.mulf %126, %126 : vector<8x512xf32>
    %128 = arith.mulf %126, %127 : vector<8x512xf32>
    %cst_51 = arith.constant 4.471500e-02 : f32
    %129 = vector.broadcast %cst_51 : f32 to vector<8x512xf32>
    %130 = arith.mulf %129, %128 : vector<8x512xf32>
    %131 = arith.addf %126, %130 : vector<8x512xf32>
    %cst_52 = arith.constant 0.797884583 : f32
    %132 = vector.broadcast %cst_52 : f32 to vector<8x512xf32>
    %133 = arith.mulf %132, %131 : vector<8x512xf32>
    %134 = math.tanh %133 : vector<8x512xf32>
    %cst_53 = arith.constant 1.000000e+00 : f32
    %135 = vector.broadcast %cst_53 : f32 to vector<8x512xf32>
    %136 = arith.addf %135, %134 : vector<8x512xf32>
    %cst_54 = arith.constant 5.000000e-01 : f32
    %137 = vector.broadcast %cst_54 : f32 to vector<8x512xf32>
    %138 = arith.mulf %137, %136 : vector<8x512xf32>
    %139 = arith.mulf %126, %138 : vector<8x512xf32>
    %140 = arith.truncf %139 : vector<8x512xf32> to vector<8x512xbf16>
    %c0_55 = arith.constant 0 : index
    %c0_56 = arith.constant 0 : index
    %141 = vector.load %arg11[%c0_55, %c0_56] : memref<512x256xbf16, #tpu.memory_space<vmem>>, vector<512x256xbf16>
    %cst_57 = arith.constant dense<0.000000e+00> : vector<8x256xf32>
    %142 = tpu.matmul %140, %141, %cst_57 {dimension_numbers = #tpu.dot_dimension_numbers<[1], [0], [0], [1], [0, 0, 1, 1], [], []>} : vector<8x512xbf16>, vector<512x256xbf16>, vector<8x256xf32> -> vector<8x256xf32>
    %c0_58 = arith.constant 0 : index
    %c0_59 = arith.constant 0 : index
    %143 = vector.load %arg12[%c0_58, %c0_59] : memref<1x256xf32, #tpu.memory_space<vmem>>, vector<1x256xf32>
    %144 = vector.broadcast %143 : vector<1x256xf32> to vector<8x256xf32>
    %145 = arith.addf %142, %144 : vector<8x256xf32>
    %146 = arith.addf %145, %120 : vector<8x256xf32>
    %c0_60 = arith.constant 0 : index
    %c0_61 = arith.constant 0 : index
    %147 = vector.load %arg13[%c0_60, %c0_61] : memref<1x256xf32, #tpu.memory_space<vmem>>, vector<1x256xf32>
    %c0_62 = arith.constant 0 : index
    %c0_63 = arith.constant 0 : index
    %148 = vector.load %arg14[%c0_62, %c0_63] : memref<1x256xf32, #tpu.memory_space<vmem>>, vector<1x256xf32>
    %cst_64 = arith.constant dense<0.000000e+00> : vector<8xf32>
    %149 = vector.multi_reduction <add>, %146, %cst_64 [1] : vector<8x256xf32> to vector<8xf32>
    %150 = vector.shape_cast %149 : vector<8xf32> to vector<8x1xf32>
    %cst_65 = arith.constant 2.560000e+02 : f32
    %151 = vector.broadcast %cst_65 : f32 to vector<8x1xf32>
    %152 = arith.divf %150, %151 : vector<8x1xf32>
    %153 = vector.broadcast %152 : vector<8x1xf32> to vector<8x256xf32>
    %154 = arith.subf %146, %153 : vector<8x256xf32>
    %155 = vector.broadcast %152 : vector<8x1xf32> to vector<8x256xf32>
    %156 = arith.subf %146, %155 : vector<8x256xf32>
    %157 = arith.mulf %154, %156 : vector<8x256xf32>
    %cst_66 = arith.constant dense<0.000000e+00> : vector<8xf32>
    %158 = vector.multi_reduction <add>, %157, %cst_66 [1] : vector<8x256xf32> to vector<8xf32>
    %159 = vector.shape_cast %158 : vector<8xf32> to vector<8x1xf32>
    %cst_67 = arith.constant 2.560000e+02 : f32
    %160 = vector.broadcast %cst_67 : f32 to vector<8x1xf32>
    %161 = arith.divf %159, %160 : vector<8x1xf32>
    %162 = vector.broadcast %152 : vector<8x1xf32> to vector<8x256xf32>
    %163 = arith.subf %146, %162 : vector<8x256xf32>
    %cst_68 = arith.constant 9.99999996E-13 : f32
    %164 = vector.broadcast %cst_68 : f32 to vector<8x1xf32>
    %165 = arith.addf %161, %164 : vector<8x1xf32>
    %166 = math.rsqrt %165 : vector<8x1xf32>
    %167 = vector.broadcast %166 : vector<8x1xf32> to vector<8x256xf32>
    %168 = arith.mulf %163, %167 : vector<8x256xf32>
    %169 = vector.broadcast %147 : vector<1x256xf32> to vector<8x256xf32>
    %170 = arith.mulf %168, %169 : vector<8x256xf32>
    %171 = vector.broadcast %148 : vector<1x256xf32> to vector<8x256xf32>
    %172 = arith.addf %170, %171 : vector<8x256xf32>
    %173 = arith.truncf %172 : vector<8x256xf32> to vector<8x256xbf16>
    %c0_69 = arith.constant 0 : index
    %c0_70 = arith.constant 0 : index
    %c0_71 = arith.constant 0 : index
    %174 = vector.load %arg15[%c0_69, %c0_70, %c0_71] : memref<1x8x256xbf16, #tpu.memory_space<vmem>>, vector<1x8x256xbf16>
    %175 = vector.shape_cast %174 : vector<1x8x256xbf16> to vector<8x256xbf16>
    %176 = vector.shape_cast %173 : vector<8x256xbf16> to vector<1x8x256xbf16>
    tpu.vector_store %arg15[%c0_69, %c0_70, %c0_71], %176 {strides = array<i32>} : memref<1x8x256xbf16, #tpu.memory_space<vmem>>, vector<1x8x256xbf16>,
    return
  }
  func.func @transform_0(%arg0: i32) -> (i32, i32, i32) {
    %c0_i32 = arith.constant 0 : i32
    %c0_i32_0 = arith.constant 0 : i32
    %c0_i32_1 = arith.constant 0 : i32
    return %arg0, %c0_i32, %c0_i32_0 : i32, i32, i32
  }
  func.func @transform_1(%arg0: i32) -> (i32, i32, i32) {
    %c0_i32 = arith.constant 0 : i32
    %c0_i32_0 = arith.constant 0 : i32
    %c0_i32_1 = arith.constant 0 : i32
    return %arg0, %c0_i32, %c0_i32_0 : i32, i32, i32
  }
  func.func @transform_2(%arg0: i32) -> (i32, i32) {
    %c0_i32 = arith.constant 0 : i32
    %c0_i32_0 = arith.constant 0 : i32
    %c0_i32_1 = arith.constant 0 : i32
    return %c0_i32, %c0_i32_0 : i32, i32
  }
  func.func @transform_3(%arg0: i32) -> (i32, i32) {
    %c0_i32 = arith.constant 0 : i32
    %c0_i32_0 = arith.constant 0 : i32
    %c0_i32_1 = arith.constant 0 : i32
    return %c0_i32, %c0_i32_0 : i32, i32
  }
  func.func @transform_4(%arg0: i32) -> (i32, i32) {
    %c0_i32 = arith.constant 0 : i32
    %c0_i32_0 = arith.constant 0 : i32
    %c0_i32_1 = arith.constant 0 : i32
    return %c0_i32, %c0_i32_0 : i32, i32
  }
  func.func @transform_5(%arg0: i32) -> (i32, i32) {
    %c0_i32 = arith.constant 0 : i32
    %c0_i32_0 = arith.constant 0 : i32
    %c0_i32_1 = arith.constant 0 : i32
    return %c0_i32, %c0_i32_0 : i32, i32
  }
  func.func @transform_6(%arg0: i32) -> (i32, i32) {
    %c0_i32 = arith.constant 0 : i32
    %c0_i32_0 = arith.constant 0 : i32
    %c0_i32_1 = arith.constant 0 : i32
    return %c0_i32, %c0_i32_0 : i32, i32
  }
  func.func @transform_7(%arg0: i32) -> (i32, i32) {
    %c0_i32 = arith.constant 0 : i32
    %c0_i32_0 = arith.constant 0 : i32
    %c0_i32_1 = arith.constant 0 : i32
    return %c0_i32, %c0_i32_0 : i32, i32
  }
  func.func @transform_8(%arg0: i32) -> (i32, i32) {
    %c0_i32 = arith.constant 0 : i32
    %c0_i32_0 = arith.constant 0 : i32
    %c0_i32_1 = arith.constant 0 : i32
    return %c0_i32, %c0_i32_0 : i32, i32
  }
  func.func @transform_9(%arg0: i32) -> (i32, i32) {
    %c0_i32 = arith.constant 0 : i32
    %c0_i32_0 = arith.constant 0 : i32
    %c0_i32_1 = arith.constant 0 : i32
    return %c0_i32, %c0_i32_0 : i32, i32
  }
  func.func @transform_10(%arg0: i32) -> (i32, i32) {
    %c0_i32 = arith.constant 0 : i32
    %c0_i32_0 = arith.constant 0 : i32
    %c0_i32_1 = arith.constant 0 : i32
    return %c0_i32, %c0_i32_0 : i32, i32
  }
  func.func @transform_11(%arg0: i32) -> (i32, i32) {
    %c0_i32 = arith.constant 0 : i32
    %c0_i32_0 = arith.constant 0 : i32
    %c0_i32_1 = arith.constant 0 : i32
    return %c0_i32, %c0_i32_0 : i32, i32
  }
  func.func @transform_12(%arg0: i32) -> (i32, i32) {
    %c0_i32 = arith.constant 0 : i32
    %c0_i32_0 = arith.constant 0 : i32
    %c0_i32_1 = arith.constant 0 : i32
    return %c0_i32, %c0_i32_0 : i32, i32
  }
  func.func @transform_13(%arg0: i32) -> (i32, i32) {
    %c0_i32 = arith.constant 0 : i32
    %c0_i32_0 = arith.constant 0 : i32
    %c0_i32_1 = arith.constant 0 : i32
    return %c0_i32, %c0_i32_0 : i32, i32
  }
  func.func @transform_14(%arg0: i32) -> (i32, i32, i32) {
    %c0_i32 = arith.constant 0 : i32
    %c0_i32_0 = arith.constant 0 : i32
    %c0_i32_1 = arith.constant 0 : i32
    return %arg0, %c0_i32, %c0_i32_0 : i32, i32, i32
  }
}

module attributes {stable_mosaic.version = 11 : i64} {
  func.func @pool_cls_kernel(%arg0: i32, %arg1: memref<2x256xbf16, #tpu.memory_space<vmem>>, %arg2: memref<256x256xbf16, #tpu.memory_space<vmem>>, %arg3: memref<1x256xf32, #tpu.memory_space<vmem>>, %arg4: memref<256x128xbf16, #tpu.memory_space<vmem>>, %arg5: memref<1x128xf32, #tpu.memory_space<vmem>>, %arg6: memref<2x128xf32, #tpu.memory_space<vmem>>) attributes {dimension_semantics = [#tpu.dimension_semantics<arbitrary>], iteration_bounds = array<i64: 1>, scalar_prefetch = 0 : i64, scratch_operands = 0 : i64, tpu.core_type = #tpu.core_type<tc>, window_params = [{transform_indices = @transform_0, window_bounds = array<i64: 2, 256>}, {pipeline_mode = #tpu.pipeline_mode<synchronous>, transform_indices = @transform_1, window_bounds = array<i64: 256, 256>}, {pipeline_mode = #tpu.pipeline_mode<synchronous>, transform_indices = @transform_2, window_bounds = array<i64: 1, 256>}, {pipeline_mode = #tpu.pipeline_mode<synchronous>, transform_indices = @transform_3, window_bounds = array<i64: 256, 128>}, {pipeline_mode = #tpu.pipeline_mode<synchronous>, transform_indices = @transform_4, window_bounds = array<i64: 1, 128>}, {pipeline_mode = #tpu.pipeline_mode<synchronous>, transform_indices = @transform_5, window_bounds = array<i64: 2, 128>}]} {
    %c0 = arith.constant 0 : index
    %c0_0 = arith.constant 0 : index
    %0 = vector.load %arg1[%c0, %c0_0] : memref<2x256xbf16, #tpu.memory_space<vmem>>, vector<2x256xbf16>
    %c0_1 = arith.constant 0 : index
    %c0_2 = arith.constant 0 : index
    %1 = vector.load %arg2[%c0_1, %c0_2] : memref<256x256xbf16, #tpu.memory_space<vmem>>, vector<256x256xbf16>
    %cst = arith.constant dense<0.000000e+00> : vector<2x256xf32>
    %2 = tpu.matmul %0, %1, %cst {dimension_numbers = #tpu.dot_dimension_numbers<[1], [0], [0], [1], [0, 0, 1, 1], [], []>} : vector<2x256xbf16>, vector<256x256xbf16>, vector<2x256xf32> -> vector<2x256xf32>
    %c0_3 = arith.constant 0 : index
    %c0_4 = arith.constant 0 : index
    %3 = vector.load %arg3[%c0_3, %c0_4] : memref<1x256xf32, #tpu.memory_space<vmem>>, vector<1x256xf32>
    %4 = vector.broadcast %3 : vector<1x256xf32> to vector<2x256xf32>
    %5 = arith.addf %2, %4 : vector<2x256xf32>
    %6 = math.tanh %5 : vector<2x256xf32>
    %7 = arith.truncf %6 : vector<2x256xf32> to vector<2x256xbf16>
    %c0_5 = arith.constant 0 : index
    %c0_6 = arith.constant 0 : index
    %8 = vector.load %arg4[%c0_5, %c0_6] : memref<256x128xbf16, #tpu.memory_space<vmem>>, vector<256x128xbf16>
    %cst_7 = arith.constant dense<0.000000e+00> : vector<2x128xf32>
    %9 = tpu.matmul %7, %8, %cst_7 {dimension_numbers = #tpu.dot_dimension_numbers<[1], [0], [0], [1], [0, 0, 1, 1], [], []>} : vector<2x256xbf16>, vector<256x128xbf16>, vector<2x128xf32> -> vector<2x128xf32>
    %c0_8 = arith.constant 0 : index
    %c0_9 = arith.constant 0 : index
    %10 = vector.load %arg5[%c0_8, %c0_9] : memref<1x128xf32, #tpu.memory_space<vmem>>, vector<1x128xf32>
    %11 = vector.broadcast %10 : vector<1x128xf32> to vector<2x128xf32>
    %12 = arith.addf %9, %11 : vector<2x128xf32>
    %c0_10 = arith.constant 0 : index
    %c0_11 = arith.constant 0 : index
    %13 = vector.load %arg6[%c0_10, %c0_11] : memref<2x128xf32, #tpu.memory_space<vmem>>, vector<2x128xf32>
    tpu.vector_store %arg6[%c0_10, %c0_11], %12 {strides = array<i32>} : memref<2x128xf32, #tpu.memory_space<vmem>>, vector<2x128xf32>,
    return
  }
  func.func @transform_0(%arg0: i32) -> (i32, i32) {
    %c0_i32 = arith.constant 0 : i32
    %c0_i32_0 = arith.constant 0 : i32
    %c0_i32_1 = arith.constant 0 : i32
    return %c0_i32, %c0_i32_0 : i32, i32
  }
  func.func @transform_1(%arg0: i32) -> (i32, i32) {
    %c0_i32 = arith.constant 0 : i32
    %c0_i32_0 = arith.constant 0 : i32
    %c0_i32_1 = arith.constant 0 : i32
    return %c0_i32, %c0_i32_0 : i32, i32
  }
  func.func @transform_2(%arg0: i32) -> (i32, i32) {
    %c0_i32 = arith.constant 0 : i32
    %c0_i32_0 = arith.constant 0 : i32
    %c0_i32_1 = arith.constant 0 : i32
    return %c0_i32, %c0_i32_0 : i32, i32
  }
  func.func @transform_3(%arg0: i32) -> (i32, i32) {
    %c0_i32 = arith.constant 0 : i32
    %c0_i32_0 = arith.constant 0 : i32
    %c0_i32_1 = arith.constant 0 : i32
    return %c0_i32, %c0_i32_0 : i32, i32
  }
  func.func @transform_4(%arg0: i32) -> (i32, i32) {
    %c0_i32 = arith.constant 0 : i32
    %c0_i32_0 = arith.constant 0 : i32
    %c0_i32_1 = arith.constant 0 : i32
    return %c0_i32, %c0_i32_0 : i32, i32
  }
  func.func @transform_5(%arg0: i32) -> (i32, i32) {
    %c0_i32 = arith.constant 0 : i32
    %c0_i32_0 = arith.constant 0 : i32
    %c0_i32_1 = arith.constant 0 : i32
    return %c0_i32, %c0_i32_0 : i32, i32
  }
}

module attributes {stable_mosaic.version = 11 : i64} {
  func.func @encoder_layer_kernel(%arg0: i32, %arg1: memref<1x8x256xbf16, #tpu.memory_space<vmem>>, %arg2: memref<1x1x8xf32, #tpu.memory_space<vmem>>, %arg3: memref<256x768xbf16, #tpu.memory_space<vmem>>, %arg4: memref<1x768xf32, #tpu.memory_space<vmem>>, %arg5: memref<256x256xbf16, #tpu.memory_space<vmem>>, %arg6: memref<1x256xf32, #tpu.memory_space<vmem>>, %arg7: memref<1x256xf32, #tpu.memory_space<vmem>>, %arg8: memref<1x256xf32, #tpu.memory_space<vmem>>, %arg9: memref<256x512xbf16, #tpu.memory_space<vmem>>, %arg10: memref<1x512xf32, #tpu.memory_space<vmem>>, %arg11: memref<512x256xbf16, #tpu.memory_space<vmem>>, %arg12: memref<1x256xf32, #tpu.memory_space<vmem>>, %arg13: memref<1x256xf32, #tpu.memory_space<vmem>>, %arg14: memref<1x256xf32, #tpu.memory_space<vmem>>, %arg15: memref<1x8x256xbf16, #tpu.memory_space<vmem>>, %arg16: memref<8x256xf32, #tpu.memory_space<vmem>>) attributes {dimension_semantics = [#tpu.dimension_semantics<parallel>], iteration_bounds = array<i64: 2>, scalar_prefetch = 0 : i64, scratch_operands = 1 : i64, tpu.core_type = #tpu.core_type<tc>, window_params = [{transform_indices = @transform_0, window_bounds = array<i64: 1, 8, 256>}, {transform_indices = @transform_1, window_bounds = array<i64: 1, 1, 8>}, {pipeline_mode = #tpu.pipeline_mode<synchronous>, transform_indices = @transform_2, window_bounds = array<i64: 256, 768>}, {pipeline_mode = #tpu.pipeline_mode<synchronous>, transform_indices = @transform_3, window_bounds = array<i64: 1, 768>}, {pipeline_mode = #tpu.pipeline_mode<synchronous>, transform_indices = @transform_4, window_bounds = array<i64: 256, 256>}, {pipeline_mode = #tpu.pipeline_mode<synchronous>, transform_indices = @transform_5, window_bounds = array<i64: 1, 256>}, {pipeline_mode = #tpu.pipeline_mode<synchronous>, transform_indices = @transform_6, window_bounds = array<i64: 1, 256>}, {pipeline_mode = #tpu.pipeline_mode<synchronous>, transform_indices = @transform_7, window_bounds = array<i64: 1, 256>}, {pipeline_mode = #tpu.pipeline_mode<synchronous>, transform_indices = @transform_8, window_bounds = array<i64: 256, 512>}, {pipeline_mode = #tpu.pipeline_mode<synchronous>, transform_indices = @transform_9, window_bounds = array<i64: 1, 512>}, {pipeline_mode = #tpu.pipeline_mode<synchronous>, transform_indices = @transform_10, window_bounds = array<i64: 512, 256>}, {pipeline_mode = #tpu.pipeline_mode<synchronous>, transform_indices = @transform_11, window_bounds = array<i64: 1, 256>}, {pipeline_mode = #tpu.pipeline_mode<synchronous>, transform_indices = @transform_12, window_bounds = array<i64: 1, 256>}, {pipeline_mode = #tpu.pipeline_mode<synchronous>, transform_indices = @transform_13, window_bounds = array<i64: 1, 256>}, {transform_indices = @transform_14, window_bounds = array<i64: 1, 8, 256>}]} {
    %c0 = arith.constant 0 : index
    %c0_0 = arith.constant 0 : index
    %c0_1 = arith.constant 0 : index
    %0 = vector.load %arg1[%c0, %c0_0, %c0_1] : memref<1x8x256xbf16, #tpu.memory_space<vmem>>, vector<1x8x256xbf16>
    %1 = vector.shape_cast %0 : vector<1x8x256xbf16> to vector<8x256xbf16>
    %c0_2 = arith.constant 0 : index
    %c0_3 = arith.constant 0 : index
    %c0_4 = arith.constant 0 : index
    %2 = vector.load %arg2[%c0_2, %c0_3, %c0_4] : memref<1x1x8xf32, #tpu.memory_space<vmem>>, vector<1x1x8xf32>
    %3 = vector.shape_cast %2 : vector<1x1x8xf32> to vector<1x8xf32>
    %c0_5 = arith.constant 0 : index
    %c0_6 = arith.constant 0 : index
    %4 = vector.load %arg3[%c0_5, %c0_6] : memref<256x768xbf16, #tpu.memory_space<vmem>>, vector<256x768xbf16>
    %cst = arith.constant dense<0.000000e+00> : vector<8x768xf32>
    %5 = tpu.matmul %1, %4, %cst {dimension_numbers = #tpu.dot_dimension_numbers<[1], [0], [0], [1], [0, 0, 1, 1], [], []>} : vector<8x256xbf16>, vector<256x768xbf16>, vector<8x768xf32> -> vector<8x768xf32>
    %c0_7 = arith.constant 0 : index
    %c0_8 = arith.constant 0 : index
    %6 = vector.load %arg4[%c0_7, %c0_8] : memref<1x768xf32, #tpu.memory_space<vmem>>, vector<1x768xf32>
    %7 = vector.broadcast %6 : vector<1x768xf32> to vector<8x768xf32>
    %8 = arith.addf %5, %7 : vector<8x768xf32>
    %9 = arith.truncf %8 : vector<8x768xf32> to vector<8x768xbf16>
    %10 = vector.extract_strided_slice %9 {offsets = [0, 0], sizes = [8, 64], strides = [1, 1]} : vector<8x768xbf16> to vector<8x64xbf16>
    %11 = vector.extract_strided_slice %9 {offsets = [0, 256], sizes = [8, 64], strides = [1, 1]} : vector<8x768xbf16> to vector<8x64xbf16>
    %12 = vector.extract_strided_slice %9 {offsets = [0, 512], sizes = [8, 64], strides = [1, 1]} : vector<8x768xbf16> to vector<8x64xbf16>
    %cst_9 = arith.constant dense<0.000000e+00> : vector<8x8xf32>
    %13 = tpu.matmul %10, %11, %cst_9 {dimension_numbers = #tpu.dot_dimension_numbers<[1], [1], [0], [0], [0, 0, 1, 0], [], []>} : vector<8x64xbf16>, vector<8x64xbf16>, vector<8x8xf32> -> vector<8x8xf32>
    %14 = vector.broadcast %3 : vector<1x8xf32> to vector<8x8xf32>
    %15 = arith.addf %13, %14 : vector<8x8xf32>
    %cst_10 = arith.constant dense<0xFF800000> : vector<8xf32>
    %16 = vector.multi_reduction <maximumf>, %15, %cst_10 [1] : vector<8x8xf32> to vector<8xf32>
    %17 = vector.shape_cast %16 : vector<8xf32> to vector<8x1xf32>
    %18 = vector.broadcast %17 : vector<8x1xf32> to vector<8x8xf32>
    %19 = arith.subf %15, %18 : vector<8x8xf32>
    %20 = math.exp %19 : vector<8x8xf32>
    %cst_11 = arith.constant dense<0.000000e+00> : vector<8xf32>
    %21 = vector.multi_reduction <add>, %20, %cst_11 [1] : vector<8x8xf32> to vector<8xf32>
    %22 = vector.shape_cast %21 : vector<8xf32> to vector<8x1xf32>
    %23 = tpu.reciprocal %22 {approx = true} : vector<8x1xf32> -> vector<8x1xf32>
    %24 = vector.broadcast %23 : vector<8x1xf32> to vector<8x8xf32>
    %25 = arith.mulf %20, %24 : vector<8x8xf32>
    %26 = arith.truncf %25 : vector<8x8xf32> to vector<8x8xbf16>
    %cst_12 = arith.constant dense<0.000000e+00> : vector<8x64xf32>
    %27 = tpu.matmul %26, %12, %cst_12 {dimension_numbers = #tpu.dot_dimension_numbers<[1], [0], [0], [1], [0, 0, 1, 1], [], []>} : vector<8x8xbf16>, vector<8x64xbf16>, vector<8x64xf32> -> vector<8x64xf32>
    %c0_13 = arith.constant 0 : index
    %c0_14 = arith.constant 0 : index
    %28 = vector.load %arg16[%c0_13, %c0_14] : memref<8x256xf32, #tpu.memory_space<vmem>>, vector<8x64xf32>
    tpu.vector_store %arg16[%c0_13, %c0_14], %27 {strides = array<i32>} : memref<8x256xf32, #tpu.memory_space<vmem>>, vector<8x64xf32>,
    %29 = vector.extract_strided_slice %9 {offsets = [0, 64], sizes = [8, 64], strides = [1, 1]} : vector<8x768xbf16> to vector<8x64xbf16>
    %30 = vector.extract_strided_slice %9 {offsets = [0, 320], sizes = [8, 64], strides = [1, 1]} : vector<8x768xbf16> to vector<8x64xbf16>
    %31 = vector.extract_strided_slice %9 {offsets = [0, 576], sizes = [8, 64], strides = [1, 1]} : vector<8x768xbf16> to vector<8x64xbf16>
    %cst_15 = arith.constant dense<0.000000e+00> : vector<8x8xf32>
    %32 = tpu.matmul %29, %30, %cst_15 {dimension_numbers = #tpu.dot_dimension_numbers<[1], [1], [0], [0], [0, 0, 1, 0], [], []>} : vector<8x64xbf16>, vector<8x64xbf16>, vector<8x8xf32> -> vector<8x8xf32>
    %33 = vector.broadcast %3 : vector<1x8xf32> to vector<8x8xf32>
    %34 = arith.addf %32, %33 : vector<8x8xf32>
    %cst_16 = arith.constant dense<0xFF800000> : vector<8xf32>
    %35 = vector.multi_reduction <maximumf>, %34, %cst_16 [1] : vector<8x8xf32> to vector<8xf32>
    %36 = vector.shape_cast %35 : vector<8xf32> to vector<8x1xf32>
    %37 = vector.broadcast %36 : vector<8x1xf32> to vector<8x8xf32>
    %38 = arith.subf %34, %37 : vector<8x8xf32>
    %39 = math.exp %38 : vector<8x8xf32>
    %cst_17 = arith.constant dense<0.000000e+00> : vector<8xf32>
    %40 = vector.multi_reduction <add>, %39, %cst_17 [1] : vector<8x8xf32> to vector<8xf32>
    %41 = vector.shape_cast %40 : vector<8xf32> to vector<8x1xf32>
    %42 = tpu.reciprocal %41 {approx = true} : vector<8x1xf32> -> vector<8x1xf32>
    %43 = vector.broadcast %42 : vector<8x1xf32> to vector<8x8xf32>
    %44 = arith.mulf %39, %43 : vector<8x8xf32>
    %45 = arith.truncf %44 : vector<8x8xf32> to vector<8x8xbf16>
    %cst_18 = arith.constant dense<0.000000e+00> : vector<8x64xf32>
    %46 = tpu.matmul %45, %31, %cst_18 {dimension_numbers = #tpu.dot_dimension_numbers<[1], [0], [0], [1], [0, 0, 1, 1], [], []>} : vector<8x8xbf16>, vector<8x64xbf16>, vector<8x64xf32> -> vector<8x64xf32>
    %c0_19 = arith.constant 0 : index
    %c64 = arith.constant 64 : index
    %47 = vector.load %arg16[%c0_19, %c64] : memref<8x256xf32, #tpu.memory_space<vmem>>, vector<8x64xf32>
    tpu.vector_store %arg16[%c0_19, %c64], %46 {strides = array<i32>} : memref<8x256xf32, #tpu.memory_space<vmem>>, vector<8x64xf32>,
    %48 = vector.extract_strided_slice %9 {offsets = [0, 128], sizes = [8, 64], strides = [1, 1]} : vector<8x768xbf16> to vector<8x64xbf16>
    %49 = vector.extract_strided_slice %9 {offsets = [0, 384], sizes = [8, 64], strides = [1, 1]} : vector<8x768xbf16> to vector<8x64xbf16>
    %50 = vector.extract_strided_slice %9 {offsets = [0, 640], sizes = [8, 64], strides = [1, 1]} : vector<8x768xbf16> to vector<8x64xbf16>
    %cst_20 = arith.constant dense<0.000000e+00> : vector<8x8xf32>
    %51 = tpu.matmul %48, %49, %cst_20 {dimension_numbers = #tpu.dot_dimension_numbers<[1], [1], [0], [0], [0, 0, 1, 0], [], []>} : vector<8x64xbf16>, vector<8x64xbf16>, vector<8x8xf32> -> vector<8x8xf32>
    %52 = vector.broadcast %3 : vector<1x8xf32> to vector<8x8xf32>
    %53 = arith.addf %51, %52 : vector<8x8xf32>
    %cst_21 = arith.constant dense<0xFF800000> : vector<8xf32>
    %54 = vector.multi_reduction <maximumf>, %53, %cst_21 [1] : vector<8x8xf32> to vector<8xf32>
    %55 = vector.shape_cast %54 : vector<8xf32> to vector<8x1xf32>
    %56 = vector.broadcast %55 : vector<8x1xf32> to vector<8x8xf32>
    %57 = arith.subf %53, %56 : vector<8x8xf32>
    %58 = math.exp %57 : vector<8x8xf32>
    %cst_22 = arith.constant dense<0.000000e+00> : vector<8xf32>
    %59 = vector.multi_reduction <add>, %58, %cst_22 [1] : vector<8x8xf32> to vector<8xf32>
    %60 = vector.shape_cast %59 : vector<8xf32> to vector<8x1xf32>
    %61 = tpu.reciprocal %60 {approx = true} : vector<8x1xf32> -> vector<8x1xf32>
    %62 = vector.broadcast %61 : vector<8x1xf32> to vector<8x8xf32>
    %63 = arith.mulf %58, %62 : vector<8x8xf32>
    %64 = arith.truncf %63 : vector<8x8xf32> to vector<8x8xbf16>
    %cst_23 = arith.constant dense<0.000000e+00> : vector<8x64xf32>
    %65 = tpu.matmul %64, %50, %cst_23 {dimension_numbers = #tpu.dot_dimension_numbers<[1], [0], [0], [1], [0, 0, 1, 1], [], []>} : vector<8x8xbf16>, vector<8x64xbf16>, vector<8x64xf32> -> vector<8x64xf32>
    %c0_24 = arith.constant 0 : index
    %c128 = arith.constant 128 : index
    %66 = vector.load %arg16[%c0_24, %c128] : memref<8x256xf32, #tpu.memory_space<vmem>>, vector<8x64xf32>
    tpu.vector_store %arg16[%c0_24, %c128], %65 {strides = array<i32>} : memref<8x256xf32, #tpu.memory_space<vmem>>, vector<8x64xf32>,
    %67 = vector.extract_strided_slice %9 {offsets = [0, 192], sizes = [8, 64], strides = [1, 1]} : vector<8x768xbf16> to vector<8x64xbf16>
    %68 = vector.extract_strided_slice %9 {offsets = [0, 448], sizes = [8, 64], strides = [1, 1]} : vector<8x768xbf16> to vector<8x64xbf16>
    %69 = vector.extract_strided_slice %9 {offsets = [0, 704], sizes = [8, 64], strides = [1, 1]} : vector<8x768xbf16> to vector<8x64xbf16>
    %cst_25 = arith.constant dense<0.000000e+00> : vector<8x8xf32>
    %70 = tpu.matmul %67, %68, %cst_25 {dimension_numbers = #tpu.dot_dimension_numbers<[1], [1], [0], [0], [0, 0, 1, 0], [], []>} : vector<8x64xbf16>, vector<8x64xbf16>, vector<8x8xf32> -> vector<8x8xf32>
    %71 = vector.broadcast %3 : vector<1x8xf32> to vector<8x8xf32>
    %72 = arith.addf %70, %71 : vector<8x8xf32>
    %cst_26 = arith.constant dense<0xFF800000> : vector<8xf32>
    %73 = vector.multi_reduction <maximumf>, %72, %cst_26 [1] : vector<8x8xf32> to vector<8xf32>
    %74 = vector.shape_cast %73 : vector<8xf32> to vector<8x1xf32>
    %75 = vector.broadcast %74 : vector<8x1xf32> to vector<8x8xf32>
    %76 = arith.subf %72, %75 : vector<8x8xf32>
    %77 = math.exp %76 : vector<8x8xf32>
    %cst_27 = arith.constant dense<0.000000e+00> : vector<8xf32>
    %78 = vector.multi_reduction <add>, %77, %cst_27 [1] : vector<8x8xf32> to vector<8xf32>
    %79 = vector.shape_cast %78 : vector<8xf32> to vector<8x1xf32>
    %80 = tpu.reciprocal %79 {approx = true} : vector<8x1xf32> -> vector<8x1xf32>
    %81 = vector.broadcast %80 : vector<8x1xf32> to vector<8x8xf32>
    %82 = arith.mulf %77, %81 : vector<8x8xf32>
    %83 = arith.truncf %82 : vector<8x8xf32> to vector<8x8xbf16>
    %cst_28 = arith.constant dense<0.000000e+00> : vector<8x64xf32>
    %84 = tpu.matmul %83, %69, %cst_28 {dimension_numbers = #tpu.dot_dimension_numbers<[1], [0], [0], [1], [0, 0, 1, 1], [], []>} : vector<8x8xbf16>, vector<8x64xbf16>, vector<8x64xf32> -> vector<8x64xf32>
    %c0_29 = arith.constant 0 : index
    %c192 = arith.constant 192 : index
    %85 = vector.load %arg16[%c0_29, %c192] : memref<8x256xf32, #tpu.memory_space<vmem>>, vector<8x64xf32>
    tpu.vector_store %arg16[%c0_29, %c192], %84 {strides = array<i32>} : memref<8x256xf32, #tpu.memory_space<vmem>>, vector<8x64xf32>,
    %c0_30 = arith.constant 0 : index
    %c0_31 = arith.constant 0 : index
    %86 = vector.load %arg16[%c0_30, %c0_31] : memref<8x256xf32, #tpu.memory_space<vmem>>, vector<8x256xf32>
    %87 = arith.truncf %86 : vector<8x256xf32> to vector<8x256xbf16>
    %c0_32 = arith.constant 0 : index
    %c0_33 = arith.constant 0 : index
    %88 = vector.load %arg5[%c0_32, %c0_33] : memref<256x256xbf16, #tpu.memory_space<vmem>>, vector<256x256xbf16>
    %cst_34 = arith.constant dense<0.000000e+00> : vector<8x256xf32>
    %89 = tpu.matmul %87, %88, %cst_34 {dimension_numbers = #tpu.dot_dimension_numbers<[1], [0], [0], [1], [0, 0, 1, 1], [], []>} : vector<8x256xbf16>, vector<256x256xbf16>, vector<8x256xf32> -> vector<8x256xf32>
    %c0_35 = arith.constant 0 : index
    %c0_36 = arith.constant 0 : index
    %90 = vector.load %arg6[%c0_35, %c0_36] : memref<1x256xf32, #tpu.memory_space<vmem>>, vector<1x256xf32>
    %91 = vector.broadcast %90 : vector<1x256xf32> to vector<8x256xf32>
    %92 = arith.addf %89, %91 : vector<8x256xf32>
    %93 = arith.extf %1 : vector<8x256xbf16> to vector<8x256xf32>
    %94 = arith.addf %92, %93 : vector<8x256xf32>
    %c0_37 = arith.constant 0 : index
    %c0_38 = arith.constant 0 : index
    %95 = vector.load %arg7[%c0_37, %c0_38] : memref<1x256xf32, #tpu.memory_space<vmem>>, vector<1x256xf32>
    %c0_39 = arith.constant 0 : index
    %c0_40 = arith.constant 0 : index
    %96 = vector.load %arg8[%c0_39, %c0_40] : memref<1x256xf32, #tpu.memory_space<vmem>>, vector<1x256xf32>
    %cst_41 = arith.constant dense<0.000000e+00> : vector<8xf32>
    %97 = vector.multi_reduction <add>, %94, %cst_41 [1] : vector<8x256xf32> to vector<8xf32>
    %98 = vector.shape_cast %97 : vector<8xf32> to vector<8x1xf32>
    %cst_42 = arith.constant 2.560000e+02 : f32
    %99 = vector.broadcast %cst_42 : f32 to vector<8x1xf32>
    %100 = arith.divf %98, %99 : vector<8x1xf32>
    %101 = vector.broadcast %100 : vector<8x1xf32> to vector<8x256xf32>
    %102 = arith.subf %94, %101 : vector<8x256xf32>
    %103 = vector.broadcast %100 : vector<8x1xf32> to vector<8x256xf32>
    %104 = arith.subf %94, %103 : vector<8x256xf32>
    %105 = arith.mulf %102, %104 : vector<8x256xf32>
    %cst_43 = arith.constant dense<0.000000e+00> : vector<8xf32>
    %106 = vector.multi_reduction <add>, %105, %cst_43 [1] : vector<8x256xf32> to vector<8xf32>
    %107 = vector.shape_cast %106 : vector<8xf32> to vector<8x1xf32>
    %cst_44 = arith.constant 2.560000e+02 : f32
    %108 = vector.broadcast %cst_44 : f32 to vector<8x1xf32>
    %109 = arith.divf %107, %108 : vector<8x1xf32>
    %110 = vector.broadcast %100 : vector<8x1xf32> to vector<8x256xf32>
    %111 = arith.subf %94, %110 : vector<8x256xf32>
    %cst_45 = arith.constant 9.99999996E-13 : f32
    %112 = vector.broadcast %cst_45 : f32 to vector<8x1xf32>
    %113 = arith.addf %109, %112 : vector<8x1xf32>
    %114 = math.rsqrt %113 : vector<8x1xf32>
    %115 = vector.broadcast %114 : vector<8x1xf32> to vector<8x256xf32>
    %116 = arith.mulf %111, %115 : vector<8x256xf32>
    %117 = vector.broadcast %95 : vector<1x256xf32> to vector<8x256xf32>
    %118 = arith.mulf %116, %117 : vector<8x256xf32>
    %119 = vector.broadcast %96 : vector<1x256xf32> to vector<8x256xf32>
    %120 = arith.addf %118, %119 : vector<8x256xf32>
    %121 = arith.truncf %120 : vector<8x256xf32> to vector<8x256xbf16>
    %c0_46 = arith.constant 0 : index
    %c0_47 = arith.constant 0 : index
    %122 = vector.load %arg9[%c0_46, %c0_47] : memref<256x512xbf16, #tpu.memory_space<vmem>>, vector<256x512xbf16>
    %cst_48 = arith.constant dense<0.000000e+00> : vector<8x512xf32>
    %123 = tpu.matmul %121, %122, %cst_48 {dimension_numbers = #tpu.dot_dimension_numbers<[1], [0], [0], [1], [0, 0, 1, 1], [], []>} : vector<8x256xbf16>, vector<256x512xbf16>, vector<8x512xf32> -> vector<8x512xf32>
    %c0_49 = arith.constant 0 : index
    %c0_50 = arith.constant 0 : index
    %124 = vector.load %arg10[%c0_49, %c0_50] : memref<1x512xf32, #tpu.memory_space<vmem>>, vector<1x512xf32>
    %125 = vector.broadcast %124 : vector<1x512xf32> to vector<8x512xf32>
    %126 = arith.addf %123, %125 : vector<8x512xf32>
    %127 = arith.mulf %126, %126 : vector<8x512xf32>
    %128 = arith.mulf %126, %127 : vector<8x512xf32>
    %cst_51 = arith.constant 4.471500e-02 : f32
    %129 = vector.broadcast %cst_51 : f32 to vector<8x512xf32>
    %130 = arith.mulf %129, %128 : vector<8x512xf32>
    %131 = arith.addf %126, %130 : vector<8x512xf32>
    %cst_52 = arith.constant 0.797884583 : f32
    %132 = vector.broadcast %cst_52 : f32 to vector<8x512xf32>
    %133 = arith.mulf %132, %131 : vector<8x512xf32>
    %134 = math.tanh %133 : vector<8x512xf32>
    %cst_53 = arith.constant 1.000000e+00 : f32
    %135 = vector.broadcast %cst_53 : f32 to vector<8x512xf32>
    %136 = arith.addf %135, %134 : vector<8x512xf32>
    %cst_54 = arith.constant 5.000000e-01 : f32
    %137 = vector.broadcast %cst_54 : f32 to vector<8x512xf32>
    %138 = arith.mulf %137, %136 : vector<8x512xf32>
    %139 = arith.mulf %126, %138 : vector<8x512xf32>
    %140 = arith.truncf %139 : vector<8x512xf32> to vector<8x512xbf16>
    %c0_55 = arith.constant 0 : index
    %c0_56 = arith.constant 0 : index
    %141 = vector.load %arg11[%c0_55, %c0_56] : memref<512x256xbf16, #tpu.memory_space<vmem>>, vector<512x256xbf16>
    %cst_57 = arith.constant dense<0.000000e+00> : vector<8x256xf32>
    %142 = tpu.matmul %140, %141, %cst_57 {dimension_numbers = #tpu.dot_dimension_numbers<[1], [0], [0], [1], [0, 0, 1, 1], [], []>} : vector<8x512xbf16>, vector<512x256xbf16>, vector<8x256xf32> -> vector<8x256xf32>
    %c0_58 = arith.constant 0 : index
    %c0_59 = arith.constant 0 : index
    %143 = vector.load %arg12[%c0_58, %c0_59] : memref<1x256xf32, #tpu.memory_space<vmem>>, vector<1x256xf32>
    %144 = vector.broadcast %143 : vector<1x256xf32> to vector<8x256xf32>
    %145 = arith.addf %142, %144 : vector<8x256xf32>
    %146 = arith.addf %145, %120 : vector<8x256xf32>
    %c0_60 = arith.constant 0 : index
    %c0_61 = arith.constant 0 : index
    %147 = vector.load %arg13[%c0_60, %c0_61] : memref<1x256xf32, #tpu.memory_space<vmem>>, vector<1x256xf32>
    %c0_62 = arith.constant 0 : index
    %c0_63 = arith.constant 0 : index
    %148 = vector.load %arg14[%c0_62, %c0_63] : memref<1x256xf32, #tpu.memory_space<vmem>>, vector<1x256xf32>
    %cst_64 = arith.constant dense<0.000000e+00> : vector<8xf32>
    %149 = vector.multi_reduction <add>, %146, %cst_64 [1] : vector<8x256xf32> to vector<8xf32>
    %150 = vector.shape_cast %149 : vector<8xf32> to vector<8x1xf32>
    %cst_65 = arith.constant 2.560000e+02 : f32
    %151 = vector.broadcast %cst_65 : f32 to vector<8x1xf32>
    %152 = arith.divf %150, %151 : vector<8x1xf32>
    %153 = vector.broadcast %152 : vector<8x1xf32> to vector<8x256xf32>
    %154 = arith.subf %146, %153 : vector<8x256xf32>
    %155 = vector.broadcast %152 : vector<8x1xf32> to vector<8x256xf32>
    %156 = arith.subf %146, %155 : vector<8x256xf32>
    %157 = arith.mulf %154, %156 : vector<8x256xf32>
    %cst_66 = arith.constant dense<0.000000e+00> : vector<8xf32>
    %158 = vector.multi_reduction <add>, %157, %cst_66 [1] : vector<8x256xf32> to vector<8xf32>
    %159 = vector.shape_cast %158 : vector<8xf32> to vector<8x1xf32>
    %cst_67 = arith.constant 2.560000e+02 : f32
    %160 = vector.broadcast %cst_67 : f32 to vector<8x1xf32>
    %161 = arith.divf %159, %160 : vector<8x1xf32>
    %162 = vector.broadcast %152 : vector<8x1xf32> to vector<8x256xf32>
    %163 = arith.subf %146, %162 : vector<8x256xf32>
    %cst_68 = arith.constant 9.99999996E-13 : f32
    %164 = vector.broadcast %cst_68 : f32 to vector<8x1xf32>
    %165 = arith.addf %161, %164 : vector<8x1xf32>
    %166 = math.rsqrt %165 : vector<8x1xf32>
    %167 = vector.broadcast %166 : vector<8x1xf32> to vector<8x256xf32>
    %168 = arith.mulf %163, %167 : vector<8x256xf32>
    %169 = vector.broadcast %147 : vector<1x256xf32> to vector<8x256xf32>
    %170 = arith.mulf %168, %169 : vector<8x256xf32>
    %171 = vector.broadcast %148 : vector<1x256xf32> to vector<8x256xf32>
    %172 = arith.addf %170, %171 : vector<8x256xf32>
    %173 = arith.truncf %172 : vector<8x256xf32> to vector<8x256xbf16>
    %c0_69 = arith.constant 0 : index
    %c0_70 = arith.constant 0 : index
    %c0_71 = arith.constant 0 : index
    %174 = vector.load %arg15[%c0_69, %c0_70, %c0_71] : memref<1x8x256xbf16, #tpu.memory_space<vmem>>, vector<1x8x256xbf16>
    %175 = vector.shape_cast %174 : vector<1x8x256xbf16> to vector<8x256xbf16>
    %176 = vector.shape_cast %173 : vector<8x256xbf16> to vector<1x8x256xbf16>
    tpu.vector_store %arg15[%c0_69, %c0_70, %c0_71], %176 {strides = array<i32>} : memref<1x8x256xbf16, #tpu.memory_space<vmem>>, vector<1x8x256xbf16>,
    return
  }
  func.func @transform_0(%arg0: i32) -> (i32, i32, i32) {
    %c0_i32 = arith.constant 0 : i32
    %c0_i32_0 = arith.constant 0 : i32
    %c0_i32_1 = arith.constant 0 : i32
    return %arg0, %c0_i32, %c0_i32_0 : i32, i32, i32
  }
  func.func @transform_1(%arg0: i32) -> (i32, i32, i32) {
    %c0_i32 = arith.constant 0 : i32
    %c0_i32_0 = arith.constant 0 : i32
    %c0_i32_1 = arith.constant 0 : i32
    return %arg0, %c0_i32, %c0_i32_0 : i32, i32, i32
  }
  func.func @transform_2(%arg0: i32) -> (i32, i32) {
    %c0_i32 = arith.constant 0 : i32
    %c0_i32_0 = arith.constant 0 : i32
    %c0_i32_1 = arith.constant 0 : i32
    return %c0_i32, %c0_i32_0 : i32, i32
  }
  func.func @transform_3(%arg0: i32) -> (i32, i32) {
    %c0_i32 = arith.constant 0 : i32
    %c0_i32_0 = arith.constant 0 : i32
    %c0_i32_1 = arith.constant 0 : i32
    return %c0_i32, %c0_i32_0 : i32, i32
  }
  func.func @transform_4(%arg0: i32) -> (i32, i32) {
    %c0_i32 = arith.constant 0 : i32
    %c0_i32_0 = arith.constant 0 : i32
    %c0_i32_1 = arith.constant 0 : i32
    return %c0_i32, %c0_i32_0 : i32, i32
  }
  func.func @transform_5(%arg0: i32) -> (i32, i32) {
    %c0_i32 = arith.constant 0 : i32
    %c0_i32_0 = arith.constant 0 : i32
    %c0_i32_1 = arith.constant 0 : i32
    return %c0_i32, %c0_i32_0 : i32, i32
  }
  func.func @transform_6(%arg0: i32) -> (i32, i32) {
    %c0_i32 = arith.constant 0 : i32
    %c0_i32_0 = arith.constant 0 : i32
    %c0_i32_1 = arith.constant 0 : i32
    return %c0_i32, %c0_i32_0 : i32, i32
  }
  func.func @transform_7(%arg0: i32) -> (i32, i32) {
    %c0_i32 = arith.constant 0 : i32
    %c0_i32_0 = arith.constant 0 : i32
    %c0_i32_1 = arith.constant 0 : i32
    return %c0_i32, %c0_i32_0 : i32, i32
  }
  func.func @transform_8(%arg0: i32) -> (i32, i32) {
    %c0_i32 = arith.constant 0 : i32
    %c0_i32_0 = arith.constant 0 : i32
    %c0_i32_1 = arith.constant 0 : i32
    return %c0_i32, %c0_i32_0 : i32, i32
  }
  func.func @transform_9(%arg0: i32) -> (i32, i32) {
    %c0_i32 = arith.constant 0 : i32
    %c0_i32_0 = arith.constant 0 : i32
    %c0_i32_1 = arith.constant 0 : i32
    return %c0_i32, %c0_i32_0 : i32, i32
  }
  func.func @transform_10(%arg0: i32) -> (i32, i32) {
    %c0_i32 = arith.constant 0 : i32
    %c0_i32_0 = arith.constant 0 : i32
    %c0_i32_1 = arith.constant 0 : i32
    return %c0_i32, %c0_i32_0 : i32, i32
  }
  func.func @transform_11(%arg0: i32) -> (i32, i32) {
    %c0_i32 = arith.constant 0 : i32
    %c0_i32_0 = arith.constant 0 : i32
    %c0_i32_1 = arith.constant 0 : i32
    return %c0_i32, %c0_i32_0 : i32, i32
  }
  func.func @transform_12(%arg0: i32) -> (i32, i32) {
    %c0_i32 = arith.constant 0 : i32
    %c0_i32_0 = arith.constant 0 : i32
    %c0_i32_1 = arith.constant 0 : i32
    return %c0_i32, %c0_i32_0 : i32, i32
  }
  func.func @transform_13(%arg0: i32) -> (i32, i32) {
    %c0_i32 = arith.constant 0 : i32
    %c0_i32_0 = arith.constant 0 : i32
    %c0_i32_1 = arith.constant 0 : i32
    return %c0_i32, %c0_i32_0 : i32, i32
  }
  func.func @transform_14(%arg0: i32) -> (i32, i32, i32) {
    %c0_i32 = arith.constant 0 : i32
    %c0_i32_0 = arith.constant 0 : i32
    %c0_i32_1 = arith.constant 0 : i32
    return %arg0, %c0_i32, %c0_i32_0 : i32, i32, i32
  }
}

</mosaic_0001>

<bundles_post_ra>
// kernel: bert_class_forward.4
= control target key start
LH: loop header
LB: loop body
LE: loop exit
PB: predicated region body
PF: predicated region fallthrough
CT: control target
= control target key end

     0   :  { %s442_s18 = smov 0   ;;  %s478_s0 = inlined_call_operand.vmem [shape: f32[2,8,256], index: 0, kind: input, shape index: {}]   ;;  %s479_s1 = inlined_call_operand.vmem [shape: f32[8,256], index: 1, kind: input, shape index: {}]   ;;  %s480_s2 = inlined_call_operand.vmem [shape: f32[2,8,256], index: 2, kind: input, shape index: {}]   ;;  %s481_s3 = inlined_call_operand.vmem [shape: f32[1,256], index: 3, kind: input, shape index: {}]   ;;  %s482_s4 = inlined_call_operand.vmem [shape: f32[1,256], index: 4, kind: input, shape index: {}]   ;;  %s483_s5 = inlined_call_operand.vmem [shape: bf16[2,8,256], index: 5, kind: output, shape index: {}]  }
   0x1 LB: > { %s376_s19 = sadd.s32 4294967295, %s410_s18   ;;  %p380_p0 = scmp.ge.s32.totalorder %s410_s18, 1  ;;  %s410_s18 = sphi %s442_s18, %s15_s18  }
   0x2   : > { %p197_p1 = scmp.lt.s32.totalorder %s410_s18, 3 }
   0x4   : > { %p198_p2 = pnand %p380_p0, %p197_p1 }
   0x5   : > { %p230_p3 = scmp.lt.s32.totalorder (!%p198_p2), %s376_s19, 1 }
   0x6   : > { %201 = sbr.rel (%p198_p2) target bundleno = 332 (0x14c), region = 40 }
   0xb   : > { %s485_s19 = smov (!%p230_p3, %s376_s19), 1  ;;  %v247_v0 = vld [vmem:[%s479_s1] sm:$0xff]  ;;  %v248_v1 = vld [vmem:[%s479_s1 + $0x8] sm:$0xff]  ;;  %v275_v21 = vlaneseq }
   0xc   : > { %s390_s20 = sshll.u32 %s485_s19, 4  ;;  %v255_v25 = vld [vmem:[%s481_s3] sm:$0x3]  ;;  %s392_s10 = sshll.u32 %s485_s19, 3 }
   0xd   : > { %s234_s27 = scalar_lea.vmem %s478_s0, %s390_s20  ;;  %s239_s30 = scalar_lea.vmem %s480_s2, %s390_s20  ;;  %v276_v22 = vshrl.u32 %v275_v21, 7  ;;  %v256_v26 = vld [vmem:[%s482_s4] sm:$0x3] }
   0xe   : > { %v245_v2 = vld [vmem:[%s234_s27] sm:$0xff]  ;;  %v246_v3 = vld [vmem:[%s234_s27 + $0x8] sm:$0xff]  ;;  %s244_s13 = scalar_lea.vmem %s483_s5, %s392_s10 }
   0xf   : > { %v251_v4 = vld [vmem:[%s239_s30] sm:$0xff]  ;;  %v249_v5 = vadd.f32 %v247_v0, %v245_v2  ;;  %v250_v6 = vadd.f32 %v248_v1, %v246_v3  ;;  %v252_v7 = vld [vmem:[%s239_s30 + $0x8] sm:$0xff]  ;;  %v277_v23 = vsub.s32 0, %v276_v22  ;;  %v281_v24 = vsub.s32 1, %v276_v22 }
  0x11   : > { %v253_v8 = vadd.f32 %v251_v4, %v249_v5  ;;  %v254_v9 = vadd.f32 %v252_v7, %v250_v6  ;;  %v278_v27 = vrot.slane %v255_v25, %v277_v23  ;;  %v282_v28 = vrot.slane %v255_v25, %v281_v24 }
  0x12   : > { %v291_v30 = vrot.slane %v256_v26, %v277_v23  ;;  %v295_v31 = vrot.slane %v256_v26, %v281_v24 }
  0x13   : > { %v257_v10 = vadd.f32 %v254_v9, %v253_v8 }
  0x15   : > { %258 = vadd.xlane.f32.xlu0 %v257_v10 }
  0x9e   : > { %v259_v11 = vpop.xlane.xlu0 %258 }
  0x9f   : > { %v261_v12 = vmul.f32 0.00390625, %v259_v11 }
  0xa1   : > { %v262_v13 = vsub.f32 %v253_v8, %v261_v12  ;;  %v263_v14 = vsub.f32 %v254_v9, %v261_v12 }
  0xa3   : > { %v264_v15 = vmul.f32 %v262_v13, %v262_v13  ;;  %v265_v16 = vmul.f32 %v263_v14, %v263_v14 }
  0xa5   : > { %v266_v17 = vadd.f32 %v265_v16, %v264_v15 }
  0xa7   : > { %267 = vadd.xlane.f32.xlu0 %v266_v17 }
 0x130   : > { %v268_v18 = vpop.xlane.xlu0 %267 }
 0x131   : > { %v269_v19 = vmul.f32 0.00390625, %v268_v18 }
 0x133   : > { %v270_v20 = vadd.f32 1e-12, %v269_v19 }
 0x135   : > { %402 = vrsqrt.f32 %v270_v20 }
 0x142   : > { %v403_v29 = vpop.eup %402 }
 0x143   : > { %v272_v32 = vmul.f32 %v403_v29, %v262_v13  ;;  %v273_v33 = vmul.f32 %v403_v29, %v263_v14 }
 0x145   : > { %v285_v34 = vmul.f32 %v278_v27, %v272_v32  ;;  %v286_v35 = vmul.f32 %v282_v28, %v273_v33 }
 0x147   : > { %v298_v36 = vadd.f32 %v291_v30, %v285_v34  ;;  %v299_v37 = vadd.f32 %v295_v31, %v286_v35 }
 0x149   : > { %v393_v38 = vpack.c.bf16 %v299_v37, %v298_v36 }
 0x14b   : > { %308 = vst [vmem:[%s244_s13] sm:$0xff] %v393_v38 }
 0x14c PF: > { %s15_s18 = sadd.s32 1, %s410_s18  }
 0x14d   : > { %p12_p4 = scmp.ge.s32.totalorder %s15_s18, 4  }
 0x14f   :  { %14 = sbr.rel (!%p12_p4) target bundleno = 1 (0x1), region = 73 }

// kernel: bert_class_forward.7
= control target key start
LH: loop header
LB: loop body
LE: loop exit
PB: predicated region body
PF: predicated region fallthrough
CT: control target
= control target key end

     0   :  { %v57_v9 = vlaneseq  ;;  %v651_v10 = vmov 1966171168   ;;  %s844_s0 = inlined_call_operand.vmem [shape: bf16[2,2048], index: 0, kind: input, shape index: {}]   ;;  %s845_s1 = inlined_call_operand.vmem [shape: bf16[256,256], index: 1, kind: input, shape index: {}]   ;;  %s846_s2 = inlined_call_operand.vmem [shape: f32[1,256], index: 2, kind: input, shape index: {}]   ;;  %s847_s3 = inlined_call_operand.vmem [shape: bf16[256,128], index: 3, kind: input, shape index: {}]   ;;  %s848_s4 = inlined_call_operand.vmem [shape: f32[1,128], index: 4, kind: input, shape index: {}]   ;;  %s849_s5 = inlined_call_operand.hbm [shape: f32[2,128], index: 5, kind: output, shape index: {}]  }
   0x1   :  { %v561_v0 = vld [vmem:[%s845_s1 + $0x74] ss:$8 sps:$4 sm:$0xff]   ;;  %v563_v1 = vld [vmem:[%s845_s1 + $0x70] ss:$8 sps:$4 sm:$0xff]   ;;  %v564_v2 = vld [vmem:[%s845_s1 + $0x64] ss:$8 sps:$4 sm:$0xff]   ;;  %v77_v11 = vunpack.c.l.s4 %v651_v10 }
   0x2   :  { %252 = vmatprep.subr.bf16.mxu0 %v561_v0  ;;  %v566_v3 = vld [vmem:[%s845_s1 + $0x60] ss:$8 sps:$4 sm:$0xff]   ;;  %v567_v4 = vld [vmem:[%s845_s1 + $0x54] ss:$8 sps:$4 sm:$0xff]   ;;  %v569_v5 = vld [vmem:[%s845_s1 + $0x50] ss:$8 sps:$4 sm:$0xff]  }
   0x3   :  { %253 = vmatpush1.bf16.msra.mxu0 %v563_v1  ;;  %v570_v6 = vld [vmem:[%s845_s1 + $0x44] ss:$8 sps:$4 sm:$0xff]   ;;  %v572_v7 = vld [vmem:[%s845_s1 + $0x40] ss:$8 sps:$4 sm:$0xff]   ;;  %v573_v8 = vld [vmem:[%s845_s1 + $0x34] ss:$8 sps:$4 sm:$0xff]   ;;  %v78_v15 = vunpack.c.0.s8 %v77_v11 }
   0x4   :  { %254 = vmatprep.subr.bf16.mxu0 %v564_v2  ;;  %v575_v12 = vld [vmem:[%s845_s1 + $0x30] ss:$8 sps:$4 sm:$0xff]   ;;  %v576_v13 = vld [vmem:[%s845_s1 + $0x24] ss:$8 sps:$4 sm:$0xff]   ;;  %v716_v14 = vshrl.u32 %v57_v9, 7 }
   0x5   :  { %v578_v16 = vld [vmem:[%s845_s1 + $0x20] ss:$8 sps:$4 sm:$0xff]   ;;  %v579_v17 = vld [vmem:[%s845_s1 + $0x14] ss:$8 sps:$4 sm:$0xff]   ;;  %v581_v19 = vld [vmem:[%s845_s1 + $0x10] ss:$8 sps:$4 sm:$0xff]  }
   0x6   :  { %v81_v18 = vsub.s32 %v78_v15, %v716_v14  ;;  %v487_v20 = vld.sshfl [vmem:[%s844_s0] sm:$0x11 pattern:$0x75316420]  ;;  %v582_v21 = vld [vmem:[%s845_s1 + $0x4] ss:$8 sps:$4 sm:$0xff]  }
   0x7   :  { %255 = vmatpush1.bf16.msra.mxu0 %v566_v3  ;;  %v75_v22 = vcombine.high %v487_v20, %v487_v20  ;;  %v609_v23 = vld [vmem:[%s847_s3 + $0x78] sm:$0xff]   ;;  %v611_v26 = vld [vmem:[%s847_s3 + $0x70] sm:$0xff]   ;;  %v584_v27 = vld [vmem:[%s845_s1] ss:$8 sps:$4 sm:$0xff]  }
   0x8   :  { %256 = vmatprep.subr.bf16.mxu0 %v567_v4  ;;  %v610_v24 = vld [vmem:[%s847_s3 + $0x38] sm:$0xff]   ;;  %537 = vmatprep.subr.bf16.mxu1 %v609_v23  ;;  %v612_v28 = vld [vmem:[%s847_s3 + $0x30] sm:$0xff]   ;;  %v613_v29 = vld [vmem:[%s847_s3 + $0x68] sm:$0xff]  }
   0x9   :  { %v89_v25 = vrot.slane %v75_v22, %v81_v18  ;;  %538 = vmatpush3.bf16.msra.mxu1 %v610_v24  ;;  %v585_v30 = vld [vmem:[%s845_s1 + $0xf4] ss:$8 sps:$4 sm:$0xff]   ;;  %v614_v31 = vld [vmem:[%s847_s3 + $0x28] sm:$0xff]   ;;  %v587_v32 = vld [vmem:[%s845_s1 + $0xf0] ss:$8 sps:$4 sm:$0xff]  }
   0xa   :  { %539 = vmatprep.subr.bf16.mxu1 %v611_v26  ;;  %v588_v33 = vld [vmem:[%s845_s1 + $0xe4] ss:$8 sps:$4 sm:$0xff]   ;;  %v590_v34 = vld [vmem:[%s845_s1 + $0xe0] ss:$8 sps:$4 sm:$0xff]  }
   0xb   :  { %257 = vmatpush1.bf16.msra.mxu0 %v569_v5  ;;  %284 = vmatprep.mubr.bf16.mxu0 %v89_v25 }
   0xc   :  { %258 = vmatprep.subr.bf16.mxu0 %v570_v6 }
   0xd   :  { %540 = vmatpush3.bf16.msra.mxu1 %v612_v28 }
   0xe   :  { %541 = vmatprep.subr.bf16.mxu1 %v613_v29 }
   0xf   :  { %259 = vmatpush1.bf16.msra.mxu0 %v572_v7 }
  0x10   :  { %260 = vmatprep.subr.bf16.mxu0 %v573_v8 }
  0x11   :  { %542 = vmatpush3.bf16.msra.mxu1 %v614_v31 }
  0x13   :  { %261 = vmatpush1.bf16.msra.mxu0 %v575_v12 }
  0x14   :  { %262 = vmatprep.subr.bf16.mxu0 %v576_v13 }
  0x17   :  { %263 = vmatpush1.bf16.msra.mxu0 %v578_v16 }
  0x18   :  { %264 = vmatprep.subr.bf16.mxu0 %v579_v17 }
  0x1b   :  { %265 = vmatpush1.bf16.msra.mxu0 %v581_v19 }
  0x1c   :  { %266 = vmatprep.subr.bf16.mxu0 %v582_v21 }
  0x1f   :  { %267 = vmatpush1.bf16.msra.mxu0 %v584_v27 }
  0x20   :  { %268 = vmatprep.subr.bf16.mxu0 %v585_v30 }
  0x23   :  { %269 = vmatpush2.bf16.msra.mxu0 %v587_v32 }
  0x24   :  { %10 = vsyncpa [#allocation3], 0  ;;  %270 = vmatprep.subr.bf16.mxu0 %v588_v33  ;;  %v591_v35 = vld [vmem:[%s845_s1 + $0xd4] ss:$8 sps:$4 sm:$0xff]   ;;  %v593_v36 = vld [vmem:[%s845_s1 + $0xd0] ss:$8 sps:$4 sm:$0xff]   ;;  %v82_v47 = vrot.slane %v487_v20, %v81_v18 }
  0x25   :  { %v594_v37 = vld [vmem:[%s845_s1 + $0xc4] ss:$8 sps:$4 sm:$0xff]   ;;  %v596_v38 = vld [vmem:[%s845_s1 + $0xc0] ss:$8 sps:$4 sm:$0xff]   ;;  %v597_v39 = vld [vmem:[%s845_s1 + $0xb4] ss:$8 sps:$4 sm:$0xff]  }
  0x26   :  { %v599_v40 = vld [vmem:[%s845_s1 + $0xb0] ss:$8 sps:$4 sm:$0xff]   ;;  %v600_v41 = vld [vmem:[%s845_s1 + $0xa4] ss:$8 sps:$4 sm:$0xff]   ;;  %v602_v42 = vld [vmem:[%s845_s1 + $0xa0] ss:$8 sps:$4 sm:$0xff]  }
  0x27   :  { %271 = vmatpush2.bf16.msra.mxu0 %v590_v34  ;;  %v603_v43 = vld [vmem:[%s845_s1 + $0x94] ss:$8 sps:$4 sm:$0xff]   ;;  %v605_v44 = vld [vmem:[%s845_s1 + $0x90] ss:$8 sps:$4 sm:$0xff]   ;;  %v606_v45 = vld [vmem:[%s845_s1 + $0x84] ss:$8 sps:$4 sm:$0xff]  }
  0x28   :  { %272 = vmatprep.subr.bf16.mxu0 %v591_v35  ;;  %v608_v46 = vld [vmem:[%s845_s1 + $0x80] ss:$8 sps:$4 sm:$0xff]   ;;  %v617_v50 = vld [vmem:[%s847_s3 + $0x58] sm:$0xff]   ;;  %v619_v52 = vld [vmem:[%s847_s3 + $0x50] sm:$0xff]   ;;  %v59_v58 = vsub.s32 0, %v716_v14  ;;  %v63_v60 = vsub.s32 1, %v716_v14 }
  0x29   :  { %v615_v48 = vld [vmem:[%s847_s3 + $0x60] sm:$0xff]   ;;  %v618_v51 = vld [vmem:[%s847_s3 + $0x18] sm:$0xff]   ;;  %v620_v53 = vld [vmem:[%s847_s3 + $0x10] sm:$0xff]   ;;  %s652_s14 = smov [#allocation2]  }
  0x2a   :  { %v616_v49 = vld [vmem:[%s847_s3 + $0x20] sm:$0xff]   ;;  %543 = vmatprep.subr.bf16.mxu1 %v615_v48  ;;  %v621_v54 = vld [vmem:[%s847_s3 + $0x48] sm:$0xff]   ;;  %s479_s15 = sshll.u32 %s652_s14, 4  ;;  %s480_s15 = int_to_ptr.vmem [resolvable:$true] %s479_s15 }
  0x2b   :  { %273 = vmatpush2.bf16.msra.mxu0 %v593_v36  ;;  %544 = vmatpush3.bf16.msra.mxu1 %v616_v49  ;;  %v622_v55 = vld [vmem:[%s847_s3 + $0x8] sm:$0xff]   ;;  %v623_v56 = vld [vmem:[%s847_s3 + $0x40] sm:$0xff]   ;;  %s629_s16 = scalar_lea.vmem %s480_s15, 32  ;;  %p634_p1 = scmp.lt.s32.totalorder %s480_s15, %s480_s15 }
  0x2c   :  { %274 = vmatprep.subr.bf16.mxu0 %v594_v37  ;;  %545 = vmatprep.subr.bf16.mxu1 %v617_v50  ;;  %v624_v57 = vld [vmem:[%s847_s3] sm:$0xff]   ;;  %p630_p0 = scmp.ne.s32.totalorder %s480_s15, %s629_s16  ;;  %p635_p2 = scmp.lt.s32.totalorder %s629_s16, %s629_s16 }
  0x2d   :  { %v55_v59 = vld [vmem:[%s846_s2] sm:$0x3] }
  0x2e   :  { %v60_v61 = vrot.slane %v55_v59, %v59_v58  ;;  %v64_v62 = vrot.slane %v55_v59, %v63_v60  ;;  %v520_v11 = vld [vmem:[%s848_s4] ss:$0 sm:$0xff]  ;;  %p636_p3 = por %p635_p2, %p634_p1 }
  0x2f   :  { %275 = vmatpush2.bf16.msra.mxu0 %v596_v38  ;;  %546 = vmatpush3.bf16.msra.mxu1 %v618_v51 }
  0x30   :  { %276 = vmatprep.subr.bf16.mxu0 %v597_v39  ;;  %547 = vmatprep.subr.bf16.mxu1 %v619_v52  ;;  %p637_p4 = pnand %p636_p3, %p630_p0 }
  0x33   :  { %277 = vmatpush2.bf16.msra.mxu0 %v599_v40  ;;  %548 = vmatpush3.bf16.msra.mxu1 %v620_v53 }
  0x34   :  { %278 = vmatprep.subr.bf16.mxu0 %v600_v41  ;;  %549 = vmatprep.subr.bf16.mxu1 %v621_v54 }
  0x37   :  { %279 = vmatpush2.bf16.msra.mxu0 %v602_v42  ;;  %550 = vmatpush3.bf16.msra.mxu1 %v622_v55 }
  0x38   :  { %280 = vmatprep.subr.bf16.mxu0 %v603_v43  ;;  %551 = vmatprep.subr.bf16.mxu1 %v623_v56 }
  0x3b   :  { %281 = vmatpush2.bf16.msra.mxu0 %v605_v44  ;;  %552 = vmatpush3.bf16.msra.mxu1 %v624_v57 }
  0x3c   :  { %282 = vmatprep.subr.bf16.mxu0 %v606_v45 }
  0x3f   :  { %283 = vmatpush2.bf16.msra.mxu0 %v608_v46 }
  0x42   :  { %285 = vmatmul.mubr.bf16.vlgmr.msra.gmra.mxu0 %v82_v47 }
 0x102   :  { %v286_v63 = vpop.f32.mrf.mxu0 }
 0x103   :  { %v287_v0 = vadd.f32 %v286_v63, %v60_v61 }
 0x104   :  { %v288_v1 = vpop.f32.mrf.mxu0 }
 0x105   :  { %v289_v2 = vadd.f32 %v288_v1, %v64_v62  ;;  %625 = vtanh.f32 %v287_v0 }
 0x106   :  { %v290_v3 = vpop.f32.mrf.mxu0 }
 0x107   :  { %627 = vtanh.f32 %v289_v2 }
 0x108   :  { %v291_v4 = vpop.f32.mrf.mxu0 }
 0x112   :  { %v626_v5 = vpop.eup %625 }
 0x113   :  { %v295_v8 = vpack.c.bf16 %v626_v5, %v626_v5 }
 0x114   :  { %v628_v6 = vpop.eup %627 }
 0x115   :  { %v296_v7 = vpack.c.bf16 %v628_v6, %v628_v6 }
 0x117   :  { %464 = vmatprep.mubr.bf16.mxu1 %v296_v7 }
 0x118   :  { %465 = vmatmul.mubr.bf16.vlgmr.msra.gmra.mxu1 %v295_v8 }
 0x1d8   :  { %v553_v9 = vpop.f32.mrf.mxu1 }
 0x1da   :  { %v554_v10 = vpop.f32.mrf.mxu1 }
 0x1db   :  { %v555_v12 = vadd.f32 %v554_v10, %v553_v9 }
 0x1dc   :  { %v556_v13 = vpop.f32.mrf.mxu1 }
 0x1dd   :  { %v467_v14 = vadd.f32 %v555_v12, %v520_v11 }
 0x1de   :  { %v557_v15 = vpop.f32.mrf.mxu1 }
 0x1df   :  { %472 = vst [vmem:[#allocation2] sm:$0x3] %v467_v14 }
 0x1e0   :  { %640 = shalt.err (!%p637_p4)
}
 0x1e1   :  { %482 = dma.vmem_to_hbm [thread:$0]  %s480_s15, 32, %s849_s5, [#allocation3]  }
 0x1e2   :  { %649 = dma.done.wait [#allocation3], 32  }
 0x1e3   :  { %650 = vsyncadd [#allocation3], 4294967264 }
 0x1e4   :  { %486 = vsyncpa [#allocation3], 1 }

// kernel: bert_class_forward.6
= control target key start
LH: loop header
LB: loop body
LE: loop exit
PB: predicated region body
PF: predicated region fallthrough
CT: control target
= control target key end

     0   :  { %s3968_s29 = smov 0   ;;  %s4945_s0 = inlined_call_operand.vmem [shape: bf16[2,8,256], index: 0, kind: input, shape index: {}]   ;;  %s4946_s1 = inlined_call_operand.vmem [shape: f32[2,1,8], index: 1, kind: input, shape index: {}]   ;;  %s4947_s2 = inlined_call_operand.vmem [shape: bf16[256,768], index: 2, kind: input, shape index: {}]   ;;  %s4948_s3 = inlined_call_operand.vmem [shape: f32[1,768], index: 3, kind: input, shape index: {}]   ;;  %s4949_s4 = inlined_call_operand.vmem [shape: bf16[256,256], index: 4, kind: input, shape index: {}]   ;;  %s4950_s5 = inlined_call_operand.vmem [shape: f32[1,256], index: 5, kind: input, shape index: {}]   ;;  %s4951_s6 = inlined_call_operand.vmem [shape: f32[1,256], index: 6, kind: input, shape index: {}]   ;;  %s4952_s7 = inlined_call_operand.vmem [shape: f32[1,256], index: 7, kind: input, shape index: {}]   ;;  %s4953_s8 = inlined_call_operand.vmem [shape: bf16[256,512], index: 8, kind: input, shape index: {}]   ;;  %s4954_s9 = inlined_call_operand.vmem [shape: f32[1,512], index: 9, kind: input, shape index: {}]   ;;  %s4955_s10 = inlined_call_operand.vmem [shape: bf16[512,256], index: 10, kind: input, shape index: {}]   ;;  %s4956_s11 = inlined_call_operand.vmem [shape: f32[1,256], index: 11, kind: input, shape index: {}]   ;;  %s4957_s12 = inlined_call_operand.vmem [shape: f32[1,256], index: 12, kind: input, shape index: {}]   ;;  %s4958_s13 = inlined_call_operand.vmem [shape: f32[1,256], index: 13, kind: input, shape index: {}]   ;;  %s4959_s14 = inlined_call_operand.vmem [shape: bf16[2,8,256], index: 14, kind: output, shape index: {}]  }
   0x1 LB: > { %s3110_s30 = sadd.s32 4294967295, %s3888_s29   ;;  %p3114_p0 = scmp.ge.s32.totalorder %s3888_s29, 1  ;;  %s3888_s29 = sphi %s3968_s29, %s24_s29  }
   0x2   : > { %p420_p1 = scmp.lt.s32.totalorder %s3888_s29, 3 }
   0x4   : > { %p421_p2 = pnand %p3114_p0, %p420_p1 }
   0x5   : > { %p469_p3 = scmp.lt.s32.totalorder (!%p421_p2), %s3110_s30, 1  ;;  %s3892_s16 = smov (!%p421_p2), 64  }
   0x6   : > { %424 = sbr.rel (%p421_p2) target bundleno = 3916 (0xf4c), region = 76 }
   0xb   : > { %v3467_v0 = vld [vmem:[%s4947_s2 + $0x15c] ss:$24 sps:$4 sm:$0xff]   ;;  %v3469_v1 = vld [vmem:[%s4947_s2 + $0x158] ss:$24 sps:$4 sm:$0xff]   ;;  %v3473_v4 = vld [vmem:[%s4947_s2 + $0x12c] ss:$24 sps:$4 sm:$0xff]  }
   0xc   : > { %1141 = vmatprep.subr.bf16.mxu1 %v3467_v0  ;;  %v3470_v2 = vld [vmem:[%s4947_s2 + $0x154] ss:$24 sps:$4 sm:$0xff]   ;;  %v3472_v3 = vld [vmem:[%s4947_s2 + $0x150] ss:$24 sps:$4 sm:$0xff]   ;;  %v3476_v6 = vld [vmem:[%s4947_s2 + $0x124] ss:$24 sps:$4 sm:$0xff]  }
   0xd   : > { %1142 = vmatpush1.bf16.msra.mxu1 %v3469_v1  ;;  %v3475_v5 = vld [vmem:[%s4947_s2 + $0x128] ss:$24 sps:$4 sm:$0xff]   ;;  %1100 = vmatprep.subr.bf16.mxu0 %v3470_v2  ;;  %v3479_v8 = vld [vmem:[%s4947_s2 + $0xfc] ss:$24 sps:$4 sm:$0xff]   ;;  %v3481_v9 = vld [vmem:[%s4947_s2 + $0xf8] ss:$24 sps:$4 sm:$0xff]  }
   0xe   : > { %1101 = vmatpush1.bf16.msra.mxu0 %v3472_v3  ;;  %1143 = vmatprep.subr.bf16.mxu1 %v3473_v4  ;;  %v3478_v7 = vld [vmem:[%s4947_s2 + $0x120] ss:$24 sps:$4 sm:$0xff]   ;;  %v3482_v10 = vld [vmem:[%s4947_s2 + $0xf4] ss:$24 sps:$4 sm:$0xff]   ;;  %v3484_v12 = vld [vmem:[%s4947_s2 + $0xf0] ss:$24 sps:$4 sm:$0xff]   ;;  %v583_v4 = vlaneseq }
   0xf   : > { %1102 = vmatprep.subr.bf16.mxu0 %v3476_v6  ;;  %v3485_v11 = vld [vmem:[%s4947_s2 + $0xcc] ss:$24 sps:$4 sm:$0xff]   ;;  %v3487_v14 = vld [vmem:[%s4947_s2 + $0xc8] ss:$24 sps:$4 sm:$0xff]   ;;  %v3491_v15 = vld [vmem:[%s4947_s2 + $0x9c] ss:$24 sps:$4 sm:$0xff]  }
  0x10   : > { %v3488_v13 = vld [vmem:[%s4947_s2 + $0xc4] ss:$24 sps:$4 sm:$0xff]   ;;  %v3490_v16 = vld [vmem:[%s4947_s2 + $0xc0] ss:$24 sps:$4 sm:$0xff]   ;;  %v3494_v17 = vld [vmem:[%s4947_s2 + $0x94] ss:$24 sps:$4 sm:$0xff]  }
  0x11   : > { %1144 = vmatpush1.bf16.msra.mxu1 %v3475_v5  ;;  %v3493_v18 = vld [vmem:[%s4947_s2 + $0x98] ss:$24 sps:$4 sm:$0xff]   ;;  %v3497_v19 = vld [vmem:[%s4947_s2 + $0x6c] ss:$24 sps:$4 sm:$0xff]   ;;  %v3499_v22 = vld [vmem:[%s4947_s2 + $0x68] ss:$24 sps:$4 sm:$0xff]  }
  0x12   : > { %1145 = vmatprep.subr.bf16.mxu1 %v3479_v8  ;;  %1103 = vmatpush1.bf16.msra.mxu0 %v3478_v7  ;;  %v3496_v20 = vld [vmem:[%s4947_s2 + $0x90] ss:$24 sps:$4 sm:$0xff]   ;;  %v3500_v21 = vld [vmem:[%s4947_s2 + $0x64] ss:$24 sps:$4 sm:$0xff]   ;;  %v3502_v24 = vld [vmem:[%s4947_s2 + $0x60] ss:$24 sps:$4 sm:$0xff]  }
  0x13   : > { %1104 = vmatprep.subr.bf16.mxu0 %v3482_v10  ;;  %v3503_v23 = vld [vmem:[%s4947_s2 + $0x3c] ss:$24 sps:$4 sm:$0xff]   ;;  %v3505_v26 = vld [vmem:[%s4947_s2 + $0x38] ss:$24 sps:$4 sm:$0xff]   ;;  %v3509_v27 = vld [vmem:[%s4947_s2 + $0xc] ss:$24 sps:$4 sm:$0xff]  }
  0x14   : > { %v3506_v25 = vld [vmem:[%s4947_s2 + $0x34] ss:$24 sps:$4 sm:$0xff]   ;;  %v3508_v28 = vld [vmem:[%s4947_s2 + $0x30] ss:$24 sps:$4 sm:$0xff]   ;;  %v3512_v29 = vld [vmem:[%s4947_s2 + $0x4] ss:$24 sps:$4 sm:$0xff]  }
  0x15   : > { %1146 = vmatpush1.bf16.msra.mxu1 %v3481_v9  ;;  %v3511_v30 = vld [vmem:[%s4947_s2 + $0x8] ss:$24 sps:$4 sm:$0xff]   ;;  %v3515_v31 = vld [vmem:[%s4947_s2 + $0x2dc] ss:$24 sps:$4 sm:$0xff]   ;;  %v3517_v34 = vld [vmem:[%s4947_s2 + $0x2d8] ss:$24 sps:$4 sm:$0xff]  }
  0x16   : > { %1147 = vmatprep.subr.bf16.mxu1 %v3485_v11  ;;  %1105 = vmatpush1.bf16.msra.mxu0 %v3484_v12  ;;  %v3514_v32 = vld [vmem:[%s4947_s2] ss:$24 sps:$4 sm:$0xff]   ;;  %v3518_v33 = vld [vmem:[%s4947_s2 + $0x2d4] ss:$24 sps:$4 sm:$0xff]   ;;  %s4961_s30 = smov (!%p469_p3, %s3110_s30), 1  ;;  %v3890_v3 = vmov 0.0  }
  0x17   : > { %1106 = vmatprep.subr.bf16.mxu0 %v3488_v13  ;;  %v3521_v35 = vld [vmem:[%s4947_s2 + $0x2ac] ss:$24 sps:$4 sm:$0xff]   ;;  %v3520_v36 = vld [vmem:[%s4947_s2 + $0x2d0] ss:$24 sps:$4 sm:$0xff]   ;;  %v3527_v39 = vld [vmem:[%s4947_s2 + $0x27c] ss:$24 sps:$4 sm:$0xff]   ;;  %s476_s17 = scalar_lea.vmem %s4946_s1, %s4961_s30 }
  0x18   : > { %v3524_v37 = vld [vmem:[%s4947_s2 + $0x2a4] ss:$24 sps:$4 sm:$0xff]   ;;  %v3523_v38 = vld [vmem:[%s4947_s2 + $0x2a8] ss:$24 sps:$4 sm:$0xff]   ;;  %s3389_s25 = sshll.u32 %s4961_s30, 3  ;;  %vm3891_vm0 = vmmov 0  }
  0x19   : > { %1148 = vmatpush1.bf16.msra.mxu1 %v3487_v14  ;;  %v3526_v40 = vld [vmem:[%s4947_s2 + $0x2a0] ss:$24 sps:$4 sm:$0xff]   ;;  %v3530_v41 = vld [vmem:[%s4947_s2 + $0x274] ss:$24 sps:$4 sm:$0xff]   ;;  %s4117_s20 = scalar_lea.vmem %s4945_s0, %s3389_s25  ;;  %v3532_v44 = vld [vmem:[%s4947_s2 + $0x270] ss:$24 sps:$4 sm:$0xff]   ;;  %s481_s28 = scalar_lea.vmem %s4959_s14, %s3389_s25 }
  0x1a   : > { %1149 = vmatprep.subr.bf16.mxu1 %v3491_v15  ;;  %1107 = vmatpush1.bf16.msra.mxu0 %v3490_v16  ;;  %v3529_v42 = vld [vmem:[%s4947_s2 + $0x278] ss:$24 sps:$4 sm:$0xff]   ;;  %v3533_v43 = vld [vmem:[%s4947_s2 + $0x24c] ss:$24 sps:$4 sm:$0xff]   ;;  %v3535_v45 = vld [vmem:[%s4947_s2 + $0x248] ss:$24 sps:$4 sm:$0xff]  }
  0x1b   : > { %1108 = vmatprep.subr.bf16.mxu0 %v3494_v17  ;;  %v3536_v46 = vld [vmem:[%s4947_s2 + $0x244] ss:$24 sps:$4 sm:$0xff]   ;;  %v3538_v48 = vld [vmem:[%s4947_s2 + $0x240] ss:$24 sps:$4 sm:$0xff]   ;;  %v3542_v51 = vld [vmem:[%s4947_s2 + $0x214] ss:$24 sps:$4 sm:$0xff]  }
  0x1c   : > { %v483_v47 = vld [vmem:[%s4117_s20] sm:$0xff]  ;;  %v3539_v49 = vld [vmem:[%s4947_s2 + $0x21c] ss:$24 sps:$4 sm:$0xff]   ;;  %v3541_v52 = vld [vmem:[%s4947_s2 + $0x218] ss:$24 sps:$4 sm:$0xff]   ;;  %v4190_v5 = vshrl.u32 %v583_v4, 7 }
  0x1d   : > { %1150 = vmatpush1.bf16.msra.mxu1 %v3493_v18  ;;  %v3120_v50 = vcombine.high %v483_v47, %v483_v47  ;;  %v3545_v53 = vld [vmem:[%s4947_s2 + $0x1ec] ss:$24 sps:$4 sm:$0xff]   ;;  %v3544_v54 = vld [vmem:[%s4947_s2 + $0x210] ss:$24 sps:$4 sm:$0xff]   ;;  %v3551_v57 = vld [vmem:[%s4947_s2 + $0x1bc] ss:$24 sps:$4 sm:$0xff]   ;;  %v4183_v2 = vcombine.low %v483_v47, %v483_v47 }
  0x1e   : > { %1151 = vmatprep.subr.bf16.mxu1 %v3497_v19  ;;  %1109 = vmatpush1.bf16.msra.mxu0 %v3496_v20  ;;  %v3548_v55 = vld [vmem:[%s4947_s2 + $0x1e4] ss:$24 sps:$4 sm:$0xff]   ;;  %v3547_v56 = vld [vmem:[%s4947_s2 + $0x1e8] ss:$24 sps:$4 sm:$0xff]   ;;  %v3554_v59 = vld [vmem:[%s4947_s2 + $0x1b4] ss:$24 sps:$4 sm:$0xff]  }
  0x1f   : > { %1110 = vmatprep.subr.bf16.mxu0 %v3500_v21  ;;  %1173 = vmatprep.mubr.bf16.mxu1 %v3120_v50  ;;  %v3550_v58 = vld [vmem:[%s4947_s2 + $0x1e0] ss:$24 sps:$4 sm:$0xff]   ;;  %v3557_v61 = vld [vmem:[%s4947_s2 + $0x18c] ss:$24 sps:$4 sm:$0xff]   ;;  %v3556_v62 = vld [vmem:[%s4947_s2 + $0x1b0] ss:$24 sps:$4 sm:$0xff]  }
  0x20   : > { %1132 = vmatprep.mubr.bf16.mxu0 %v3120_v50  ;;  %v3553_v60 = vld [vmem:[%s4947_s2 + $0x1b8] ss:$24 sps:$4 sm:$0xff]   ;;  %v3560_v63 = vld [vmem:[%s4947_s2 + $0x184] ss:$24 sps:$4 sm:$0xff]   ;;  %v3559_v0 = vld [vmem:[%s4947_s2 + $0x188] ss:$24 sps:$4 sm:$0xff]  }
  0x21   : > { %1152 = vmatpush1.bf16.msra.mxu1 %v3499_v22  ;;  %v3563_v1 = vld [vmem:[%s4947_s2 + $0x180] ss:$24 sps:$4 sm:$0xff]   ;;  %v593_v6 = vsub.s32 2, %v4190_v5  ;;  %v4199_v8 = vsub.s32 0, %v4190_v5  ;;  %vm1235_vm1 = vcmask 523264   ;;  %vm1282_vm2 = vcmask 64512  }
  0x22   : > { %1153 = vmatprep.subr.bf16.mxu1 %v3503_v23  ;;  %1111 = vmatpush1.bf16.msra.mxu0 %v3502_v24  ;;  %v4196_v7 = vld [vmem:[%s4948_s3] sm:$0x3f]  ;;  %v3598_v47 = vld [vmem:[%s4947_s2 + $0x250] ss:$24 sps:$4 sm:$0xff]   ;;  %vm1298_vm3 = vcmask 1043456   ;;  %vm1460_vm4 = vcmask 1048064  }
  0x23   : > { %1112 = vmatprep.subr.bf16.mxu0 %v3506_v25  ;;  %v594_v9 = vrot.slane %v4196_v7, %v593_v6  ;;  %v586_v10 = vrot.slane %v4196_v7, %v4199_v8  ;;  %v3565_v24 = vld [vmem:[%s4947_s2 + $0x160] ss:$24 sps:$4 sm:$0xff]   ;;  %v3567_v25 = vld [vmem:[%s4947_s2 + $0x164] ss:$24 sps:$4 sm:$0xff]  }
  0x25   : > { %1154 = vmatpush1.bf16.msra.mxu1 %v3505_v26  ;;  %v3570_v26 = vld [vmem:[%s4947_s2 + $0x134] ss:$24 sps:$4 sm:$0xff]  }
  0x26   : > { %1155 = vmatprep.subr.bf16.mxu1 %v3509_v27  ;;  %1113 = vmatpush1.bf16.msra.mxu0 %v3508_v28  ;;  %v3568_v27 = vld [vmem:[%s4947_s2 + $0x130] ss:$24 sps:$4 sm:$0xff]   ;;  %v3573_v28 = vld [vmem:[%s4947_s2 + $0x104] ss:$24 sps:$4 sm:$0xff]  }
  0x27   : > { %1114 = vmatprep.subr.bf16.mxu0 %v3512_v29  ;;  %v3571_v29 = vld [vmem:[%s4947_s2 + $0x100] ss:$24 sps:$4 sm:$0xff]  }
  0x29   : > { %1156 = vmatpush1.bf16.msra.mxu1 %v3511_v30  ;;  %v3576_v30 = vld [vmem:[%s4947_s2 + $0xd4] ss:$24 sps:$4 sm:$0xff]  }
  0x2a   : > { %1157 = vmatprep.subr.bf16.mxu1 %v3515_v31  ;;  %1115 = vmatpush1.bf16.msra.mxu0 %v3514_v32  ;;  %v3574_v31 = vld [vmem:[%s4947_s2 + $0xd0] ss:$24 sps:$4 sm:$0xff]   ;;  %v3579_v32 = vld [vmem:[%s4947_s2 + $0xa4] ss:$24 sps:$4 sm:$0xff]  }
  0x2b   : > { %1116 = vmatprep.subr.bf16.mxu0 %v3518_v33  ;;  %v3577_v33 = vld [vmem:[%s4947_s2 + $0xa0] ss:$24 sps:$4 sm:$0xff]  }
  0x2d   : > { %1158 = vmatpush2.bf16.msra.mxu1 %v3517_v34  ;;  %v3582_v34 = vld [vmem:[%s4947_s2 + $0x74] ss:$24 sps:$4 sm:$0xff]  }
  0x2e   : > { %1159 = vmatprep.subr.bf16.mxu1 %v3521_v35  ;;  %1117 = vmatpush2.bf16.msra.mxu0 %v3520_v36  ;;  %v3580_v35 = vld [vmem:[%s4947_s2 + $0x70] ss:$24 sps:$4 sm:$0xff]   ;;  %v3585_v36 = vld [vmem:[%s4947_s2 + $0x44] ss:$24 sps:$4 sm:$0xff]  }
  0x2f   : > { %1118 = vmatprep.subr.bf16.mxu0 %v3524_v37  ;;  %v3583_v37 = vld [vmem:[%s4947_s2 + $0x40] ss:$24 sps:$4 sm:$0xff]  }
  0x31   : > { %1160 = vmatpush2.bf16.msra.mxu1 %v3523_v38  ;;  %v3588_v38 = vld [vmem:[%s4947_s2 + $0x14] ss:$24 sps:$4 sm:$0xff]  }
  0x32   : > { %1161 = vmatprep.subr.bf16.mxu1 %v3527_v39  ;;  %1119 = vmatpush2.bf16.msra.mxu0 %v3526_v40  ;;  %v3586_v39 = vld [vmem:[%s4947_s2 + $0x10] ss:$24 sps:$4 sm:$0xff]   ;;  %v3591_v40 = vld [vmem:[%s4947_s2 + $0x2e4] ss:$24 sps:$4 sm:$0xff]  }
  0x33   : > { %1120 = vmatprep.subr.bf16.mxu0 %v3530_v41  ;;  %v3589_v41 = vld [vmem:[%s4947_s2 + $0x2e0] ss:$24 sps:$4 sm:$0xff]  }
  0x35   : > { %1162 = vmatpush2.bf16.msra.mxu1 %v3529_v42  ;;  %v3594_v42 = vld [vmem:[%s4947_s2 + $0x2b4] ss:$24 sps:$4 sm:$0xff]  }
  0x36   : > { %1163 = vmatprep.subr.bf16.mxu1 %v3533_v43  ;;  %1121 = vmatpush2.bf16.msra.mxu0 %v3532_v44  ;;  %v3592_v43 = vld [vmem:[%s4947_s2 + $0x2b0] ss:$24 sps:$4 sm:$0xff]   ;;  %v3597_v44 = vld [vmem:[%s4947_s2 + $0x284] ss:$24 sps:$4 sm:$0xff]  }
  0x37   : > { %1122 = vmatprep.subr.bf16.mxu0 %v3536_v46  ;;  %v3600_v46 = vld [vmem:[%s4947_s2 + $0x254] ss:$24 sps:$4 sm:$0xff]  }
  0x39   : > { %1164 = vmatpush2.bf16.msra.mxu1 %v3535_v45  ;;  %v3595_v45 = vld [vmem:[%s4947_s2 + $0x280] ss:$24 sps:$4 sm:$0xff]  }
  0x3a   : > { %1165 = vmatprep.subr.bf16.mxu1 %v3539_v49  ;;  %1123 = vmatpush2.bf16.msra.mxu0 %v3538_v48  ;;  %v3603_v48 = vld [vmem:[%s4947_s2 + $0x224] ss:$24 sps:$4 sm:$0xff]   ;;  %v3601_v49 = vld [vmem:[%s4947_s2 + $0x220] ss:$24 sps:$4 sm:$0xff]  }
  0x3b   : > { %1124 = vmatprep.subr.bf16.mxu0 %v3542_v51  ;;  %v3604_v51 = vld [vmem:[%s4947_s2 + $0x1f0] ss:$24 sps:$4 sm:$0xff]  }
  0x3d   : > { %1166 = vmatpush2.bf16.msra.mxu1 %v3541_v52  ;;  %v3609_v52 = vld [vmem:[%s4947_s2 + $0x1c4] ss:$24 sps:$4 sm:$0xff]  }
  0x3e   : > { %1167 = vmatprep.subr.bf16.mxu1 %v3545_v53  ;;  %1125 = vmatpush2.bf16.msra.mxu0 %v3544_v54  ;;  %v3607_v53 = vld [vmem:[%s4947_s2 + $0x1c0] ss:$24 sps:$4 sm:$0xff]   ;;  %v3612_v54 = vld [vmem:[%s4947_s2 + $0x194] ss:$24 sps:$4 sm:$0xff]  }
  0x3f   : > { %1126 = vmatprep.subr.bf16.mxu0 %v3548_v55  ;;  %v3610_v55 = vld [vmem:[%s4947_s2 + $0x190] ss:$24 sps:$4 sm:$0xff]  }
  0x41   : > { %1168 = vmatpush2.bf16.msra.mxu1 %v3547_v56  ;;  %v4318_v56 = vld [vmem:[%s476_s17] ss:$0 sm:$0xff] }
  0x42   : > { %1169 = vmatprep.subr.bf16.mxu1 %v3551_v57  ;;  %1127 = vmatpush2.bf16.msra.mxu0 %v3550_v58 }
  0x43   : > { %1128 = vmatprep.subr.bf16.mxu0 %v3554_v59 }
  0x45   : > { %1170 = vmatpush2.bf16.msra.mxu1 %v3553_v60 }
  0x46   : > { %1171 = vmatprep.subr.bf16.mxu1 %v3557_v61  ;;  %1129 = vmatpush2.bf16.msra.mxu0 %v3556_v62 }
  0x47   : > { %1130 = vmatprep.subr.bf16.mxu0 %v3560_v63  ;;  %v601_v63 = vsub.s32 4, %v4190_v5 }
  0x49   : > { %1172 = vmatpush2.bf16.msra.mxu1 %v3559_v0  ;;  %v602_v0 = vrot.slane %v4196_v7, %v601_v63 }
  0x4a   : > { %1131 = vmatpush2.bf16.msra.mxu0 %v3563_v1  ;;  %3408 = vmatprep.subr.bf16.mxu1 %v3890_v3 }
  0x4b   : > { %1182 = vmatprep.subr.bf16.mxu0 %v3567_v25 }
  0x4c   : > { %1174 = vmatmul.mubr.bf16.vlgmr.msra.gmra.mxu1 %v4183_v2 }
  0x4d   : > { %1133 = vmatmul.mubr.bf16.vlgmr.msra.gmra.mxu0 %v4183_v2  ;;  %3410 = vmatprep.mubr.msk.bf16.mxu1 %vm3891_vm0, %v3890_v3 }
  0x4e   : > { %1214 = vmatprep.mubr.bf16.mxu0 %v3120_v50  ;;  %1183 = vmatpush1.bf16.msra.mxu0 %v3565_v24  ;;  %v3606_v50 = vld [vmem:[%s4947_s2 + $0x1f4] ss:$24 sps:$4 sm:$0xff]  }
  0x4f   : > { %1184 = vmatprep.subr.bf16.mxu0 %v3570_v26 }
  0x52   : > { %1185 = vmatpush1.bf16.msra.mxu0 %v3568_v27 }
  0x53   : > { %1186 = vmatprep.subr.bf16.mxu0 %v3573_v28 }
  0x56   : > { %1187 = vmatpush1.bf16.msra.mxu0 %v3571_v29 }
  0x57   : > { %1188 = vmatprep.subr.bf16.mxu0 %v3576_v30 }
  0x5a   : > { %1189 = vmatpush1.bf16.msra.mxu0 %v3574_v31 }
  0x5b   : > { %1190 = vmatprep.subr.bf16.mxu0 %v3579_v32 }
  0x5e   : > { %1191 = vmatpush1.bf16.msra.mxu0 %v3577_v33 }
  0x5f   : > { %1192 = vmatprep.subr.bf16.mxu0 %v3582_v34 }
  0x62   : > { %1193 = vmatpush1.bf16.msra.mxu0 %v3580_v35 }
  0x63   : > { %1194 = vmatprep.subr.bf16.mxu0 %v3585_v36 }
  0x66   : > { %1195 = vmatpush1.bf16.msra.mxu0 %v3583_v37 }
  0x67   : > { %1196 = vmatprep.subr.bf16.mxu0 %v3588_v38 }
  0x6a   : > { %1197 = vmatpush1.bf16.msra.mxu0 %v3586_v39 }
  0x6b   : > { %1198 = vmatprep.subr.bf16.mxu0 %v3591_v40 }
  0x6e   : > { %1199 = vmatpush2.bf16.msra.mxu0 %v3589_v41 }
  0x6f   : > { %1200 = vmatprep.subr.bf16.mxu0 %v3594_v42 }
  0x72   : > { %1201 = vmatpush2.bf16.msra.mxu0 %v3592_v43 }
  0x73   : > { %1202 = vmatprep.subr.bf16.mxu0 %v3597_v44 }
  0x76   : > { %1203 = vmatpush2.bf16.msra.mxu0 %v3595_v45  ;;  %v597_v45 = vsub.s32 3, %v4190_v5 }
  0x77   : > { %1204 = vmatprep.subr.bf16.mxu0 %v3600_v46 }
  0x78   : > { %v598_v46 = vrot.slane %v4196_v7, %v597_v45 }
  0x7a   : > { %1205 = vmatpush2.bf16.msra.mxu0 %v3598_v47 }
  0x7b   : > { %1206 = vmatprep.subr.bf16.mxu0 %v3603_v48  ;;  %v605_v48 = vsub.s32 5, %v4190_v5 }
  0x7e   : > { %1207 = vmatpush2.bf16.msra.mxu0 %v3601_v49  ;;  %v4349_v49 = vsub.s32 1, %v4190_v5 }
  0x7f   : > { %1208 = vmatprep.subr.bf16.mxu0 %v3606_v50 }
  0x82   : > { %1209 = vmatpush2.bf16.msra.mxu0 %v3604_v51 }
  0x83   : > { %1210 = vmatprep.subr.bf16.mxu0 %v3609_v52  ;;  %v606_v52 = vrot.slane %v4196_v7, %v605_v48  ;;  %v3618_v48 = vld [vmem:[%s4949_s4 + $0x64] ss:$8 sps:$4 sm:$0xff]  }
  0x86   : > { %1211 = vmatpush2.bf16.msra.mxu0 %v3607_v53 }
  0x87   : > { %1212 = vmatprep.subr.bf16.mxu0 %v3612_v54  ;;  %v590_v54 = vrot.slane %v4196_v7, %v4349_v49 }
  0x8a   : > { %1213 = vmatpush2.bf16.msra.mxu0 %v3610_v55 }
  0x8d   : > { %1215 = vmatmul.mubr.bf16.vlgmr.msra.gmra.mxu0 %v4183_v2 }
 0x10c   : > { %v1175_v11 = vpop.f32.mrf.mxu1 }
 0x10d   : > { %v1176_v12 = vadd.f32 %v1175_v11, %v594_v9  ;;  %v1134_v14 = vpop.f32.mrf.mxu0 }
 0x10e   : > { %v4206_v13 = vpop.f32.mrf.mxu1  ;;  %v1135_v16 = vadd.f32 %v1134_v14, %v586_v10 }
 0x10f   : > { %v1225_v15 = vpack.c.bf16 %v1176_v12, %v1176_v12  ;;  %v4208_v18 = vpop.f32.mrf.mxu0  ;;  %v1178_v47 = vadd.f32 %v4206_v13, %v598_v46  ;;  %v3613_v46 = vld [vmem:[%s4949_s4 + $0x70] ss:$8 sps:$4 sm:$0xff]  }
 0x110   : > { %v1179_v17 = vpop.f32.mrf.mxu1  ;;  %v1223_v20 = vpack.c.bf16 %v1135_v16, %v1135_v16  ;;  %v1137_v13 = vadd.f32 %v4208_v18, %v590_v54  ;;  %v3622_v54 = vld [vmem:[%s4949_s4 + $0x40] ss:$8 sps:$4 sm:$0xff]  }
 0x111   : > { %v1240_v19 = vsel %vm1235_vm1, %v1225_v15, 0  ;;  %1347 = vrot.lane.b32.xlu1 %v1225_v15, %s3892_s16  ;;  %v1138_v22 = vpop.f32.mrf.mxu0  ;;  %v1226_v51 = vpack.c.bf16 %v1178_v47, %v1178_v47  ;;  %v3615_v47 = vld [vmem:[%s4949_s4 + $0x74] ss:$8 sps:$4 sm:$0xff]  }
 0x112   : > { %v1180_v21 = vpop.f32.mrf.mxu1  ;;  %3409 = vmatpush3.bf16.xpose.msra.mxu1 %v1240_v19  ;;  %1893 = vmatprep.subr.bf16.mxu0 %v3615_v47  ;;  %v3669_v47 = vld [vmem:[%s4953_s8 + $0xc4] ss:$16 sps:$4 sm:$0xff]  }
 0x113   : > { %3414 = vmatprep.subr.bf16.mxu1 %v3890_v3  ;;  %v1139_v23 = vpop.f32.mrf.mxu0  ;;  %1894 = vmatpush1.bf16.msra.mxu0 %v3613_v46  ;;  %v3666_v46 = vld [vmem:[%s4953_s8 + $0xec] ss:$16 sps:$4 sm:$0xff]  }
 0x114   : > { %1895 = vmatprep.subr.bf16.mxu0 %v3618_v48  ;;  %v3672_v48 = vld [vmem:[%s4953_s8 + $0xcc] ss:$16 sps:$4 sm:$0xff]  }
 0x115   : > { %1344 = vrot.lane.b32.xlu1 %v1223_v20, %s3892_s16 }
 0x119   : > { %3411 = vmatmul.mubr.msk.bf16.vlgmr.msra.gmra.mxu1 %vm1235_vm1, %v1223_v20 }
 0x11a   : > { %3416 = vmatprep.mubr.msk.bf16.mxu1 %vm3891_vm0, %v3890_v3 }
 0x14d   : > { %v1216_v1 = vpop.f32.mrf.mxu0 }
 0x14e   : > { %v1217_v2 = vadd.f32 %v1216_v1, %v602_v0 }
 0x14f   : > { %v1218_v16 = vpop.f32.mrf.mxu0 }
 0x150   : > { %v1227_v4 = vpack.c.bf16 %v1217_v2, %v1217_v2 }
 0x151   : > { %v1220_v17 = vpop.f32.mrf.mxu0 }
 0x152   : > { %v1300_v10 = vsel %vm1298_vm3, %v1227_v4, 0 }
 0x153   : > { %3415 = vmatpush3.bf16.msra.mxu1 %v1300_v10  ;;  %v1221_v19 = vpop.f32.mrf.mxu0 }
 0x154   : > { %3420 = vmatprep.subr.bf16.mxu1 %v3890_v3 }
 0x183   : > { %v1348_v23 = vpop.permute.xlu1 %1347 }
 0x184   : > { %v1353_v25 = vsel %vm1235_vm1, %v1348_v23, 0 }
 0x187   : > { %v1345_v26 = vpop.permute.xlu1 %1344 }
 0x1d9   : > { %v1276_v57 = vpop.f32.mrf.mxu1 }
 0x1da   : > { %v1277_v58 = vadd.f32 %v4318_v56, %v1276_v57  ;;  %v1466_v57 = vsel %vm1235_vm1, %v1226_v51, 0 }
 0x1db   : > { %v3412_v59 = vpop.f32.mrf.mxu1 }
 0x1dc   : > { %v1283_v60 = vsel %vm1282_vm2, %v1277_v58, -inf }
 0x1dd   : > { %1284 = vmax.xlane.f32.xlu0 %v1283_v60  ;;  %v1279_v61 = vpop.f32.mrf.mxu1  ;;  %v1224_v60 = vpack.c.bf16 %v1137_v13, %v1137_v13  ;;  %v3628_v13 = vld [vmem:[%s4949_s4 + $0x20] ss:$8 sps:$4 sm:$0xff]  }
 0x1df   : > { %v3413_v62 = vpop.f32.mrf.mxu1 }
 0x266   : > { %v1285_v9 = vpop.xlane.xlu0 %1284 }
 0x267   : > { %v1286_v11 = vsub.f32 %v1277_v58, %v1285_v9  ;;  %v1219_v58 = vadd.f32 %v1218_v16, %v606_v52  ;;  %v3619_v52 = vld [vmem:[%s4949_s4 + $0x50] ss:$8 sps:$4 sm:$0xff]  }
 0x269   : > { %v1287_v12 = vmul.f32 1.442695, %v1286_v11  ;;  %v1228_v59 = vpack.c.bf16 %v1219_v58, %v1219_v58  ;;  %v3630_v58 = vld [vmem:[%s4949_s4 + $0x24] ss:$8 sps:$4 sm:$0xff]  }
 0x26b   : > { %3853 = vpow2.f32 %v1287_v12  ;;  %v1524_v61 = vsel %vm1298_vm3, %v1228_v59, 0 }
 0x278   : > { %v3854_v14 = vpop.eup %3853 }
 0x279   : > { %v1289_v15 = vsel %vm1282_vm2, %v3854_v14, 0.0 }
 0x27a   : > { %1290 = vadd.xlane.f32.xlu0 %v1289_v15 }
 0x303   : > { %v1291_v20 = vpop.xlane.xlu0 %1290 }
 0x304   : > { %3855 = vrcp.f32 %v1291_v20 }
 0x311   : > { %v3856_v21 = vpop.eup %3855 }
 0x312   : > { %v1293_v22 = vmul.f32 %v3856_v21, %v3854_v14 }
 0x314   : > { %v1294_v24 = vpack.c.bf16 %v1293_v22, %v1293_v22 }
 0x316   : > { %3417 = vmatmul.mubr.msk.bf16.vlgmr.msra.gmra.mxu1 %vm1282_vm2, %v1294_v24 }
 0x317   : > { %3421 = vmatpush3.bf16.xpose.msra.mxu1 %v1353_v25  ;;  %3422 = vmatprep.mubr.msk.bf16.mxu1 %vm3891_vm0, %v3890_v3 }
 0x318   : > { %3426 = vmatprep.subr.bf16.mxu1 %v3890_v3 }
 0x31e   : > { %3423 = vmatmul.mubr.msk.bf16.vlgmr.msra.gmra.mxu1 %vm1235_vm1, %v1345_v26 }
 0x31f   : > { %3428 = vmatprep.mubr.msk.bf16.mxu1 %vm3891_vm0, %v3890_v3 }
 0x3d6   : > { %v1336_v27 = vpop.f32.mrf.mxu1 }
 0x3d7   : > { %1342 = vst.msk [vmem:[#allocation2] sm:$0xff] %vm1235_vm1, %v1336_v27 }
 0x3d8   : > { %v3418_v28 = vpop.f32.mrf.mxu1 }
 0x3da   : > { %v1339_v29 = vpop.f32.mrf.mxu1 }
 0x3dc   : > { %v3419_v30 = vpop.f32.mrf.mxu1 }
 0x3de   : > { %v1389_v31 = vpop.f32.mrf.mxu1 }
 0x3df   : > { %v1390_v32 = vadd.f32 %v4318_v56, %v1389_v31 }
 0x3e0   : > { %v3424_v33 = vpop.f32.mrf.mxu1 }
 0x3e1   : > { %v1395_v34 = vsel %vm1282_vm2, %v1390_v32, -inf }
 0x3e2   : > { %1396 = vmax.xlane.f32.xlu0 %v1395_v34  ;;  %v1392_v35 = vpop.f32.mrf.mxu1 }
 0x3e4   : > { %v3425_v36 = vpop.f32.mrf.mxu1 }
 0x3f8   : > { %1408 = vrot.lane.b32.xlu0 %v1227_v4, %s3892_s16 }
 0x46b   : > { %v1397_v37 = vpop.xlane.xlu0 %1396 }
 0x46c   : > { %v1398_v38 = vsub.f32 %v1390_v32, %v1397_v37 }
 0x46e   : > { %v1399_v39 = vmul.f32 1.442695, %v1398_v38 }
 0x46f   : > { %v1409_v40 = vpop.permute.xlu0 %1408 }
 0x470   : > { %3857 = vpow2.f32 %v1399_v39  ;;  %v1414_v41 = vsel %vm1298_vm3, %v1409_v40, 0 }
 0x471   : > { %3427 = vmatpush3.bf16.msra.mxu1 %v1414_v41 }
 0x472   : > { %3432 = vmatprep.subr.bf16.mxu1 %v3890_v3 }
 0x47d   : > { %v3858_v42 = vpop.eup %3857 }
 0x47e   : > { %v1401_v43 = vsel %vm1282_vm2, %v3858_v42, 0.0 }
 0x47f   : > { %1402 = vadd.xlane.f32.xlu1 %v1401_v43 }
 0x508   : > { %v1403_v44 = vpop.xlane.xlu1 %1402 }
 0x509   : > { %3859 = vrcp.f32 %v1403_v44 }
 0x516   : > { %v3860_v50 = vpop.eup %3859 }
 0x517   : > { %v1405_v53 = vmul.f32 %v3860_v50, %v3858_v42  ;;  %v3616_v50 = vld [vmem:[%s4949_s4 + $0x60] ss:$8 sps:$4 sm:$0xff]  }
 0x518   : > { %1896 = vmatpush1.bf16.msra.mxu0 %v3616_v50  ;;  %v3667_v50 = vld [vmem:[%s4953_s8 + $0xc0] ss:$16 sps:$4 sm:$0xff]  }
 0x519   : > { %v1406_v55 = vpack.c.bf16 %v1405_v53, %v1405_v53  ;;  %v3624_v53 = vld [vmem:[%s4949_s4 + $0x44] ss:$8 sps:$4 sm:$0xff]  }
 0x51b   : > { %3429 = vmatmul.mubr.msk.bf16.vlgmr.msra.gmra.mxu1 %vm1282_vm2, %v1406_v55  ;;  %v3627_v55 = vld [vmem:[%s4949_s4 + $0x34] ss:$8 sps:$4 sm:$0xff]  }
 0x51c   : > { %3433 = vmatpush3.bf16.xpose.msra.mxu1 %v1466_v57  ;;  %3434 = vmatprep.mubr.msk.bf16.mxu1 %vm3891_vm0, %v3890_v3  ;;  %v3625_v57 = vld [vmem:[%s4949_s4 + $0x30] ss:$8 sps:$4 sm:$0xff]  }
 0x51d   : > { %3438 = vmatprep.subr.bf16.mxu1 %v3890_v3 }
 0x523   : > { %3435 = vmatmul.mubr.msk.bf16.vlgmr.msra.gmra.mxu1 %vm1235_vm1, %v1224_v60 }
 0x524   : > { %3439 = vmatpush3.bf16.msra.mxu1 %v1524_v61  ;;  %3440 = vmatprep.mubr.msk.bf16.mxu1 %vm3891_vm0, %v3890_v3  ;;  %v3636_v61 = vld [vmem:[%s4949_s4 + $0x4] ss:$8 sps:$4 sm:$0xff]  }
 0x525   : > { %3444 = vmatprep.subr.bf16.mxu1 %v3890_v3 }
 0x5db   : > { %v1450_v7 = vpop.f32.mrf.mxu1 }
 0x5dd   : > { %v3430_v62 = vpop.f32.mrf.mxu1 }
 0x5de   : > { %v3639_v62 = vld [vmem:[%s4949_s4 + $0xf4] ss:$8 sps:$4 sm:$0xff]  }
 0x5df   : > { %v1453_v63 = vpop.f32.mrf.mxu1 }
 0x5e0   : > { %v3637_v63 = vld [vmem:[%s4949_s4 + $0xf0] ss:$8 sps:$4 sm:$0xff]  }
 0x5e1   : > { %v3431_v0 = vpop.f32.mrf.mxu1 }
 0x5e2   : > { %v3642_v0 = vld [vmem:[%s4949_s4 + $0xe4] ss:$8 sps:$4 sm:$0xff]  }
 0x5e3   : > { %v1502_v1 = vpop.f32.mrf.mxu1 }
 0x5e4   : > { %v1503_v18 = vadd.f32 %v4318_v56, %v1502_v1  ;;  %v3640_v1 = vld [vmem:[%s4949_s4 + $0xe0] ss:$8 sps:$4 sm:$0xff]  }
 0x5e5   : > { %v3436_v2 = vpop.f32.mrf.mxu1 }
 0x5e6   : > { %v1508_v4 = vsel %vm1282_vm2, %v1503_v18, -inf  ;;  %v3643_v2 = vld [vmem:[%s4949_s4 + $0xd0] ss:$8 sps:$4 sm:$0xff]  }
 0x5e7   : > { %1509 = vmax.xlane.f32.xlu0 %v1508_v4  ;;  %v1505_v9 = vpop.f32.mrf.mxu1  ;;  %v3648_v4 = vld [vmem:[%s4949_s4 + $0xc4] ss:$8 sps:$4 sm:$0xff]  }
 0x5e8   : > { %v3646_v9 = vld [vmem:[%s4949_s4 + $0xc0] ss:$8 sps:$4 sm:$0xff]  }
 0x5e9   : > { %v3437_v10 = vpop.f32.mrf.mxu1 }
 0x5ea   : > { %v3651_v10 = vld [vmem:[%s4949_s4 + $0xb4] ss:$8 sps:$4 sm:$0xff]  }
 0x5fd   : > { %1568 = vrot.lane.b32.xlu0 %v1224_v60, %s3892_s16  ;;  %v3631_v60 = vld [vmem:[%s4949_s4 + $0x10] ss:$8 sps:$4 sm:$0xff]  }
 0x670   : > { %v1510_v11 = vpop.xlane.xlu0 %1509 }
 0x671   : > { %v1511_v12 = vsub.f32 %v1503_v18, %v1510_v11  ;;  %v3645_v18 = vld [vmem:[%s4949_s4 + $0xd4] ss:$8 sps:$4 sm:$0xff]   ;;  %v3649_v11 = vld [vmem:[%s4949_s4 + $0xb0] ss:$8 sps:$4 sm:$0xff]  }
 0x673   : > { %v1512_v14 = vmul.f32 1.442695, %v1511_v12  ;;  %v3654_v12 = vld [vmem:[%s4949_s4 + $0xa4] ss:$8 sps:$4 sm:$0xff]  }
 0x674   : > { %v1569_v24 = vpop.permute.xlu0 %1568 }
 0x675   : > { %3861 = vpow2.f32 %v1512_v14  ;;  %v3652_v14 = vld [vmem:[%s4949_s4 + $0xa0] ss:$8 sps:$4 sm:$0xff]  }
 0x682   : > { %v3862_v15 = vpop.eup %3861 }
 0x683   : > { %v1514_v16 = vsel %vm1282_vm2, %v3862_v15, 0.0 }
 0x684   : > { %1515 = vadd.xlane.f32.xlu1 %v1514_v16  ;;  %v3657_v16 = vld [vmem:[%s4949_s4 + $0x94] ss:$8 sps:$4 sm:$0xff]  }
 0x695   : > { %1571 = vrot.lane.b32.xlu1 %v1226_v51, %s3892_s16  ;;  %v3621_v51 = vld [vmem:[%s4949_s4 + $0x54] ss:$8 sps:$4 sm:$0xff]  }
 0x696   : > { %1897 = vmatprep.subr.bf16.mxu0 %v3621_v51  ;;  %v3670_v51 = vld [vmem:[%s4953_s8 + $0xc8] ss:$16 sps:$4 sm:$0xff]  }
 0x697   : > { %1898 = vmatpush1.bf16.msra.mxu0 %v3619_v52  ;;  %v3675_v52 = vld [vmem:[%s4953_s8 + $0xa4] ss:$16 sps:$4 sm:$0xff]  }
 0x698   : > { %1899 = vmatprep.subr.bf16.mxu0 %v3624_v53  ;;  %v3678_v53 = vld [vmem:[%s4953_s8 + $0xac] ss:$16 sps:$4 sm:$0xff]  }
 0x69b   : > { %1900 = vmatpush1.bf16.msra.mxu0 %v3622_v54  ;;  %v3673_v54 = vld [vmem:[%s4953_s8 + $0xa0] ss:$16 sps:$4 sm:$0xff]  }
 0x69c   : > { %1901 = vmatprep.subr.bf16.mxu0 %v3627_v55  ;;  %v3676_v55 = vld [vmem:[%s4953_s8 + $0xa8] ss:$16 sps:$4 sm:$0xff]  }
 0x69f   : > { %1902 = vmatpush1.bf16.msra.mxu0 %v3625_v57  ;;  %v3681_v57 = vld [vmem:[%s4953_s8 + $0x84] ss:$16 sps:$4 sm:$0xff]  }
 0x6a0   : > { %1903 = vmatprep.subr.bf16.mxu0 %v3630_v58  ;;  %v3684_v58 = vld [vmem:[%s4953_s8 + $0x8c] ss:$16 sps:$4 sm:$0xff]  }
 0x6a3   : > { %1904 = vmatpush1.bf16.msra.mxu0 %v3628_v13  ;;  %v3679_v13 = vld [vmem:[%s4953_s8 + $0x80] ss:$16 sps:$4 sm:$0xff]  }
 0x70d   : > { %v1516_v17 = vpop.xlane.xlu1 %1515 }
 0x70e   : > { %3863 = vrcp.f32 %v1516_v17  ;;  %v3660_v17 = vld [vmem:[%s4949_s4 + $0x84] ss:$8 sps:$4 sm:$0xff]  }
 0x711   : > { %v1572_v21 = vpop.permute.xlu1 %1571 }
 0x712   : > { %v1577_v23 = vsel %vm1235_vm1, %v1572_v21, 0 }
 0x71b   : > { %v3864_v19 = vpop.eup %3863 }
 0x71c   : > { %v1518_v20 = vmul.f32 %v3864_v19, %v3862_v15  ;;  %v3655_v15 = vld [vmem:[%s4949_s4 + $0x90] ss:$8 sps:$4 sm:$0xff]   ;;  %v3658_v19 = vld [vmem:[%s4949_s4 + $0x80] ss:$8 sps:$4 sm:$0xff]  }
 0x71e   : > { %v1519_v22 = vpack.c.bf16 %v1518_v20, %v1518_v20 }
 0x720   : > { %3441 = vmatmul.mubr.msk.bf16.vlgmr.msra.gmra.mxu1 %vm1282_vm2, %v1519_v22 }
 0x721   : > { %3445 = vmatpush3.bf16.xpose.msra.mxu1 %v1577_v23  ;;  %3446 = vmatprep.mubr.msk.bf16.mxu1 %vm3891_vm0, %v3890_v3 }
 0x722   : > { %3450 = vmatprep.subr.bf16.mxu1 %v3890_v3 }
 0x728   : > { %3447 = vmatmul.mubr.msk.bf16.vlgmr.msra.gmra.mxu1 %vm1235_vm1, %v1569_v24 }
 0x729   : > { %3452 = vmatprep.mubr.msk.bf16.mxu1 %vm3891_vm0, %v3890_v3 }
 0x7e0   : > { %v1560_v25 = vpop.f32.mrf.mxu1 }
 0x7e1   : > { %1566 = vst.msk [vmem:[#allocation2 + $0x8] sm:$0xff] %vm1235_vm1, %v1560_v25 }
 0x7e2   : > { %v3442_v26 = vpop.f32.mrf.mxu1 }
 0x7e4   : > { %v1563_v27 = vpop.f32.mrf.mxu1 }
 0x7e6   : > { %v3443_v28 = vpop.f32.mrf.mxu1 }
 0x7e8   : > { %v1613_v29 = vpop.f32.mrf.mxu1 }
 0x7e9   : > { %v1614_v30 = vadd.f32 %v4318_v56, %v1613_v29  ;;  %v1721_v29 = vld [vmem:[%s4950_s5] sm:$0x3] }
 0x7ea   : > { %v3448_v31 = vpop.f32.mrf.mxu1 }
 0x7eb   : > { %v1619_v32 = vsel %vm1282_vm2, %v1614_v30, -inf  ;;  %v1730_v31 = vrot.slane %v1721_v29, %v4349_v49 }
 0x7ec   : > { %1620 = vmax.xlane.f32.xlu1 %v1619_v32  ;;  %v1616_v33 = vpop.f32.mrf.mxu1 }
 0x7ee   : > { %v3449_v34 = vpop.f32.mrf.mxu1 }
 0x7ef   : > { %v3881_v34 = vld [vmem:[%s4117_s20] sm:$0xff] }
 0x7fd   : > { %1632 = vrot.lane.b32.xlu1 %v1228_v59, %s3892_s16  ;;  %v3633_v59 = vld [vmem:[%s4949_s4 + $0x14] ss:$8 sps:$4 sm:$0xff]  }
 0x7fe   : > { %1905 = vmatprep.subr.bf16.mxu0 %v3633_v59  ;;  %v3682_v59 = vld [vmem:[%s4953_s8 + $0x88] ss:$16 sps:$4 sm:$0xff]  }
 0x7ff   : > { %1906 = vmatpush1.bf16.msra.mxu0 %v3631_v60  ;;  %v3687_v60 = vld [vmem:[%s4953_s8 + $0x64] ss:$16 sps:$4 sm:$0xff]  }
 0x800   : > { %1907 = vmatprep.subr.bf16.mxu0 %v3636_v61  ;;  %v3690_v61 = vld [vmem:[%s4953_s8 + $0x6c] ss:$16 sps:$4 sm:$0xff]  }
 0x801   : > { %1457 = vrot.lane.b32.xlu1 %v1450_v7, %s3892_s16  ;;  %v3634_v7 = vld [vmem:[%s4949_s4] ss:$8 sps:$4 sm:$0xff]  }
 0x803   : > { %1908 = vmatpush1.bf16.msra.mxu0 %v3634_v7  ;;  %v3685_v7 = vld [vmem:[%s4953_s8 + $0x60] ss:$16 sps:$4 sm:$0xff]  }
 0x804   : > { %1909 = vmatprep.subr.bf16.mxu0 %v3639_v62  ;;  %v3688_v62 = vld [vmem:[%s4953_s8 + $0x68] ss:$16 sps:$4 sm:$0xff]  }
 0x807   : > { %1910 = vmatpush2.bf16.msra.mxu0 %v3637_v63  ;;  %v3693_v63 = vld [vmem:[%s4953_s8 + $0x44] ss:$16 sps:$4 sm:$0xff]  }
 0x808   : > { %1911 = vmatprep.subr.bf16.mxu0 %v3642_v0  ;;  %v3696_v0 = vld [vmem:[%s4953_s8 + $0x4c] ss:$16 sps:$4 sm:$0xff]  }
 0x80b   : > { %1912 = vmatpush2.bf16.msra.mxu0 %v3640_v1  ;;  %v3691_v1 = vld [vmem:[%s4953_s8 + $0x40] ss:$16 sps:$4 sm:$0xff]  }
 0x80c   : > { %1913 = vmatprep.subr.bf16.mxu0 %v3645_v18  ;;  %v3694_v18 = vld [vmem:[%s4953_s8 + $0x48] ss:$16 sps:$4 sm:$0xff]  }
 0x80f   : > { %1914 = vmatpush2.bf16.msra.mxu0 %v3643_v2  ;;  %v3699_v2 = vld [vmem:[%s4953_s8 + $0x24] ss:$16 sps:$4 sm:$0xff]  }
 0x810   : > { %1915 = vmatprep.subr.bf16.mxu0 %v3648_v4  ;;  %v3702_v4 = vld [vmem:[%s4953_s8 + $0x2c] ss:$16 sps:$4 sm:$0xff]  }
 0x813   : > { %1916 = vmatpush2.bf16.msra.mxu0 %v3646_v9  ;;  %v3697_v9 = vld [vmem:[%s4953_s8 + $0x20] ss:$16 sps:$4 sm:$0xff]  }
 0x814   : > { %1917 = vmatprep.subr.bf16.mxu0 %v3651_v10  ;;  %v3700_v10 = vld [vmem:[%s4953_s8 + $0x28] ss:$16 sps:$4 sm:$0xff]  }
 0x817   : > { %1918 = vmatpush2.bf16.msra.mxu0 %v3649_v11  ;;  %v3705_v11 = vld [vmem:[%s4953_s8 + $0x4] ss:$16 sps:$4 sm:$0xff]  }
 0x818   : > { %1919 = vmatprep.subr.bf16.mxu0 %v3654_v12  ;;  %v3708_v12 = vld [vmem:[%s4953_s8 + $0xc] ss:$16 sps:$4 sm:$0xff]  }
 0x81b   : > { %1920 = vmatpush2.bf16.msra.mxu0 %v3652_v14  ;;  %v3703_v14 = vld [vmem:[%s4953_s8] ss:$16 sps:$4 sm:$0xff]  }
 0x81c   : > { %1921 = vmatprep.subr.bf16.mxu0 %v3657_v16  ;;  %v3711_v16 = vld [vmem:[%s4953_s8 + $0x1e4] ss:$16 sps:$4 sm:$0xff]  }
 0x81f   : > { %1922 = vmatpush2.bf16.msra.mxu0 %v3655_v15  ;;  %v3706_v15 = vld [vmem:[%s4953_s8 + $0x8] ss:$16 sps:$4 sm:$0xff]  }
 0x820   : > { %1923 = vmatprep.subr.bf16.mxu0 %v3660_v17  ;;  %v3714_v17 = vld [vmem:[%s4953_s8 + $0x1ec] ss:$16 sps:$4 sm:$0xff]  }
 0x823   : > { %1924 = vmatpush2.bf16.msra.mxu0 %v3658_v19  ;;  %v3709_v19 = vld [vmem:[%s4953_s8 + $0x1e0] ss:$16 sps:$4 sm:$0xff]  }
 0x824   : > { %2432 = vmatprep.subr.bf16.mxu0 %v3666_v46  ;;  %v3742_v46 = vld [vmem:[%s4953_s8 + $0x148] ss:$16 sps:$4 sm:$0xff]  }
 0x875   : > { %v1621_v3 = vpop.xlane.xlu1 %1620 }
 0x876   : > { %v1622_v35 = vsub.f32 %v1614_v30, %v1621_v3  ;;  %v1726_v30 = vrot.slane %v1721_v29, %v4199_v8  ;;  %v1934_v3 = vunpack.c.l.bf16 %v3881_v34 }
 0x878   : > { %v1623_v36 = vmul.f32 1.442695, %v1622_v35  ;;  %v1935_v35 = vunpack.c.h.bf16 %v3881_v34  ;;  %v3721_v34 = vld [vmem:[%s4953_s8 + $0x1a0] ss:$16 sps:$4 sm:$0xff]  }
 0x879   : > { %v1633_v37 = vpop.permute.xlu1 %1632 }
 0x87a   : > { %3865 = vpow2.f32 %v1623_v36  ;;  %v1638_v38 = vsel %vm1298_vm3, %v1633_v37, 0 }
 0x87b   : > { %3451 = vmatpush3.bf16.msra.mxu1 %v1638_v38 }
 0x87d   : > { %v1458_v56 = vpop.permute.xlu1 %1457 }
 0x87e   : > { %1461 = vst.msk [vmem:[#allocation2] sm:$0xff] %vm1460_vm4, %v1458_v56 }
 0x885   : > { %v1685_v25 = vld [vmem:[#allocation2] sm:$0xff] }
 0x886   : > { %v1687_v28 = vpack.c.bf16 %v1685_v25, %v1685_v25 }
 0x887   : > { %v3866_v39 = vpop.eup %3865 }
 0x888   : > { %v1625_v40 = vsel %vm1282_vm2, %v3866_v39, 0.0 }
 0x889   : > { %1626 = vadd.xlane.f32.xlu0 %v1625_v40 }
 0x912   : > { %v1627_v41 = vpop.xlane.xlu0 %1626 }
 0x913   : > { %3867 = vrcp.f32 %v1627_v41 }
 0x920   : > { %v3868_v42 = vpop.eup %3867 }
 0x921   : > { %v1629_v43 = vmul.f32 %v3868_v42, %v3866_v39  ;;  %v3661_v42 = vld [vmem:[%s4953_s8 + $0xe0] ss:$16 sps:$4 sm:$0xff]  }
 0x923   : > { %v1630_v44 = vpack.c.bf16 %v1629_v43, %v1629_v43  ;;  %v3663_v43 = vld [vmem:[%s4953_s8 + $0xe4] ss:$16 sps:$4 sm:$0xff]  }
 0x924   : > { %2391 = vmatprep.subr.bf16.mxu1 %v3663_v43  ;;  %v3744_v43 = vld [vmem:[%s4953_s8 + $0x14c] ss:$16 sps:$4 sm:$0xff]  }
 0x925   : > { %3453 = vmatmul.mubr.msk.bf16.vlgmr.msra.gmra.mxu1 %vm1282_vm2, %v1630_v44  ;;  %v3664_v44 = vld [vmem:[%s4953_s8 + $0xe8] ss:$16 sps:$4 sm:$0xff]  }
 0x926   : > { %2392 = vmatpush1.bf16.msra.mxu1 %v3661_v42  ;;  %v3741_v42 = vld [vmem:[%s4953_s8 + $0x144] ss:$16 sps:$4 sm:$0xff]  }
 0x927   : > { %2393 = vmatprep.subr.bf16.mxu1 %v3669_v47  ;;  %v3747_v47 = vld [vmem:[%s4953_s8 + $0x124] ss:$16 sps:$4 sm:$0xff]  }
 0x92a   : > { %2394 = vmatpush1.bf16.msra.mxu1 %v3667_v50  ;;  %v3745_v50 = vld [vmem:[%s4953_s8 + $0x120] ss:$16 sps:$4 sm:$0xff]  }
 0x92b   : > { %2395 = vmatprep.subr.bf16.mxu1 %v3675_v52  ;;  %v3753_v52 = vld [vmem:[%s4953_s8 + $0x104] ss:$16 sps:$4 sm:$0xff]  }
 0x92e   : > { %2396 = vmatpush1.bf16.msra.mxu1 %v3673_v54  ;;  %v3751_v54 = vld [vmem:[%s4953_s8 + $0x100] ss:$16 sps:$4 sm:$0xff]  }
 0x92f   : > { %2397 = vmatprep.subr.bf16.mxu1 %v3681_v57  ;;  %v3759_v57 = vld [vmem:[%s4955_s10 + $0x74] ss:$8 sps:$4 sm:$0xff]  }
 0x932   : > { %2398 = vmatpush1.bf16.msra.mxu1 %v3679_v13 }
 0x933   : > { %2399 = vmatprep.subr.bf16.mxu1 %v3687_v60 }
 0x936   : > { %2400 = vmatpush1.bf16.msra.mxu1 %v3685_v7  ;;  %v1939_v7 = vld [vmem:[%s4952_s7] sm:$0x3] }
 0x937   : > { %2401 = vmatprep.subr.bf16.mxu1 %v3693_v63 }
 0x93a   : > { %2402 = vmatpush1.bf16.msra.mxu1 %v3691_v1 }
 0x93b   : > { %2403 = vmatprep.subr.bf16.mxu1 %v3699_v2  ;;  %v1978_v2 = vrot.slane %v1939_v7, %v4349_v49 }
 0x93e   : > { %2404 = vmatpush1.bf16.msra.mxu1 %v3697_v9 }
 0x93f   : > { %2405 = vmatprep.subr.bf16.mxu1 %v3705_v11 }
 0x942   : > { %2406 = vmatpush1.bf16.msra.mxu1 %v3703_v14 }
 0x943   : > { %2407 = vmatprep.subr.bf16.mxu1 %v3711_v16  ;;  %v3757_v16 = vld [vmem:[%s4955_s10 + $0x70] ss:$8 sps:$4 sm:$0xff]  }
 0x946   : > { %2408 = vmatpush2.bf16.msra.mxu1 %v3709_v19  ;;  %v3765_v19 = vld [vmem:[%s4955_s10 + $0x64] ss:$8 sps:$4 sm:$0xff]  }
 0x9e5   : > { %v1674_v20 = vpop.f32.mrf.mxu1 }
 0x9e6   : > { %1681 = vrot.lane.b32.xlu0 %v1674_v20, %s3892_s16  ;;  %v3712_v20 = vld [vmem:[%s4953_s8 + $0x1e8] ss:$16 sps:$4 sm:$0xff]  }
 0x9e7   : > { %v3454_v21 = vpop.f32.mrf.mxu1 }
 0x9e8   : > { %v3717_v21 = vld [vmem:[%s4953_s8 + $0x1c4] ss:$16 sps:$4 sm:$0xff]  }
 0x9e9   : > { %v1677_v22 = vpop.f32.mrf.mxu1  ;;  %2409 = vmatprep.subr.bf16.mxu1 %v3717_v21  ;;  %v3763_v21 = vld [vmem:[%s4955_s10 + $0x60] ss:$8 sps:$4 sm:$0xff]  }
 0x9ea   : > { %v3720_v22 = vld [vmem:[%s4953_s8 + $0x1cc] ss:$16 sps:$4 sm:$0xff]  }
 0x9eb   : > { %v3455_v23 = vpop.f32.mrf.mxu1 }
 0x9ec   : > { %v3715_v23 = vld [vmem:[%s4953_s8 + $0x1c0] ss:$16 sps:$4 sm:$0xff]  }
 0x9ed   : > { %2410 = vmatpush2.bf16.msra.mxu1 %v3715_v23  ;;  %v3771_v23 = vld [vmem:[%s4955_s10 + $0x54] ss:$8 sps:$4 sm:$0xff]  }
 0xa58   : > { %v1682_v24 = vpop.permute.xlu0 %1681 }
 0xa59   : > { %1684 = vst.msk [vmem:[#allocation2 + $0x8] sm:$0xff] %vm1460_vm4, %v1682_v24  ;;  %v3718_v24 = vld [vmem:[%s4953_s8 + $0x1c8] ss:$16 sps:$4 sm:$0xff]  }
 0xa60   : > { %v1686_v26 = vld [vmem:[#allocation2 + $0x8] sm:$0xff] }
 0xa61   : > { %v1688_v27 = vpack.c.bf16 %v1686_v26, %v1686_v26 }
 0xa63   : > { %1925 = vmatprep.mubr.bf16.mxu0 %v1688_v27 }
 0xa64   : > { %1926 = vmatmul.mubr.bf16.vlgmr.msra.gmra.mxu0 %v1687_v28 }
 0xa65   : > { %2433 = vmatpush1.bf16.msra.mxu0 %v3664_v44  ;;  %v3739_v44 = vld [vmem:[%s4953_s8 + $0x140] ss:$16 sps:$4 sm:$0xff]  }
 0xa66   : > { %2434 = vmatprep.subr.bf16.mxu0 %v3672_v48  ;;  %v3750_v48 = vld [vmem:[%s4953_s8 + $0x12c] ss:$16 sps:$4 sm:$0xff]  }
 0xa69   : > { %2435 = vmatpush1.bf16.msra.mxu0 %v3670_v51  ;;  %v3748_v51 = vld [vmem:[%s4953_s8 + $0x128] ss:$16 sps:$4 sm:$0xff]  }
 0xa6a   : > { %2436 = vmatprep.subr.bf16.mxu0 %v3678_v53  ;;  %v3756_v53 = vld [vmem:[%s4953_s8 + $0x10c] ss:$16 sps:$4 sm:$0xff]  }
 0xa6d   : > { %2437 = vmatpush1.bf16.msra.mxu0 %v3676_v55  ;;  %v3754_v55 = vld [vmem:[%s4953_s8 + $0x108] ss:$16 sps:$4 sm:$0xff]  }
 0xa6e   : > { %2438 = vmatprep.subr.bf16.mxu0 %v3684_v58  ;;  %v3762_v58 = vld [vmem:[%s4955_s10 + $0x174] ss:$8 sps:$4 sm:$0xff]  }
 0xa71   : > { %2439 = vmatpush1.bf16.msra.mxu0 %v3682_v59 }
 0xa72   : > { %2440 = vmatprep.subr.bf16.mxu0 %v3690_v61  ;;  %v1938_v61 = vld [vmem:[%s4951_s6] sm:$0x3] }
 0xa73   : > { %v1965_v63 = vrot.slane %v1938_v61, %v4349_v49 }
 0xa75   : > { %2441 = vmatpush1.bf16.msra.mxu0 %v3688_v62  ;;  %v1961_v62 = vrot.slane %v1938_v61, %v4199_v8  ;;  %v3826_v61 = vld [vmem:[%s4955_s10 + $0x1c0] ss:$8 sps:$4 sm:$0xff]  }
 0xa76   : > { %2442 = vmatprep.subr.bf16.mxu0 %v3696_v0 }
 0xa79   : > { %2443 = vmatpush1.bf16.msra.mxu0 %v3694_v18  ;;  %v1974_v18 = vrot.slane %v1939_v7, %v4199_v8  ;;  %v3828_v7 = vld [vmem:[%s4955_s10 + $0x1c4] ss:$8 sps:$4 sm:$0xff]  }
 0xa7a   : > { %2444 = vmatprep.subr.bf16.mxu0 %v3702_v4 }
 0xa7d   : > { %2445 = vmatpush1.bf16.msra.mxu0 %v3700_v10 }
 0xa7e   : > { %2446 = vmatprep.subr.bf16.mxu0 %v3708_v12 }
 0xa81   : > { %2447 = vmatpush1.bf16.msra.mxu0 %v3706_v15 }
 0xa82   : > { %2448 = vmatprep.subr.bf16.mxu0 %v3714_v17  ;;  %v3760_v17 = vld [vmem:[%s4955_s10 + $0x170] ss:$8 sps:$4 sm:$0xff]  }
 0xa85   : > { %2449 = vmatpush2.bf16.msra.mxu0 %v3712_v20  ;;  %v3768_v20 = vld [vmem:[%s4955_s10 + $0x164] ss:$8 sps:$4 sm:$0xff]  }
 0xa86   : > { %2450 = vmatprep.subr.bf16.mxu0 %v3720_v22  ;;  %v3766_v22 = vld [vmem:[%s4955_s10 + $0x160] ss:$8 sps:$4 sm:$0xff]  }
 0xa89   : > { %2451 = vmatpush2.bf16.msra.mxu0 %v3718_v24  ;;  %v3774_v24 = vld [vmem:[%s4955_s10 + $0x154] ss:$8 sps:$4 sm:$0xff]  }
 0xb24   : > { %v1927_v32 = vpop.f32.mrf.mxu0 }
 0xb25   : > { %v1928_v33 = vadd.f32 %v1927_v32, %v1726_v30  ;;  %v3723_v32 = vld [vmem:[%s4953_s8 + $0x1a4] ss:$16 sps:$4 sm:$0xff]  }
 0xb26   : > { %v1929_v36 = vpop.f32.mrf.mxu0  ;;  %2411 = vmatprep.subr.bf16.mxu1 %v3723_v32  ;;  %v3786_v32 = vld [vmem:[%s4955_s10 + $0x134] ss:$8 sps:$4 sm:$0xff]  }
 0xb27   : > { %v1930_v37 = vadd.f32 %v1929_v36, %v1730_v31  ;;  %v4491_v56 = vadd.f32 %v1934_v3, %v1928_v33  ;;  %v3726_v33 = vld [vmem:[%s4953_s8 + $0x1ac] ss:$16 sps:$4 sm:$0xff]   ;;  %v3724_v3 = vld [vmem:[%s4953_s8 + $0x1a8] ss:$16 sps:$4 sm:$0xff]   ;;  %2412 = vmatpush2.bf16.msra.mxu1 %v3721_v34  ;;  %v3727_v36 = vld [vmem:[%s4953_s8 + $0x180] ss:$16 sps:$4 sm:$0xff]  }
 0xb28   : > { %v1931_v38 = vpop.f32.mrf.mxu0  ;;  %2452 = vmatprep.subr.bf16.mxu0 %v3726_v33  ;;  %v3781_v33 = vld [vmem:[%s4955_s10 + $0x30] ss:$8 sps:$4 sm:$0xff]  }
 0xb29   : > { %v4493_v39 = vadd.f32 %v1935_v35, %v1930_v37  ;;  %v3729_v35 = vld [vmem:[%s4953_s8 + $0x184] ss:$16 sps:$4 sm:$0xff]   ;;  %2453 = vmatpush2.bf16.msra.mxu0 %v3724_v3  ;;  %v3730_v37 = vld [vmem:[%s4953_s8 + $0x188] ss:$16 sps:$4 sm:$0xff]   ;;  %v3732_v38 = vld [vmem:[%s4953_s8 + $0x18c] ss:$16 sps:$4 sm:$0xff]  }
 0xb2a   : > { %v1932_v40 = vpop.f32.mrf.mxu0  ;;  %2413 = vmatprep.subr.bf16.mxu1 %v3729_v35  ;;  %2454 = vmatprep.subr.bf16.mxu0 %v3732_v38  ;;  %v3784_v34 = vld [vmem:[%s4955_s10 + $0x130] ss:$8 sps:$4 sm:$0xff]   ;;  %v3789_v3 = vld [vmem:[%s4955_s10 + $0x24] ss:$8 sps:$4 sm:$0xff]   ;;  %v3795_v38 = vld [vmem:[%s4955_s10 + $0x14] ss:$8 sps:$4 sm:$0xff]  }
 0xb2b   : > { %v1940_v41 = vadd.f32 %v4493_v39, %v4491_v56  ;;  %2414 = vmatpush2.bf16.msra.mxu1 %v3727_v36  ;;  %v3733_v40 = vld [vmem:[%s4953_s8 + $0x160] ss:$16 sps:$4 sm:$0xff]   ;;  %v3792_v35 = vld [vmem:[%s4955_s10 + $0x124] ss:$8 sps:$4 sm:$0xff]  }
 0xb2c   : > { %v3787_v36 = vld [vmem:[%s4955_s10 + $0x20] ss:$8 sps:$4 sm:$0xff]  }
 0xb2d   : > { %1941 = vadd.xlane.f32.xlu1 %v1940_v41  ;;  %2455 = vmatpush2.bf16.msra.mxu0 %v3730_v37  ;;  %v3736_v41 = vld [vmem:[%s4953_s8 + $0x168] ss:$16 sps:$4 sm:$0xff]  }
 0xb2e   : > { %v3790_v37 = vld [vmem:[%s4955_s10 + $0x120] ss:$8 sps:$4 sm:$0xff]  }
 0xbb6   : > { %v1942_v25 = vpop.xlane.xlu1 %1941 }
 0xbb7   : > { %v1944_v26 = vmul.f32 0.00390625, %v1942_v25  ;;  %v3769_v25 = vld [vmem:[%s4955_s10 + $0x50] ss:$8 sps:$4 sm:$0xff]  }
 0xbb9   : > { %v4618_v27 = vsub.f32 %v4491_v56, %v1944_v26  ;;  %v4621_v28 = vsub.f32 %v4493_v39, %v1944_v26  ;;  %v3735_v56 = vld [vmem:[%s4953_s8 + $0x164] ss:$16 sps:$4 sm:$0xff]   ;;  %v3738_v39 = vld [vmem:[%s4953_s8 + $0x16c] ss:$16 sps:$4 sm:$0xff]   ;;  %v3772_v26 = vld [vmem:[%s4955_s10 + $0x150] ss:$8 sps:$4 sm:$0xff]  }
 0xbba   : > { %2415 = vmatprep.subr.bf16.mxu1 %v3735_v56  ;;  %2456 = vmatprep.subr.bf16.mxu0 %v3738_v39  ;;  %v3798_v56 = vld [vmem:[%s4955_s10 + $0x114] ss:$8 sps:$4 sm:$0xff]   ;;  %v3793_v39 = vld [vmem:[%s4955_s10 + $0x10] ss:$8 sps:$4 sm:$0xff]  }
 0xbbb   : > { %v1947_v29 = vmul.f32 %v4618_v27, %v4618_v27  ;;  %v1948_v30 = vmul.f32 %v4621_v28, %v4621_v28  ;;  %2416 = vmatpush2.bf16.msra.mxu1 %v3733_v40  ;;  %2457 = vmatpush2.bf16.msra.mxu0 %v3736_v41  ;;  %v3796_v40 = vld [vmem:[%s4955_s10 + $0x110] ss:$8 sps:$4 sm:$0xff]   ;;  %v3801_v41 = vld [vmem:[%s4955_s10 + $0x4] ss:$8 sps:$4 sm:$0xff]  }
 0xbbc   : > { %2417 = vmatprep.subr.bf16.mxu1 %v3741_v42  ;;  %2458 = vmatprep.subr.bf16.mxu0 %v3744_v43  ;;  %v3804_v42 = vld [vmem:[%s4955_s10 + $0x104] ss:$8 sps:$4 sm:$0xff]   ;;  %v3799_v43 = vld [vmem:[%s4955_s10] ss:$8 sps:$4 sm:$0xff]  }
 0xbbd   : > { %v1949_v31 = vadd.f32 %v1948_v30, %v1947_v29  ;;  %v3775_v29 = vld [vmem:[%s4955_s10 + $0x40] ss:$8 sps:$4 sm:$0xff]  }
 0xbbe   : > { %v3778_v30 = vld [vmem:[%s4955_s10 + $0x140] ss:$8 sps:$4 sm:$0xff]  }
 0xbbf   : > { %1950 = vadd.xlane.f32.xlu0 %v1949_v31  ;;  %2418 = vmatpush2.bf16.msra.mxu1 %v3739_v44  ;;  %v3783_v31 = vld [vmem:[%s4955_s10 + $0x34] ss:$8 sps:$4 sm:$0xff]   ;;  %v3802_v44 = vld [vmem:[%s4955_s10 + $0x100] ss:$8 sps:$4 sm:$0xff]  }
 0xbc0   : > { %2459 = vmatpush2.bf16.msra.mxu0 %v3742_v46  ;;  %2419 = vmatprep.subr.bf16.mxu1 %v3747_v47  ;;  %v3807_v46 = vld [vmem:[%s4955_s10 + $0xf4] ss:$8 sps:$4 sm:$0xff]  }
 0xbc1   : > { %2460 = vmatprep.subr.bf16.mxu0 %v3750_v48  ;;  %v3810_v47 = vld [vmem:[%s4955_s10 + $0x1f4] ss:$8 sps:$4 sm:$0xff]   ;;  %v3805_v48 = vld [vmem:[%s4955_s10 + $0xf0] ss:$8 sps:$4 sm:$0xff]  }
 0xbc3   : > { %2420 = vmatpush2.bf16.msra.mxu1 %v3745_v50  ;;  %v3808_v50 = vld [vmem:[%s4955_s10 + $0x1f0] ss:$8 sps:$4 sm:$0xff]  }
 0xbc4   : > { %2461 = vmatpush2.bf16.msra.mxu0 %v3748_v51  ;;  %2421 = vmatprep.subr.bf16.mxu1 %v3753_v52  ;;  %v3813_v51 = vld [vmem:[%s4955_s10 + $0xe4] ss:$8 sps:$4 sm:$0xff]  }
 0xbc5   : > { %2462 = vmatprep.subr.bf16.mxu0 %v3756_v53  ;;  %v3816_v52 = vld [vmem:[%s4955_s10 + $0x1e4] ss:$8 sps:$4 sm:$0xff]   ;;  %v3811_v53 = vld [vmem:[%s4955_s10 + $0xe0] ss:$8 sps:$4 sm:$0xff]  }
 0xbc7   : > { %2422 = vmatpush2.bf16.msra.mxu1 %v3751_v54  ;;  %v3814_v54 = vld [vmem:[%s4955_s10 + $0x1e0] ss:$8 sps:$4 sm:$0xff]  }
 0xbc8   : > { %2463 = vmatpush2.bf16.msra.mxu0 %v3754_v55  ;;  %2909 = vmatprep.subr.bf16.mxu1 %v3759_v57  ;;  %v3819_v55 = vld [vmem:[%s4955_s10 + $0xd4] ss:$8 sps:$4 sm:$0xff]  }
 0xbc9   : > { %2950 = vmatprep.subr.bf16.mxu0 %v3762_v58  ;;  %v3822_v57 = vld [vmem:[%s4955_s10 + $0x1d4] ss:$8 sps:$4 sm:$0xff]   ;;  %v3817_v58 = vld [vmem:[%s4955_s10 + $0xd0] ss:$8 sps:$4 sm:$0xff]  }
 0xc48   : > { %v1951_v13 = vpop.xlane.xlu0 %1950 }
 0xc49   : > { %v1952_v59 = vmul.f32 0.00390625, %v1951_v13  ;;  %v3820_v13 = vld [vmem:[%s4955_s10 + $0x1d0] ss:$8 sps:$4 sm:$0xff]  }
 0xc4b   : > { %v1953_v60 = vadd.f32 1e-12, %v1952_v59  ;;  %v3823_v59 = vld [vmem:[%s4955_s10 + $0xc0] ss:$8 sps:$4 sm:$0xff]  }
 0xc4d   : > { %3869 = vrsqrt.f32 %v1953_v60  ;;  %v3825_v60 = vld [vmem:[%s4955_s10 + $0xc4] ss:$8 sps:$4 sm:$0xff]  }
 0xc5a   : > { %v3870_v0 = vpop.eup %3869 }
 0xc5b   : > { %v1956_v1 = vmul.f32 %v3870_v0, %v4621_v28  ;;  %v1955_v4 = vmul.f32 %v3870_v0, %v4618_v27  ;;  %v3777_v27 = vld [vmem:[%s4955_s10 + $0x44] ss:$8 sps:$4 sm:$0xff]   ;;  %v3829_v0 = vld [vmem:[%s4955_s10 + $0xb0] ss:$8 sps:$4 sm:$0xff]  }
 0xc5c   : > { %v3780_v28 = vld [vmem:[%s4955_s10 + $0x144] ss:$8 sps:$4 sm:$0xff]  }
 0xc5d   : > { %v1969_v9 = vmul.f32 %v1965_v63, %v1956_v1  ;;  %v1968_v10 = vmul.f32 %v1961_v62, %v1955_v4  ;;  %v3831_v62 = vld [vmem:[%s4955_s10 + $0xb4] ss:$8 sps:$4 sm:$0xff]   ;;  %v3832_v1 = vld [vmem:[%s4955_s10 + $0x1b0] ss:$8 sps:$4 sm:$0xff]   ;;  %v3835_v4 = vld [vmem:[%s4955_s10 + $0xa0] ss:$8 sps:$4 sm:$0xff]  }
 0xc5e   : > { %v3834_v63 = vld [vmem:[%s4955_s10 + $0x1b4] ss:$8 sps:$4 sm:$0xff]  }
 0xc5f   : > { %v4717_v11 = vadd.f32 %v1978_v2, %v1969_v9  ;;  %v4719_v12 = vadd.f32 %v1974_v18, %v1968_v10  ;;  %v3837_v18 = vld [vmem:[%s4955_s10 + $0xa4] ss:$8 sps:$4 sm:$0xff]   ;;  %v3838_v9 = vld [vmem:[%s4955_s10 + $0x1a0] ss:$8 sps:$4 sm:$0xff]   ;;  %v3843_v10 = vld [vmem:[%s4955_s10 + $0x94] ss:$8 sps:$4 sm:$0xff]  }
 0xc60   : > { %v3840_v2 = vld [vmem:[%s4955_s10 + $0x1a4] ss:$8 sps:$4 sm:$0xff]  }
 0xc61   : > { %v1984_v14 = vpack.c.bf16 %v4717_v11, %v4717_v11  ;;  %v1983_v15 = vpack.c.bf16 %v4719_v12, %v4719_v12 }
 0xc63   : > { %2423 = vmatprep.mubr.bf16.mxu1 %v1984_v14  ;;  %2464 = vmatprep.mubr.bf16.mxu0 %v1984_v14  ;;  %v3846_v14 = vld [vmem:[%s4955_s10 + $0x194] ss:$8 sps:$4 sm:$0xff]  }
 0xc64   : > { %2424 = vmatmul.mubr.bf16.vlgmr.msra.gmra.mxu1 %v1983_v15  ;;  %2465 = vmatmul.mubr.bf16.vlgmr.msra.gmra.mxu0 %v1983_v15  ;;  %v3841_v15 = vld [vmem:[%s4955_s10 + $0x90] ss:$8 sps:$4 sm:$0xff]  }
 0xc65   : > { %2910 = vmatpush1.bf16.msra.mxu1 %v3757_v16  ;;  %2951 = vmatpush1.bf16.msra.mxu0 %v3760_v17  ;;  %v3844_v16 = vld [vmem:[%s4955_s10 + $0x190] ss:$8 sps:$4 sm:$0xff]   ;;  %v3849_v17 = vld [vmem:[%s4955_s10 + $0x84] ss:$8 sps:$4 sm:$0xff]  }
 0xc66   : > { %2911 = vmatprep.subr.bf16.mxu1 %v3765_v19  ;;  %2952 = vmatprep.subr.bf16.mxu0 %v3768_v20  ;;  %v3852_v19 = vld [vmem:[%s4955_s10 + $0x184] ss:$8 sps:$4 sm:$0xff]   ;;  %v3847_v20 = vld [vmem:[%s4955_s10 + $0x80] ss:$8 sps:$4 sm:$0xff]  }
 0xc69   : > { %2912 = vmatpush1.bf16.msra.mxu1 %v3763_v21  ;;  %2953 = vmatpush1.bf16.msra.mxu0 %v3766_v22  ;;  %v3850_v21 = vld [vmem:[%s4955_s10 + $0x180] ss:$8 sps:$4 sm:$0xff]  }
 0xc6a   : > { %2913 = vmatprep.subr.bf16.mxu1 %v3771_v23  ;;  %2954 = vmatprep.subr.bf16.mxu0 %v3774_v24  ;;  %v2049_v22 = vld [vmem:[%s4954_s9] sm:$0xf] }
 0xc6b   : > { %v2054_v23 = vrot.slane %v2049_v22, %v4199_v8  ;;  %v2062_v24 = vrot.slane %v2049_v22, %v593_v6 }
 0xc6d   : > { %2914 = vmatpush1.bf16.msra.mxu1 %v3769_v25  ;;  %2955 = vmatpush1.bf16.msra.mxu0 %v3772_v26  ;;  %v2058_v25 = vrot.slane %v2049_v22, %v4349_v49  ;;  %v2066_v26 = vrot.slane %v2049_v22, %v597_v45 }
 0xc6e   : > { %2915 = vmatprep.subr.bf16.mxu1 %v3777_v27  ;;  %2956 = vmatprep.subr.bf16.mxu0 %v3780_v28 }
 0xc71   : > { %2916 = vmatpush1.bf16.msra.mxu1 %v3775_v29  ;;  %2957 = vmatpush1.bf16.msra.mxu0 %v3778_v30 }
 0xc72   : > { %2917 = vmatprep.subr.bf16.mxu1 %v3783_v31  ;;  %2958 = vmatprep.subr.bf16.mxu0 %v3786_v32 }
 0xc75   : > { %2918 = vmatpush1.bf16.msra.mxu1 %v3781_v33  ;;  %2959 = vmatpush1.bf16.msra.mxu0 %v3784_v34 }
 0xc76   : > { %2919 = vmatprep.subr.bf16.mxu1 %v3789_v3  ;;  %2960 = vmatprep.subr.bf16.mxu0 %v3792_v35 }
 0xc79   : > { %2920 = vmatpush1.bf16.msra.mxu1 %v3787_v36  ;;  %2961 = vmatpush1.bf16.msra.mxu0 %v3790_v37 }
 0xc7a   : > { %2921 = vmatprep.subr.bf16.mxu1 %v3795_v38  ;;  %2962 = vmatprep.subr.bf16.mxu0 %v3798_v56 }
 0xc7d   : > { %2922 = vmatpush1.bf16.msra.mxu1 %v3793_v39  ;;  %2963 = vmatpush1.bf16.msra.mxu0 %v3796_v40 }
 0xc7e   : > { %2923 = vmatprep.subr.bf16.mxu1 %v3801_v41  ;;  %2964 = vmatprep.subr.bf16.mxu0 %v3804_v42 }
 0xc81   : > { %2924 = vmatpush1.bf16.msra.mxu1 %v3799_v43  ;;  %2965 = vmatpush1.bf16.msra.mxu0 %v3802_v44 }
 0xc82   : > { %2925 = vmatprep.subr.bf16.mxu1 %v3807_v46  ;;  %2966 = vmatprep.subr.bf16.mxu0 %v3810_v47 }
 0xc85   : > { %2926 = vmatpush2.bf16.msra.mxu1 %v3805_v48  ;;  %2967 = vmatpush2.bf16.msra.mxu0 %v3808_v50 }
 0xc86   : > { %2927 = vmatprep.subr.bf16.mxu1 %v3813_v51  ;;  %2968 = vmatprep.subr.bf16.mxu0 %v3816_v52 }
 0xc89   : > { %2928 = vmatpush2.bf16.msra.mxu1 %v3811_v53  ;;  %2969 = vmatpush2.bf16.msra.mxu0 %v3814_v54 }
 0xc8a   : > { %2929 = vmatprep.subr.bf16.mxu1 %v3819_v55  ;;  %2970 = vmatprep.subr.bf16.mxu0 %v3822_v57 }
 0xc8d   : > { %2930 = vmatpush2.bf16.msra.mxu1 %v3817_v58  ;;  %2971 = vmatpush2.bf16.msra.mxu0 %v3820_v13 }
 0xc8e   : > { %2931 = vmatprep.subr.bf16.mxu1 %v3825_v60  ;;  %2972 = vmatprep.subr.bf16.mxu0 %v3828_v7 }
 0xc91   : > { %2932 = vmatpush2.bf16.msra.mxu1 %v3823_v59  ;;  %2973 = vmatpush2.bf16.msra.mxu0 %v3826_v61 }
 0xc92   : > { %2933 = vmatprep.subr.bf16.mxu1 %v3831_v62  ;;  %2974 = vmatprep.subr.bf16.mxu0 %v3834_v63 }
 0xc95   : > { %2934 = vmatpush2.bf16.msra.mxu1 %v3829_v0  ;;  %2975 = vmatpush2.bf16.msra.mxu0 %v3832_v1 }
 0xc96   : > { %2935 = vmatprep.subr.bf16.mxu1 %v3837_v18  ;;  %2976 = vmatprep.subr.bf16.mxu0 %v3840_v2 }
 0xc99   : > { %2936 = vmatpush2.bf16.msra.mxu1 %v3835_v4  ;;  %2977 = vmatpush2.bf16.msra.mxu0 %v3838_v9 }
 0xc9a   : > { %2937 = vmatprep.subr.bf16.mxu1 %v3843_v10  ;;  %2978 = vmatprep.subr.bf16.mxu0 %v3846_v14 }
 0xc9d   : > { %2938 = vmatpush2.bf16.msra.mxu1 %v3841_v15  ;;  %2979 = vmatpush2.bf16.msra.mxu0 %v3844_v16 }
 0xc9e   : > { %2939 = vmatprep.subr.bf16.mxu1 %v3849_v17  ;;  %2980 = vmatprep.subr.bf16.mxu0 %v3852_v19  ;;  %v2577_v19 = vld [vmem:[%s4956_s11] sm:$0x3] }
 0xca1   : > { %2940 = vmatpush2.bf16.msra.mxu1 %v3847_v20  ;;  %2981 = vmatpush2.bf16.msra.mxu0 %v3850_v21  ;;  %v2582_v20 = vrot.slane %v2577_v19, %v4199_v8  ;;  %v2586_v21 = vrot.slane %v2577_v19, %v4349_v49 }
 0xd24   : > { %v2425_v27 = vpop.f32.mrf.mxu1  ;;  %v2466_v28 = vpop.f32.mrf.mxu0 }
 0xd25   : > { %v2426_v29 = vadd.f32 %v2425_v27, %v2054_v23  ;;  %v2467_v30 = vadd.f32 %v2466_v28, %v2062_v24 }
 0xd26   : > { %v2427_v31 = vpop.f32.mrf.mxu1  ;;  %v2468_v32 = vpop.f32.mrf.mxu0 }
 0xd27   : > { %v2473_v33 = vmul.f32 %v2426_v29, %v2426_v29  ;;  %v2475_v34 = vmul.f32 %v2467_v30, %v2467_v30  ;;  %v2428_v3 = vadd.f32 %v2427_v31, %v2058_v25  ;;  %v2469_v35 = vadd.f32 %v2468_v32, %v2066_v26 }
 0xd28   : > { %v2429_v36 = vpop.f32.mrf.mxu1  ;;  %v2470_v37 = vpop.f32.mrf.mxu0 }
 0xd29   : > { %v2477_v38 = vmul.f32 %v2473_v33, %v2426_v29  ;;  %v2479_v56 = vmul.f32 %v2475_v34, %v2467_v30  ;;  %v2474_v6 = vmul.f32 %v2428_v3, %v2428_v3  ;;  %v2476_v39 = vmul.f32 %v2469_v35, %v2469_v35 }
 0xd2a   : > { %v2430_v40 = vpop.f32.mrf.mxu1  ;;  %v2471_v41 = vpop.f32.mrf.mxu0 }
 0xd2b   : > { %v2481_v5 = vmul.f32 0.044715, %v2477_v38  ;;  %v2483_v45 = vmul.f32 0.044715, %v2479_v56  ;;  %v2478_v42 = vmul.f32 %v2474_v6, %v2428_v3  ;;  %v2480_v43 = vmul.f32 %v2476_v39, %v2469_v35 }
 0xd2d   : > { %v2485_v44 = vadd.f32 %v2481_v5, %v2426_v29  ;;  %v2487_v46 = vadd.f32 %v2483_v45, %v2467_v30  ;;  %v2482_v47 = vmul.f32 0.044715, %v2478_v42  ;;  %v2484_v48 = vmul.f32 0.044715, %v2480_v43 }
 0xd2f   : > { %v2489_v50 = vmul.f32 0.7978846, %v2485_v44  ;;  %v2491_v51 = vmul.f32 0.7978846, %v2487_v46  ;;  %v2486_v52 = vadd.f32 %v2482_v47, %v2428_v3  ;;  %v2488_v53 = vadd.f32 %v2484_v48, %v2469_v35 }
 0xd31   : > { %3871 = vtanh.f32 %v2489_v50  ;;  %v2490_v54 = vmul.f32 0.7978846, %v2486_v52  ;;  %v2492_v55 = vmul.f32 0.7978846, %v2488_v53 }
 0xd32   : > { %3873 = vtanh.f32 %v2491_v51 }
 0xd33   : > { %3875 = vtanh.f32 %v2490_v54 }
 0xd34   : > { %3877 = vtanh.f32 %v2492_v55 }
 0xd3e   : > { %v3872_v57 = vpop.eup %3871 }
 0xd3f   : > { %v3874_v58 = vpop.eup %3873  ;;  %v2497_v13 = vadd.f32 1.0, %v3872_v57 }
 0xd40   : > { %v3876_v59 = vpop.eup %3875  ;;  %v2499_v60 = vadd.f32 1.0, %v3874_v58 }
 0xd41   : > { %v3878_v61 = vpop.eup %3877  ;;  %v2498_v7 = vadd.f32 1.0, %v3876_v59  ;;  %v2501_v62 = vmul.f32 0.5, %v2497_v13 }
 0xd42   : > { %v2500_v63 = vadd.f32 1.0, %v3878_v61  ;;  %v2503_v0 = vmul.f32 0.5, %v2499_v60 }
 0xd43   : > { %v2502_v1 = vmul.f32 0.5, %v2498_v7  ;;  %v2505_v2 = vmul.f32 %v2501_v62, %v2426_v29 }
 0xd44   : > { %v2504_v18 = vmul.f32 0.5, %v2500_v63  ;;  %v2507_v9 = vmul.f32 %v2503_v0, %v2467_v30 }
 0xd45   : > { %v2506_v4 = vmul.f32 %v2502_v1, %v2428_v3  ;;  %v2509_v16 = vpack.c.bf16 %v2505_v2, %v2505_v2 }
 0xd46   : > { %v2508_v10 = vmul.f32 %v2504_v18, %v2469_v35  ;;  %v2511_v17 = vpack.c.bf16 %v2507_v9, %v2507_v9 }
 0xd47   : > { %v2510_v14 = vpack.c.bf16 %v2506_v4, %v2506_v4 }
 0xd48   : > { %v2512_v15 = vpack.c.bf16 %v2508_v10, %v2508_v10 }
 0xd49   : > { %2941 = vmatprep.mubr.bf16.mxu1 %v2510_v14 }
 0xd4a   : > { %2982 = vmatprep.mubr.bf16.mxu0 %v2512_v15  ;;  %2942 = vmatmul.mubr.bf16.vlgmr.msra.gmra.mxu1 %v2509_v16 }
 0xd4b   : > { %2983 = vmatmul.mubr.bf16.vlgmr.msra.gmra.mxu0 %v2511_v17 }
 0xe0a   : > { %v2943_v22 = vpop.f32.mrf.mxu1 }
 0xe0b   : > { %v2944_v23 = vadd.f32 %v2943_v22, %v2582_v20  ;;  %v2984_v24 = vpop.f32.mrf.mxu0 }
 0xe0c   : > { %v2945_v25 = vpop.f32.mrf.mxu1 }
 0xe0d   : > { %v2985_v26 = vadd.f32 %v2984_v24, %v2944_v23  ;;  %v2946_v27 = vadd.f32 %v2945_v25, %v2586_v21  ;;  %v2986_v28 = vpop.f32.mrf.mxu0 }
 0xe0e   : > { %v2947_v29 = vpop.f32.mrf.mxu1 }
 0xe0f   : > { %v2987_v30 = vadd.f32 %v2986_v28, %v2946_v27  ;;  %v2988_v31 = vpop.f32.mrf.mxu0  ;;  %v2991_v33 = vadd.f32 %v2985_v26, %v4719_v12  ;;  %v2994_v12 = vld [vmem:[%s4958_s13] sm:$0x3] }
 0xe10   : > { %v2948_v32 = vpop.f32.mrf.mxu1  ;;  %v3028_v46 = vrot.slane %v2994_v12, %v4199_v8  ;;  %v3032_v47 = vrot.slane %v2994_v12, %v4349_v49 }
 0xe11   : > { %v2992_v34 = vadd.f32 %v2987_v30, %v4717_v11  ;;  %v2989_v3 = vpop.f32.mrf.mxu0  ;;  %v2993_v11 = vld [vmem:[%s4957_s12] sm:$0x3] }
 0xe12   : > { %v3015_v42 = vrot.slane %v2993_v11, %v4199_v8  ;;  %v3019_v43 = vrot.slane %v2993_v11, %v4349_v49 }
 0xe13   : > { %v2995_v35 = vadd.f32 %v2992_v34, %v2991_v33 }
 0xe15   : > { %2996 = vadd.xlane.f32.xlu1 %v2995_v35 }
 0xe9e   : > { %v2997_v36 = vpop.xlane.xlu1 %2996 }
 0xe9f   : > { %v2998_v37 = vmul.f32 0.00390625, %v2997_v36 }
 0xea1   : > { %v2999_v38 = vsub.f32 %v2991_v33, %v2998_v37  ;;  %v3000_v56 = vsub.f32 %v2992_v34, %v2998_v37 }
 0xea3   : > { %v3001_v6 = vmul.f32 %v2999_v38, %v2999_v38  ;;  %v3002_v39 = vmul.f32 %v3000_v56, %v3000_v56 }
 0xea5   : > { %v3003_v40 = vadd.f32 %v3002_v39, %v3001_v6 }
 0xea7   : > { %3004 = vadd.xlane.f32.xlu1 %v3003_v40 }
 0xf30   : > { %v3005_v41 = vpop.xlane.xlu1 %3004 }
 0xf31   : > { %v3006_v5 = vmul.f32 0.00390625, %v3005_v41 }
 0xf33   : > { %v3007_v45 = vadd.f32 1e-12, %v3006_v5 }
 0xf35   : > { %3879 = vrsqrt.f32 %v3007_v45 }
 0xf42   : > { %v3880_v44 = vpop.eup %3879 }
 0xf43   : > { %v3009_v48 = vmul.f32 %v3880_v44, %v2999_v38  ;;  %v3010_v50 = vmul.f32 %v3880_v44, %v3000_v56 }
 0xf45   : > { %v3022_v51 = vmul.f32 %v3015_v42, %v3009_v48  ;;  %v3023_v52 = vmul.f32 %v3019_v43, %v3010_v50 }
 0xf47   : > { %v3035_v53 = vadd.f32 %v3028_v46, %v3022_v51  ;;  %v3036_v54 = vadd.f32 %v3032_v47, %v3023_v52 }
 0xf49   : > { %v3391_v55 = vpack.c.bf16 %v3036_v54, %v3035_v53 }
 0xf4b   : > { %3045 = vst [vmem:[%s481_s28] sm:$0xff] %v3391_v55 }
 0xf4c PF: > { %s24_s29 = sadd.s32 1, %s3888_s29  }
 0xf4d   : > { %p21_p4 = scmp.ge.s32.totalorder %s24_s29, 4  }
 0xf4f   :  { %23 = sbr.rel (!%p21_p4) target bundleno = 1 (0x1), region = 109 }

// kernel: bert_class_forward.5
= control target key start
LH: loop header
LB: loop body
LE: loop exit
PB: predicated region body
PF: predicated region fallthrough
CT: control target
= control target key end

     0   :  { %19 = vsyncpa [#allocation4], 0  ;;  %s4653_s0 = inlined_call_operand.vmem [shape: bf16[2,8,256], index: 0, kind: input, shape index: {}]   ;;  %s4654_s1 = inlined_call_operand.vmem [shape: f32[2,1,8], index: 1, kind: input, shape index: {}]   ;;  %s4655_s2 = inlined_call_operand.hbm [shape: bf16[256,768], index: 2, kind: input, shape index: {}]   ;;  %s4656_s3 = inlined_call_operand.vmem [shape: f32[1,768], index: 3, kind: input, shape index: {}]   ;;  %s4657_s4 = inlined_call_operand.vmem [shape: bf16[256,256], index: 4, kind: input, shape index: {}]   ;;  %s4658_s5 = inlined_call_operand.vmem [shape: f32[1,256], index: 5, kind: input, shape index: {}]   ;;  %s4659_s6 = inlined_call_operand.vmem [shape: f32[1,256], index: 6, kind: input, shape index: {}]   ;;  %s4660_s7 = inlined_call_operand.vmem [shape: f32[1,256], index: 7, kind: input, shape index: {}]   ;;  %s4661_s8 = inlined_call_operand.vmem [shape: bf16[256,512], index: 8, kind: input, shape index: {}]   ;;  %s4662_s9 = inlined_call_operand.vmem [shape: f32[1,512], index: 9, kind: input, shape index: {}]   ;;  %s4663_s10 = inlined_call_operand.hbm [shape: bf16[512,256], index: 10, kind: input, shape index: {}]   ;;  %s4664_s11 = inlined_call_operand.vmem [shape: f32[1,256], index: 11, kind: input, shape index: {}]   ;;  %s4665_s12 = inlined_call_operand.vmem [shape: f32[1,256], index: 12, kind: input, shape index: {}]   ;;  %s4666_s13 = inlined_call_operand.vmem [shape: f32[1,256], index: 13, kind: input, shape index: {}]   ;;  %s4667_s14 = inlined_call_operand.vmem [shape: bf16[2,8,256], index: 14, kind: output, shape index: {}]  }
   0x1   :  { %20 = vsyncpa [#allocation6], 0  ;;  %s4115_s29 = smov 0  }
   0x2 LB: > { %s4031_s30 = smov [#allocation3]   ;;  %s4121_s16 = sadd.s32 4294967295, %s4029_s29   ;;  %s4029_s29 = sphi %s4115_s29, %s26_s29  }
   0x3   : > { %s373_s15 = sshll.u32 %s4031_s30, 4  ;;  %p3164_p0 = scmp.ge.s32.totalorder %s4029_s29, 1  ;;  %s374_s15 = int_to_ptr.vmem [resolvable:$true] %s373_s15 }
   0x4   : > { %p361_p1 = scmp.lt.s32.totalorder %s4029_s29, 3  ;;  %p3527_p3 = scmp.eq.s32.totalorder %s4121_s16, 0 }
   0x5   : > { %s4032_s18 = smov [#allocation5]   ;;  %s3974_s21 = scalar_lea.vmem %s374_s15, 12288 }
   0x6   : > { %p4125_p2 = pnand %p3164_p0, %p361_p1  ;;  %s407_s19 = sshll.u32 %s4032_s18, 4  ;;  %s408_s19 = int_to_ptr.vmem [resolvable:$true] %s407_s19 }
   0x7   : > { %p3975_p7 = scmp.ne.s32.totalorder %s374_s15, %s3974_s21  ;;  %p3982_p10 = scmp.lt.s32.totalorder %s374_s15, %s374_s15 }
   0x8   : > { %p3520_p4 = pneg %p4125_p2  ;;  %p3983_p11 = scmp.lt.s32.totalorder %s3974_s21, %s3974_s21 }
   0xa   : > { %p4134_p5 = pnand %p3527_p3, %p3520_p4  ;;  %p3984_p12 = por %p3983_p11, %p3982_p10 }
   0xc   : > { %p3965_p6 = pneg %p4134_p5 }
   0xe   : > { %p3977_p8 = pnand %p3975_p7, %p3965_p6 }
  0x10   : > { %p3978_p9 = pneg %p3977_p8 }
  0x12   : > { %p3985_p13 = pnand %p3984_p12, %p3978_p9 }
  0x14   : > { %3988 = shalt.err (!%p3985_p13)
}
  0x15   : > { %s4033_s22 = smov 384   ;;  %s4034_s23 = smov 24  }
  0x16   : > { %3523 = dma.hbm_to_vmem [thread:$0]  (!%p4134_p5), %s4655_s2, 12288, %s374_s15, [#allocation4], %s4033_s22, %s4033_s22, %s4034_s23  }
  0x17   : > { %s4000_s26 = scalar_lea.vmem %s408_s19, 8192  ;;  %p4008_p7 = scmp.lt.s32.totalorder %s408_s19, %s408_s19 }
  0x18   : > { %p4001_p0 = scmp.ne.s32.totalorder %s408_s19, %s4000_s26  ;;  %p4009_p8 = scmp.lt.s32.totalorder %s4000_s26, %s4000_s26 }
  0x1a   : > { %p4003_p1 = pnand %p4001_p0, %p3965_p6  ;;  %p4010_p10 = por %p4009_p8, %p4008_p7 }
  0x1c   : > { %p4004_p4 = pneg %p4003_p1 }
  0x1e   : > { %p4011_p9 = pnand %p4010_p10, %p4004_p4 }
  0x20   : > { %4014 = shalt.err (!%p4011_p9)
}
  0x21   : > { %s4035_s27 = smov 128   ;;  %s4036_s28 = smov 8  }
  0x22   : > { %3526 = dma.hbm_to_vmem [thread:$0]  (!%p4134_p5), %s4663_s10, 8192, %s408_s19, [#allocation6], %s4035_s27, %s4035_s27, %s4036_s28  }
  0x23   : > { %446 = sbr.rel (%p4125_p2) target bundleno = 3948 (0xf6c), region = 76 }
  0x28   : > { %4020 = dma.done.wait (%p3527_p3), [#allocation4], 12288  }
  0x29   : > { %4022 = vsyncadd (%p3527_p3), [#allocation4], 4294955008 }
  0x2a   : > { %4024 = dma.done.wait (%p3527_p3), [#allocation6], 8192  }
  0x2b   : > { %4026 = vsyncadd (%p3527_p3), [#allocation6], 4294959104  ;;  %v3548_v0 = vld [vmem:[#allocation3 + $0x15c] ss:$24 sps:$4 sm:$0xff]   ;;  %v3550_v1 = vld [vmem:[#allocation3 + $0x158] ss:$24 sps:$4 sm:$0xff]  }
  0x2c   : > { %1171 = vmatprep.subr.bf16.mxu1 %v3548_v0  ;;  %v3551_v2 = vld [vmem:[#allocation3 + $0x154] ss:$24 sps:$4 sm:$0xff]   ;;  %v3553_v3 = vld [vmem:[#allocation3 + $0x150] ss:$24 sps:$4 sm:$0xff]   ;;  %v3557_v6 = vld [vmem:[#allocation3 + $0x124] ss:$24 sps:$4 sm:$0xff]  }
  0x2d   : > { %1172 = vmatpush1.bf16.msra.mxu1 %v3550_v1  ;;  %v3554_v4 = vld [vmem:[#allocation3 + $0x12c] ss:$24 sps:$4 sm:$0xff]   ;;  %v3556_v5 = vld [vmem:[#allocation3 + $0x128] ss:$24 sps:$4 sm:$0xff]   ;;  %1130 = vmatprep.subr.bf16.mxu0 %v3551_v2  ;;  %v3560_v8 = vld [vmem:[#allocation3 + $0xfc] ss:$24 sps:$4 sm:$0xff]  }
  0x2e   : > { %1131 = vmatpush1.bf16.msra.mxu0 %v3553_v3  ;;  %1173 = vmatprep.subr.bf16.mxu1 %v3554_v4  ;;  %v3559_v7 = vld [vmem:[#allocation3 + $0x120] ss:$24 sps:$4 sm:$0xff]   ;;  %v3563_v10 = vld [vmem:[#allocation3 + $0xf4] ss:$24 sps:$4 sm:$0xff]   ;;  %v3565_v12 = vld [vmem:[#allocation3 + $0xf0] ss:$24 sps:$4 sm:$0xff]   ;;  %v613_v4 = vlaneseq }
  0x2f   : > { %1132 = vmatprep.subr.bf16.mxu0 %v3557_v6  ;;  %v3562_v9 = vld [vmem:[#allocation3 + $0xf8] ss:$24 sps:$4 sm:$0xff]   ;;  %v3566_v11 = vld [vmem:[#allocation3 + $0xcc] ss:$24 sps:$4 sm:$0xff]   ;;  %v3568_v14 = vld [vmem:[#allocation3 + $0xc8] ss:$24 sps:$4 sm:$0xff]  }
  0x30   : > { %v3569_v13 = vld [vmem:[#allocation3 + $0xc4] ss:$24 sps:$4 sm:$0xff]   ;;  %v3571_v16 = vld [vmem:[#allocation3 + $0xc0] ss:$24 sps:$4 sm:$0xff]   ;;  %v3575_v17 = vld [vmem:[#allocation3 + $0x94] ss:$24 sps:$4 sm:$0xff]  }
  0x31   : > { %1174 = vmatpush1.bf16.msra.mxu1 %v3556_v5  ;;  %v3572_v15 = vld [vmem:[#allocation3 + $0x9c] ss:$24 sps:$4 sm:$0xff]   ;;  %v3574_v18 = vld [vmem:[#allocation3 + $0x98] ss:$24 sps:$4 sm:$0xff]   ;;  %v3578_v19 = vld [vmem:[#allocation3 + $0x6c] ss:$24 sps:$4 sm:$0xff]  }
  0x32   : > { %1175 = vmatprep.subr.bf16.mxu1 %v3560_v8  ;;  %1133 = vmatpush1.bf16.msra.mxu0 %v3559_v7  ;;  %v3577_v20 = vld [vmem:[#allocation3 + $0x90] ss:$24 sps:$4 sm:$0xff]   ;;  %v3581_v21 = vld [vmem:[#allocation3 + $0x64] ss:$24 sps:$4 sm:$0xff]   ;;  %v3583_v24 = vld [vmem:[#allocation3 + $0x60] ss:$24 sps:$4 sm:$0xff]  }
  0x33   : > { %1134 = vmatprep.subr.bf16.mxu0 %v3563_v10  ;;  %v3580_v22 = vld [vmem:[#allocation3 + $0x68] ss:$24 sps:$4 sm:$0xff]   ;;  %v3584_v23 = vld [vmem:[#allocation3 + $0x3c] ss:$24 sps:$4 sm:$0xff]   ;;  %v3586_v26 = vld [vmem:[#allocation3 + $0x38] ss:$24 sps:$4 sm:$0xff]  }
  0x34   : > { %v3587_v25 = vld [vmem:[#allocation3 + $0x34] ss:$24 sps:$4 sm:$0xff]   ;;  %v3589_v28 = vld [vmem:[#allocation3 + $0x30] ss:$24 sps:$4 sm:$0xff]   ;;  %v3593_v29 = vld [vmem:[#allocation3 + $0x4] ss:$24 sps:$4 sm:$0xff]  }
  0x35   : > { %1176 = vmatpush1.bf16.msra.mxu1 %v3562_v9  ;;  %v3590_v27 = vld [vmem:[#allocation3 + $0xc] ss:$24 sps:$4 sm:$0xff]   ;;  %v3592_v30 = vld [vmem:[#allocation3 + $0x8] ss:$24 sps:$4 sm:$0xff]   ;;  %v3596_v31 = vld [vmem:[#allocation3 + $0x2dc] ss:$24 sps:$4 sm:$0xff]  }
  0x36   : > { %1177 = vmatprep.subr.bf16.mxu1 %v3566_v11  ;;  %1135 = vmatpush1.bf16.msra.mxu0 %v3565_v12  ;;  %p499_p2 = scmp.lt.s32.totalorder %s4121_s16, 1  ;;  %v3595_v32 = vld [vmem:[#allocation3] ss:$24 sps:$4 sm:$0xff]   ;;  %v3599_v33 = vld [vmem:[#allocation3 + $0x2d4] ss:$24 sps:$4 sm:$0xff]   ;;  %v4037_v3 = vmov 0.0  }
  0x37   : > { %1136 = vmatprep.subr.bf16.mxu0 %v3569_v13  ;;  %v3598_v34 = vld [vmem:[#allocation3 + $0x2d8] ss:$24 sps:$4 sm:$0xff]   ;;  %v3602_v35 = vld [vmem:[#allocation3 + $0x2ac] ss:$24 sps:$4 sm:$0xff]   ;;  %v3604_v38 = vld [vmem:[#allocation3 + $0x2a8] ss:$24 sps:$4 sm:$0xff]  }
  0x38   : > { %s4671_s16 = smov (!%p499_p2, %s4121_s16), 1  ;;  %v3601_v36 = vld [vmem:[#allocation3 + $0x2d0] ss:$24 sps:$4 sm:$0xff]   ;;  %v3605_v37 = vld [vmem:[#allocation3 + $0x2a4] ss:$24 sps:$4 sm:$0xff]   ;;  %vm4038_vm0 = vmmov 0  }
  0x39   : > { %1178 = vmatpush1.bf16.msra.mxu1 %v3568_v14  ;;  %v3608_v39 = vld [vmem:[#allocation3 + $0x27c] ss:$24 sps:$4 sm:$0xff]   ;;  %s3445_s15 = sshll.u32 %s4671_s16, 3  ;;  %v3607_v40 = vld [vmem:[#allocation3 + $0x2a0] ss:$24 sps:$4 sm:$0xff]   ;;  %v4186_v5 = vshrl.u32 %v613_v4, 7  ;;  %s506_s26 = scalar_lea.vmem %s4654_s1, %s4671_s16 }
  0x3a   : > { %1179 = vmatprep.subr.bf16.mxu1 %v3572_v15  ;;  %1137 = vmatpush1.bf16.msra.mxu0 %v3571_v16  ;;  %v3611_v41 = vld [vmem:[#allocation3 + $0x274] ss:$24 sps:$4 sm:$0xff]   ;;  %v3610_v42 = vld [vmem:[#allocation3 + $0x278] ss:$24 sps:$4 sm:$0xff]   ;;  %s4176_s20 = scalar_lea.vmem %s4653_s0, %s3445_s15  ;;  %v3616_v45 = vld [vmem:[#allocation3 + $0x248] ss:$24 sps:$4 sm:$0xff]  }
  0x3b   : > { %1138 = vmatprep.subr.bf16.mxu0 %v3575_v17  ;;  %v3614_v43 = vld [vmem:[#allocation3 + $0x24c] ss:$24 sps:$4 sm:$0xff]   ;;  %v3613_v44 = vld [vmem:[#allocation3 + $0x270] ss:$24 sps:$4 sm:$0xff]   ;;  %v3619_v48 = vld [vmem:[#allocation3 + $0x240] ss:$24 sps:$4 sm:$0xff]  }
  0x3c   : > { %v3617_v46 = vld [vmem:[#allocation3 + $0x244] ss:$24 sps:$4 sm:$0xff]   ;;  %v513_v47 = vld [vmem:[%s4176_s20] sm:$0xff]  ;;  %v3628_v56 = vld [vmem:[#allocation3 + $0x1e8] ss:$24 sps:$4 sm:$0xff]   ;;  %v623_v6 = vsub.s32 2, %v4186_v5 }
  0x3d   : > { %1180 = vmatpush1.bf16.msra.mxu1 %v3574_v18  ;;  %v3620_v49 = vld [vmem:[#allocation3 + $0x21c] ss:$24 sps:$4 sm:$0xff]   ;;  %v3176_v50 = vcombine.high %v513_v47, %v513_v47  ;;  %v3622_v52 = vld [vmem:[#allocation3 + $0x218] ss:$24 sps:$4 sm:$0xff]   ;;  %v3626_v53 = vld [vmem:[#allocation3 + $0x1ec] ss:$24 sps:$4 sm:$0xff]   ;;  %v4179_v2 = vcombine.low %v513_v47, %v513_v47 }
  0x3e   : > { %1181 = vmatprep.subr.bf16.mxu1 %v3578_v19  ;;  %1139 = vmatpush1.bf16.msra.mxu0 %v3577_v20  ;;  %v3623_v51 = vld [vmem:[#allocation3 + $0x214] ss:$24 sps:$4 sm:$0xff]   ;;  %v3625_v54 = vld [vmem:[#allocation3 + $0x210] ss:$24 sps:$4 sm:$0xff]   ;;  %v3629_v55 = vld [vmem:[#allocation3 + $0x1e4] ss:$24 sps:$4 sm:$0xff]  }
  0x3f   : > { %1140 = vmatprep.subr.bf16.mxu0 %v3581_v21  ;;  %1203 = vmatprep.mubr.bf16.mxu1 %v3176_v50  ;;  %v3632_v57 = vld [vmem:[#allocation3 + $0x1bc] ss:$24 sps:$4 sm:$0xff]   ;;  %v3631_v58 = vld [vmem:[#allocation3 + $0x1e0] ss:$24 sps:$4 sm:$0xff]   ;;  %v3638_v61 = vld [vmem:[#allocation3 + $0x18c] ss:$24 sps:$4 sm:$0xff]  }
  0x40   : > { %1162 = vmatprep.mubr.bf16.mxu0 %v3176_v50  ;;  %v3635_v59 = vld [vmem:[#allocation3 + $0x1b4] ss:$24 sps:$4 sm:$0xff]   ;;  %v3634_v60 = vld [vmem:[#allocation3 + $0x1b8] ss:$24 sps:$4 sm:$0xff]   ;;  %v3641_v63 = vld [vmem:[#allocation3 + $0x184] ss:$24 sps:$4 sm:$0xff]  }
  0x41   : > { %1182 = vmatpush1.bf16.msra.mxu1 %v3580_v22  ;;  %v3637_v62 = vld [vmem:[#allocation3 + $0x1b0] ss:$24 sps:$4 sm:$0xff]   ;;  %v3644_v1 = vld [vmem:[#allocation3 + $0x180] ss:$24 sps:$4 sm:$0xff]   ;;  %v4195_v8 = vsub.s32 0, %v4186_v5  ;;  %vm1265_vm1 = vcmask 523264  }
  0x42   : > { %1183 = vmatprep.subr.bf16.mxu1 %v3584_v23  ;;  %1141 = vmatpush1.bf16.msra.mxu0 %v3583_v24  ;;  %v3640_v0 = vld [vmem:[#allocation3 + $0x188] ss:$24 sps:$4 sm:$0xff]   ;;  %v4192_v7 = vld [vmem:[%s4656_s3] sm:$0x3f]  ;;  %s4039_s23 = smov 64   ;;  %vm1312_vm2 = vcmask 64512  }
  0x43   : > { %1142 = vmatprep.subr.bf16.mxu0 %v3587_v25  ;;  %v624_v9 = vrot.slane %v4192_v7, %v623_v6  ;;  %v616_v10 = vrot.slane %v4192_v7, %v4195_v8  ;;  %v3646_v24 = vld [vmem:[#allocation3 + $0x160] ss:$24 sps:$4 sm:$0xff]   ;;  %v3648_v25 = vld [vmem:[#allocation3 + $0x164] ss:$24 sps:$4 sm:$0xff]   ;;  %v3679_v47 = vld [vmem:[#allocation3 + $0x250] ss:$24 sps:$4 sm:$0xff]  }
  0x44   : > { %vm1328_vm3 = vcmask 1043456   ;;  %vm1490_vm4 = vcmask 1048064  }
  0x45   : > { %1184 = vmatpush1.bf16.msra.mxu1 %v3586_v26  ;;  %v3651_v26 = vld [vmem:[#allocation3 + $0x134] ss:$24 sps:$4 sm:$0xff]  }
  0x46   : > { %1185 = vmatprep.subr.bf16.mxu1 %v3590_v27  ;;  %1143 = vmatpush1.bf16.msra.mxu0 %v3589_v28  ;;  %v3649_v27 = vld [vmem:[#allocation3 + $0x130] ss:$24 sps:$4 sm:$0xff]   ;;  %v3654_v28 = vld [vmem:[#allocation3 + $0x104] ss:$24 sps:$4 sm:$0xff]  }
  0x47   : > { %1144 = vmatprep.subr.bf16.mxu0 %v3593_v29  ;;  %v3652_v29 = vld [vmem:[#allocation3 + $0x100] ss:$24 sps:$4 sm:$0xff]  }
  0x49   : > { %1186 = vmatpush1.bf16.msra.mxu1 %v3592_v30  ;;  %v3657_v30 = vld [vmem:[#allocation3 + $0xd4] ss:$24 sps:$4 sm:$0xff]  }
  0x4a   : > { %1187 = vmatprep.subr.bf16.mxu1 %v3596_v31  ;;  %1145 = vmatpush1.bf16.msra.mxu0 %v3595_v32  ;;  %v3655_v31 = vld [vmem:[#allocation3 + $0xd0] ss:$24 sps:$4 sm:$0xff]   ;;  %v3660_v32 = vld [vmem:[#allocation3 + $0xa4] ss:$24 sps:$4 sm:$0xff]  }
  0x4b   : > { %1146 = vmatprep.subr.bf16.mxu0 %v3599_v33  ;;  %v3658_v33 = vld [vmem:[#allocation3 + $0xa0] ss:$24 sps:$4 sm:$0xff]  }
  0x4d   : > { %1188 = vmatpush2.bf16.msra.mxu1 %v3598_v34  ;;  %v3663_v34 = vld [vmem:[#allocation3 + $0x74] ss:$24 sps:$4 sm:$0xff]  }
  0x4e   : > { %1189 = vmatprep.subr.bf16.mxu1 %v3602_v35  ;;  %1147 = vmatpush2.bf16.msra.mxu0 %v3601_v36  ;;  %v3661_v35 = vld [vmem:[#allocation3 + $0x70] ss:$24 sps:$4 sm:$0xff]   ;;  %v3666_v36 = vld [vmem:[#allocation3 + $0x44] ss:$24 sps:$4 sm:$0xff]  }
  0x4f   : > { %1148 = vmatprep.subr.bf16.mxu0 %v3605_v37  ;;  %v3664_v37 = vld [vmem:[#allocation3 + $0x40] ss:$24 sps:$4 sm:$0xff]  }
  0x51   : > { %1190 = vmatpush2.bf16.msra.mxu1 %v3604_v38  ;;  %v3669_v38 = vld [vmem:[#allocation3 + $0x14] ss:$24 sps:$4 sm:$0xff]  }
  0x52   : > { %1191 = vmatprep.subr.bf16.mxu1 %v3608_v39  ;;  %1149 = vmatpush2.bf16.msra.mxu0 %v3607_v40  ;;  %v3667_v39 = vld [vmem:[#allocation3 + $0x10] ss:$24 sps:$4 sm:$0xff]   ;;  %v3672_v40 = vld [vmem:[#allocation3 + $0x2e4] ss:$24 sps:$4 sm:$0xff]  }
  0x53   : > { %1150 = vmatprep.subr.bf16.mxu0 %v3611_v41  ;;  %v3670_v41 = vld [vmem:[#allocation3 + $0x2e0] ss:$24 sps:$4 sm:$0xff]  }
  0x55   : > { %1192 = vmatpush2.bf16.msra.mxu1 %v3610_v42  ;;  %v3675_v42 = vld [vmem:[#allocation3 + $0x2b4] ss:$24 sps:$4 sm:$0xff]  }
  0x56   : > { %1193 = vmatprep.subr.bf16.mxu1 %v3614_v43  ;;  %1151 = vmatpush2.bf16.msra.mxu0 %v3613_v44  ;;  %v3673_v43 = vld [vmem:[#allocation3 + $0x2b0] ss:$24 sps:$4 sm:$0xff]   ;;  %v3678_v44 = vld [vmem:[#allocation3 + $0x284] ss:$24 sps:$4 sm:$0xff]  }
  0x57   : > { %1152 = vmatprep.subr.bf16.mxu0 %v3617_v46  ;;  %v3681_v46 = vld [vmem:[#allocation3 + $0x254] ss:$24 sps:$4 sm:$0xff]  }
  0x59   : > { %1194 = vmatpush2.bf16.msra.mxu1 %v3616_v45  ;;  %v3676_v45 = vld [vmem:[#allocation3 + $0x280] ss:$24 sps:$4 sm:$0xff]  }
  0x5a   : > { %1195 = vmatprep.subr.bf16.mxu1 %v3620_v49  ;;  %1153 = vmatpush2.bf16.msra.mxu0 %v3619_v48  ;;  %v3684_v48 = vld [vmem:[#allocation3 + $0x224] ss:$24 sps:$4 sm:$0xff]   ;;  %v3682_v49 = vld [vmem:[#allocation3 + $0x220] ss:$24 sps:$4 sm:$0xff]  }
  0x5b   : > { %1154 = vmatprep.subr.bf16.mxu0 %v3623_v51  ;;  %v3685_v51 = vld [vmem:[#allocation3 + $0x1f0] ss:$24 sps:$4 sm:$0xff]  }
  0x5d   : > { %1196 = vmatpush2.bf16.msra.mxu1 %v3622_v52  ;;  %v3690_v52 = vld [vmem:[#allocation3 + $0x1c4] ss:$24 sps:$4 sm:$0xff]  }
  0x5e   : > { %1197 = vmatprep.subr.bf16.mxu1 %v3626_v53  ;;  %1155 = vmatpush2.bf16.msra.mxu0 %v3625_v54  ;;  %v3688_v53 = vld [vmem:[#allocation3 + $0x1c0] ss:$24 sps:$4 sm:$0xff]   ;;  %v3693_v54 = vld [vmem:[#allocation3 + $0x194] ss:$24 sps:$4 sm:$0xff]  }
  0x5f   : > { %1156 = vmatprep.subr.bf16.mxu0 %v3629_v55  ;;  %v3691_v55 = vld [vmem:[#allocation3 + $0x190] ss:$24 sps:$4 sm:$0xff]  }
  0x61   : > { %1198 = vmatpush2.bf16.msra.mxu1 %v3628_v56  ;;  %v4218_v56 = vld [vmem:[%s506_s26] ss:$0 sm:$0xff]  ;;  %s511_s26 = scalar_lea.vmem %s4667_s14, %s3445_s15 }
  0x62   : > { %1199 = vmatprep.subr.bf16.mxu1 %v3632_v57  ;;  %1157 = vmatpush2.bf16.msra.mxu0 %v3631_v58 }
  0x63   : > { %1158 = vmatprep.subr.bf16.mxu0 %v3635_v59 }
  0x65   : > { %1200 = vmatpush2.bf16.msra.mxu1 %v3634_v60 }
  0x66   : > { %1201 = vmatprep.subr.bf16.mxu1 %v3638_v61  ;;  %1159 = vmatpush2.bf16.msra.mxu0 %v3637_v62 }
  0x67   : > { %1160 = vmatprep.subr.bf16.mxu0 %v3641_v63  ;;  %v631_v63 = vsub.s32 4, %v4186_v5 }
  0x69   : > { %1202 = vmatpush2.bf16.msra.mxu1 %v3640_v0  ;;  %v632_v0 = vrot.slane %v4192_v7, %v631_v63 }
  0x6a   : > { %1161 = vmatpush2.bf16.msra.mxu0 %v3644_v1  ;;  %3464 = vmatprep.subr.bf16.mxu1 %v4037_v3 }
  0x6b   : > { %1212 = vmatprep.subr.bf16.mxu0 %v3648_v25 }
  0x6c   : > { %1204 = vmatmul.mubr.bf16.vlgmr.msra.gmra.mxu1 %v4179_v2 }
  0x6d   : > { %1163 = vmatmul.mubr.bf16.vlgmr.msra.gmra.mxu0 %v4179_v2  ;;  %3466 = vmatprep.mubr.msk.bf16.mxu1 %vm4038_vm0, %v4037_v3 }
  0x6e   : > { %1244 = vmatprep.mubr.bf16.mxu0 %v3176_v50  ;;  %1213 = vmatpush1.bf16.msra.mxu0 %v3646_v24  ;;  %v3687_v50 = vld [vmem:[#allocation3 + $0x1f4] ss:$24 sps:$4 sm:$0xff]  }
  0x6f   : > { %1214 = vmatprep.subr.bf16.mxu0 %v3651_v26 }
  0x72   : > { %1215 = vmatpush1.bf16.msra.mxu0 %v3649_v27 }
  0x73   : > { %1216 = vmatprep.subr.bf16.mxu0 %v3654_v28 }
  0x76   : > { %1217 = vmatpush1.bf16.msra.mxu0 %v3652_v29 }
  0x77   : > { %1218 = vmatprep.subr.bf16.mxu0 %v3657_v30 }
  0x7a   : > { %1219 = vmatpush1.bf16.msra.mxu0 %v3655_v31 }
  0x7b   : > { %1220 = vmatprep.subr.bf16.mxu0 %v3660_v32 }
  0x7e   : > { %1221 = vmatpush1.bf16.msra.mxu0 %v3658_v33 }
  0x7f   : > { %1222 = vmatprep.subr.bf16.mxu0 %v3663_v34 }
  0x82   : > { %1223 = vmatpush1.bf16.msra.mxu0 %v3661_v35 }
  0x83   : > { %1224 = vmatprep.subr.bf16.mxu0 %v3666_v36 }
  0x86   : > { %1225 = vmatpush1.bf16.msra.mxu0 %v3664_v37 }
  0x87   : > { %1226 = vmatprep.subr.bf16.mxu0 %v3669_v38 }
  0x8a   : > { %1227 = vmatpush1.bf16.msra.mxu0 %v3667_v39 }
  0x8b   : > { %1228 = vmatprep.subr.bf16.mxu0 %v3672_v40 }
  0x8e   : > { %1229 = vmatpush2.bf16.msra.mxu0 %v3670_v41 }
  0x8f   : > { %1230 = vmatprep.subr.bf16.mxu0 %v3675_v42 }
  0x92   : > { %1231 = vmatpush2.bf16.msra.mxu0 %v3673_v43 }
  0x93   : > { %1232 = vmatprep.subr.bf16.mxu0 %v3678_v44 }
  0x96   : > { %1233 = vmatpush2.bf16.msra.mxu0 %v3676_v45  ;;  %v627_v45 = vsub.s32 3, %v4186_v5 }
  0x97   : > { %1234 = vmatprep.subr.bf16.mxu0 %v3681_v46 }
  0x98   : > { %v628_v46 = vrot.slane %v4192_v7, %v627_v45 }
  0x9a   : > { %1235 = vmatpush2.bf16.msra.mxu0 %v3679_v47 }
  0x9b   : > { %1236 = vmatprep.subr.bf16.mxu0 %v3684_v48  ;;  %v635_v48 = vsub.s32 5, %v4186_v5 }
  0x9e   : > { %1237 = vmatpush2.bf16.msra.mxu0 %v3682_v49  ;;  %v4249_v49 = vsub.s32 1, %v4186_v5 }
  0x9f   : > { %1238 = vmatprep.subr.bf16.mxu0 %v3687_v50 }
  0xa2   : > { %1239 = vmatpush2.bf16.msra.mxu0 %v3685_v51 }
  0xa3   : > { %1240 = vmatprep.subr.bf16.mxu0 %v3690_v52  ;;  %v636_v52 = vrot.slane %v4192_v7, %v635_v48  ;;  %v3699_v48 = vld [vmem:[%s4657_s4 + $0x64] ss:$8 sps:$4 sm:$0xff]  }
  0xa6   : > { %1241 = vmatpush2.bf16.msra.mxu0 %v3688_v53 }
  0xa7   : > { %1242 = vmatprep.subr.bf16.mxu0 %v3693_v54  ;;  %v620_v54 = vrot.slane %v4192_v7, %v4249_v49 }
  0xaa   : > { %1243 = vmatpush2.bf16.msra.mxu0 %v3691_v55 }
  0xad   : > { %1245 = vmatmul.mubr.bf16.vlgmr.msra.gmra.mxu0 %v4179_v2 }
 0x12c   : > { %v1205_v11 = vpop.f32.mrf.mxu1 }
 0x12d   : > { %v1206_v12 = vadd.f32 %v1205_v11, %v624_v9  ;;  %v1164_v14 = vpop.f32.mrf.mxu0 }
 0x12e   : > { %v4202_v13 = vpop.f32.mrf.mxu1  ;;  %v1165_v16 = vadd.f32 %v1164_v14, %v616_v10 }
 0x12f   : > { %v1255_v15 = vpack.c.bf16 %v1206_v12, %v1206_v12  ;;  %v4204_v18 = vpop.f32.mrf.mxu0  ;;  %v1208_v47 = vadd.f32 %v4202_v13, %v628_v46  ;;  %v3694_v46 = vld [vmem:[%s4657_s4 + $0x70] ss:$8 sps:$4 sm:$0xff]  }
 0x130   : > { %v1209_v17 = vpop.f32.mrf.mxu1  ;;  %v1253_v20 = vpack.c.bf16 %v1165_v16, %v1165_v16  ;;  %v1167_v13 = vadd.f32 %v4204_v18, %v620_v54  ;;  %v3703_v54 = vld [vmem:[%s4657_s4 + $0x40] ss:$8 sps:$4 sm:$0xff]  }
 0x131   : > { %v1270_v19 = vsel %vm1265_vm1, %v1255_v15, 0  ;;  %1377 = vrot.lane.b32.xlu1 %v1255_v15, %s4039_s23  ;;  %v1168_v22 = vpop.f32.mrf.mxu0  ;;  %v1256_v51 = vpack.c.bf16 %v1208_v47, %v1208_v47  ;;  %v3696_v47 = vld [vmem:[%s4657_s4 + $0x74] ss:$8 sps:$4 sm:$0xff]  }
 0x132   : > { %v1210_v21 = vpop.f32.mrf.mxu1  ;;  %3465 = vmatpush3.bf16.xpose.msra.mxu1 %v1270_v19  ;;  %1923 = vmatprep.subr.bf16.mxu0 %v3696_v47  ;;  %v3750_v47 = vld [vmem:[%s4661_s8 + $0xc4] ss:$16 sps:$4 sm:$0xff]  }
 0x133   : > { %3470 = vmatprep.subr.bf16.mxu1 %v4037_v3  ;;  %v1169_v23 = vpop.f32.mrf.mxu0  ;;  %1924 = vmatpush1.bf16.msra.mxu0 %v3694_v46  ;;  %v3747_v46 = vld [vmem:[%s4661_s8 + $0xec] ss:$16 sps:$4 sm:$0xff]  }
 0x134   : > { %1925 = vmatprep.subr.bf16.mxu0 %v3699_v48  ;;  %v3753_v48 = vld [vmem:[%s4661_s8 + $0xcc] ss:$16 sps:$4 sm:$0xff]  }
 0x135   : > { %1374 = vrot.lane.b32.xlu1 %v1253_v20, %s4039_s23 }
 0x139   : > { %3467 = vmatmul.mubr.msk.bf16.vlgmr.msra.gmra.mxu1 %vm1265_vm1, %v1253_v20 }
 0x13a   : > { %3472 = vmatprep.mubr.msk.bf16.mxu1 %vm4038_vm0, %v4037_v3 }
 0x16d   : > { %v1246_v1 = vpop.f32.mrf.mxu0 }
 0x16e   : > { %v1247_v2 = vadd.f32 %v1246_v1, %v632_v0 }
 0x16f   : > { %v1248_v16 = vpop.f32.mrf.mxu0 }
 0x170   : > { %v1257_v4 = vpack.c.bf16 %v1247_v2, %v1247_v2 }
 0x171   : > { %v1250_v17 = vpop.f32.mrf.mxu0 }
 0x172   : > { %v1330_v10 = vsel %vm1328_vm3, %v1257_v4, 0 }
 0x173   : > { %3471 = vmatpush3.bf16.msra.mxu1 %v1330_v10  ;;  %v1251_v19 = vpop.f32.mrf.mxu0 }
 0x174   : > { %3476 = vmatprep.subr.bf16.mxu1 %v4037_v3 }
 0x1a3   : > { %v1378_v23 = vpop.permute.xlu1 %1377 }
 0x1a4   : > { %v1383_v25 = vsel %vm1265_vm1, %v1378_v23, 0 }
 0x1a7   : > { %v1375_v26 = vpop.permute.xlu1 %1374 }
 0x1f9   : > { %v1306_v57 = vpop.f32.mrf.mxu1 }
 0x1fa   : > { %v1307_v58 = vadd.f32 %v4218_v56, %v1306_v57  ;;  %v1496_v57 = vsel %vm1265_vm1, %v1256_v51, 0 }
 0x1fb   : > { %v3468_v59 = vpop.f32.mrf.mxu1 }
 0x1fc   : > { %v1313_v60 = vsel %vm1312_vm2, %v1307_v58, -inf }
 0x1fd   : > { %1314 = vmax.xlane.f32.xlu0 %v1313_v60  ;;  %v1309_v61 = vpop.f32.mrf.mxu1  ;;  %v1254_v60 = vpack.c.bf16 %v1167_v13, %v1167_v13  ;;  %v3709_v13 = vld [vmem:[%s4657_s4 + $0x20] ss:$8 sps:$4 sm:$0xff]  }
 0x1ff   : > { %v3469_v62 = vpop.f32.mrf.mxu1 }
 0x286   : > { %v1315_v9 = vpop.xlane.xlu0 %1314 }
 0x287   : > { %v1316_v11 = vsub.f32 %v1307_v58, %v1315_v9  ;;  %v1249_v58 = vadd.f32 %v1248_v16, %v636_v52  ;;  %v3700_v52 = vld [vmem:[%s4657_s4 + $0x50] ss:$8 sps:$4 sm:$0xff]  }
 0x289   : > { %v1317_v12 = vmul.f32 1.442695, %v1316_v11  ;;  %v1258_v59 = vpack.c.bf16 %v1249_v58, %v1249_v58  ;;  %v3711_v58 = vld [vmem:[%s4657_s4 + $0x24] ss:$8 sps:$4 sm:$0xff]  }
 0x28b   : > { %3934 = vpow2.f32 %v1317_v12  ;;  %v1554_v61 = vsel %vm1328_vm3, %v1258_v59, 0 }
 0x298   : > { %v3935_v14 = vpop.eup %3934 }
 0x299   : > { %v1319_v15 = vsel %vm1312_vm2, %v3935_v14, 0.0 }
 0x29a   : > { %1320 = vadd.xlane.f32.xlu0 %v1319_v15 }
 0x323   : > { %v1321_v20 = vpop.xlane.xlu0 %1320 }
 0x324   : > { %3936 = vrcp.f32 %v1321_v20 }
 0x331   : > { %v3937_v21 = vpop.eup %3936 }
 0x332   : > { %v1323_v22 = vmul.f32 %v3937_v21, %v3935_v14 }
 0x334   : > { %v1324_v24 = vpack.c.bf16 %v1323_v22, %v1323_v22 }
 0x336   : > { %3473 = vmatmul.mubr.msk.bf16.vlgmr.msra.gmra.mxu1 %vm1312_vm2, %v1324_v24 }
 0x337   : > { %3477 = vmatpush3.bf16.xpose.msra.mxu1 %v1383_v25  ;;  %3478 = vmatprep.mubr.msk.bf16.mxu1 %vm4038_vm0, %v4037_v3 }
 0x338   : > { %3482 = vmatprep.subr.bf16.mxu1 %v4037_v3 }
 0x33e   : > { %3479 = vmatmul.mubr.msk.bf16.vlgmr.msra.gmra.mxu1 %vm1265_vm1, %v1375_v26 }
 0x33f   : > { %3484 = vmatprep.mubr.msk.bf16.mxu1 %vm4038_vm0, %v4037_v3 }
 0x3f6   : > { %v1366_v27 = vpop.f32.mrf.mxu1 }
 0x3f7   : > { %1372 = vst.msk [vmem:[#allocation2] sm:$0xff] %vm1265_vm1, %v1366_v27 }
 0x3f8   : > { %v3474_v28 = vpop.f32.mrf.mxu1 }
 0x3fa   : > { %v1369_v29 = vpop.f32.mrf.mxu1 }
 0x3fc   : > { %v3475_v30 = vpop.f32.mrf.mxu1 }
 0x3fe   : > { %v1419_v31 = vpop.f32.mrf.mxu1 }
 0x3ff   : > { %v1420_v32 = vadd.f32 %v4218_v56, %v1419_v31 }
 0x400   : > { %v3480_v33 = vpop.f32.mrf.mxu1 }
 0x401   : > { %v1425_v34 = vsel %vm1312_vm2, %v1420_v32, -inf }
 0x402   : > { %1426 = vmax.xlane.f32.xlu0 %v1425_v34  ;;  %v1422_v35 = vpop.f32.mrf.mxu1 }
 0x404   : > { %v3481_v36 = vpop.f32.mrf.mxu1 }
 0x418   : > { %1438 = vrot.lane.b32.xlu0 %v1257_v4, %s4039_s23 }
 0x48b   : > { %v1427_v37 = vpop.xlane.xlu0 %1426 }
 0x48c   : > { %v1428_v38 = vsub.f32 %v1420_v32, %v1427_v37 }
 0x48e   : > { %v1429_v39 = vmul.f32 1.442695, %v1428_v38 }
 0x48f   : > { %v1439_v40 = vpop.permute.xlu0 %1438 }
 0x490   : > { %3938 = vpow2.f32 %v1429_v39  ;;  %v1444_v41 = vsel %vm1328_vm3, %v1439_v40, 0 }
 0x491   : > { %3483 = vmatpush3.bf16.msra.mxu1 %v1444_v41 }
 0x492   : > { %3488 = vmatprep.subr.bf16.mxu1 %v4037_v3 }
 0x49d   : > { %v3939_v42 = vpop.eup %3938 }
 0x49e   : > { %v1431_v43 = vsel %vm1312_vm2, %v3939_v42, 0.0 }
 0x49f   : > { %1432 = vadd.xlane.f32.xlu1 %v1431_v43 }
 0x528   : > { %v1433_v44 = vpop.xlane.xlu1 %1432 }
 0x529   : > { %3940 = vrcp.f32 %v1433_v44 }
 0x536   : > { %v3941_v50 = vpop.eup %3940 }
 0x537   : > { %v1435_v53 = vmul.f32 %v3941_v50, %v3939_v42  ;;  %v3697_v50 = vld [vmem:[%s4657_s4 + $0x60] ss:$8 sps:$4 sm:$0xff]  }
 0x538   : > { %1926 = vmatpush1.bf16.msra.mxu0 %v3697_v50  ;;  %v3748_v50 = vld [vmem:[%s4661_s8 + $0xc0] ss:$16 sps:$4 sm:$0xff]  }
 0x539   : > { %v1436_v55 = vpack.c.bf16 %v1435_v53, %v1435_v53  ;;  %v3705_v53 = vld [vmem:[%s4657_s4 + $0x44] ss:$8 sps:$4 sm:$0xff]  }
 0x53b   : > { %3485 = vmatmul.mubr.msk.bf16.vlgmr.msra.gmra.mxu1 %vm1312_vm2, %v1436_v55  ;;  %v3708_v55 = vld [vmem:[%s4657_s4 + $0x34] ss:$8 sps:$4 sm:$0xff]  }
 0x53c   : > { %3489 = vmatpush3.bf16.xpose.msra.mxu1 %v1496_v57  ;;  %3490 = vmatprep.mubr.msk.bf16.mxu1 %vm4038_vm0, %v4037_v3  ;;  %v3706_v57 = vld [vmem:[%s4657_s4 + $0x30] ss:$8 sps:$4 sm:$0xff]  }
 0x53d   : > { %3494 = vmatprep.subr.bf16.mxu1 %v4037_v3 }
 0x543   : > { %3491 = vmatmul.mubr.msk.bf16.vlgmr.msra.gmra.mxu1 %vm1265_vm1, %v1254_v60 }
 0x544   : > { %3495 = vmatpush3.bf16.msra.mxu1 %v1554_v61  ;;  %3496 = vmatprep.mubr.msk.bf16.mxu1 %vm4038_vm0, %v4037_v3  ;;  %v3717_v61 = vld [vmem:[%s4657_s4 + $0x4] ss:$8 sps:$4 sm:$0xff]  }
 0x545   : > { %3500 = vmatprep.subr.bf16.mxu1 %v4037_v3 }
 0x5fb   : > { %v1480_v7 = vpop.f32.mrf.mxu1 }
 0x5fd   : > { %v3486_v62 = vpop.f32.mrf.mxu1 }
 0x5fe   : > { %v3720_v62 = vld [vmem:[%s4657_s4 + $0xf4] ss:$8 sps:$4 sm:$0xff]  }
 0x5ff   : > { %v1483_v63 = vpop.f32.mrf.mxu1 }
 0x600   : > { %v3718_v63 = vld [vmem:[%s4657_s4 + $0xf0] ss:$8 sps:$4 sm:$0xff]  }
 0x601   : > { %v3487_v0 = vpop.f32.mrf.mxu1 }
 0x602   : > { %v3723_v0 = vld [vmem:[%s4657_s4 + $0xe4] ss:$8 sps:$4 sm:$0xff]  }
 0x603   : > { %v1532_v1 = vpop.f32.mrf.mxu1 }
 0x604   : > { %v1533_v18 = vadd.f32 %v4218_v56, %v1532_v1  ;;  %v3721_v1 = vld [vmem:[%s4657_s4 + $0xe0] ss:$8 sps:$4 sm:$0xff]  }
 0x605   : > { %v3492_v2 = vpop.f32.mrf.mxu1 }
 0x606   : > { %v1538_v4 = vsel %vm1312_vm2, %v1533_v18, -inf  ;;  %v3724_v2 = vld [vmem:[%s4657_s4 + $0xd0] ss:$8 sps:$4 sm:$0xff]  }
 0x607   : > { %1539 = vmax.xlane.f32.xlu0 %v1538_v4  ;;  %v1535_v9 = vpop.f32.mrf.mxu1  ;;  %v3729_v4 = vld [vmem:[%s4657_s4 + $0xc4] ss:$8 sps:$4 sm:$0xff]  }
 0x608   : > { %v3727_v9 = vld [vmem:[%s4657_s4 + $0xc0] ss:$8 sps:$4 sm:$0xff]  }
 0x609   : > { %v3493_v10 = vpop.f32.mrf.mxu1 }
 0x60a   : > { %v3732_v10 = vld [vmem:[%s4657_s4 + $0xb4] ss:$8 sps:$4 sm:$0xff]  }
 0x61d   : > { %1598 = vrot.lane.b32.xlu0 %v1254_v60, %s4039_s23  ;;  %v3712_v60 = vld [vmem:[%s4657_s4 + $0x10] ss:$8 sps:$4 sm:$0xff]  }
 0x690   : > { %v1540_v11 = vpop.xlane.xlu0 %1539 }
 0x691   : > { %v1541_v12 = vsub.f32 %v1533_v18, %v1540_v11  ;;  %v3726_v18 = vld [vmem:[%s4657_s4 + $0xd4] ss:$8 sps:$4 sm:$0xff]   ;;  %v3730_v11 = vld [vmem:[%s4657_s4 + $0xb0] ss:$8 sps:$4 sm:$0xff]  }
 0x693   : > { %v1542_v14 = vmul.f32 1.442695, %v1541_v12  ;;  %v3735_v12 = vld [vmem:[%s4657_s4 + $0xa4] ss:$8 sps:$4 sm:$0xff]  }
 0x694   : > { %v1599_v24 = vpop.permute.xlu0 %1598 }
 0x695   : > { %3942 = vpow2.f32 %v1542_v14  ;;  %v3733_v14 = vld [vmem:[%s4657_s4 + $0xa0] ss:$8 sps:$4 sm:$0xff]  }
 0x6a2   : > { %v3943_v15 = vpop.eup %3942 }
 0x6a3   : > { %v1544_v16 = vsel %vm1312_vm2, %v3943_v15, 0.0 }
 0x6a4   : > { %1545 = vadd.xlane.f32.xlu1 %v1544_v16  ;;  %v3738_v16 = vld [vmem:[%s4657_s4 + $0x94] ss:$8 sps:$4 sm:$0xff]  }
 0x6b5   : > { %1601 = vrot.lane.b32.xlu1 %v1256_v51, %s4039_s23  ;;  %v3702_v51 = vld [vmem:[%s4657_s4 + $0x54] ss:$8 sps:$4 sm:$0xff]  }
 0x6b6   : > { %1927 = vmatprep.subr.bf16.mxu0 %v3702_v51  ;;  %v3751_v51 = vld [vmem:[%s4661_s8 + $0xc8] ss:$16 sps:$4 sm:$0xff]  }
 0x6b7   : > { %1928 = vmatpush1.bf16.msra.mxu0 %v3700_v52  ;;  %v3756_v52 = vld [vmem:[%s4661_s8 + $0xa4] ss:$16 sps:$4 sm:$0xff]  }
 0x6b8   : > { %1929 = vmatprep.subr.bf16.mxu0 %v3705_v53  ;;  %v3759_v53 = vld [vmem:[%s4661_s8 + $0xac] ss:$16 sps:$4 sm:$0xff]  }
 0x6bb   : > { %1930 = vmatpush1.bf16.msra.mxu0 %v3703_v54  ;;  %v3754_v54 = vld [vmem:[%s4661_s8 + $0xa0] ss:$16 sps:$4 sm:$0xff]  }
 0x6bc   : > { %1931 = vmatprep.subr.bf16.mxu0 %v3708_v55  ;;  %v3757_v55 = vld [vmem:[%s4661_s8 + $0xa8] ss:$16 sps:$4 sm:$0xff]  }
 0x6bf   : > { %1932 = vmatpush1.bf16.msra.mxu0 %v3706_v57  ;;  %v3762_v57 = vld [vmem:[%s4661_s8 + $0x84] ss:$16 sps:$4 sm:$0xff]  }
 0x6c0   : > { %1933 = vmatprep.subr.bf16.mxu0 %v3711_v58  ;;  %v3765_v58 = vld [vmem:[%s4661_s8 + $0x8c] ss:$16 sps:$4 sm:$0xff]  }
 0x6c3   : > { %1934 = vmatpush1.bf16.msra.mxu0 %v3709_v13  ;;  %v3760_v13 = vld [vmem:[%s4661_s8 + $0x80] ss:$16 sps:$4 sm:$0xff]  }
 0x72d   : > { %v1546_v17 = vpop.xlane.xlu1 %1545 }
 0x72e   : > { %3944 = vrcp.f32 %v1546_v17  ;;  %v3741_v17 = vld [vmem:[%s4657_s4 + $0x84] ss:$8 sps:$4 sm:$0xff]  }
 0x731   : > { %v1602_v21 = vpop.permute.xlu1 %1601 }
 0x732   : > { %v1607_v23 = vsel %vm1265_vm1, %v1602_v21, 0 }
 0x73b   : > { %v3945_v19 = vpop.eup %3944 }
 0x73c   : > { %v1548_v20 = vmul.f32 %v3945_v19, %v3943_v15  ;;  %v3736_v15 = vld [vmem:[%s4657_s4 + $0x90] ss:$8 sps:$4 sm:$0xff]   ;;  %v3739_v19 = vld [vmem:[%s4657_s4 + $0x80] ss:$8 sps:$4 sm:$0xff]  }
 0x73e   : > { %v1549_v22 = vpack.c.bf16 %v1548_v20, %v1548_v20 }
 0x740   : > { %3497 = vmatmul.mubr.msk.bf16.vlgmr.msra.gmra.mxu1 %vm1312_vm2, %v1549_v22 }
 0x741   : > { %3501 = vmatpush3.bf16.xpose.msra.mxu1 %v1607_v23  ;;  %3502 = vmatprep.mubr.msk.bf16.mxu1 %vm4038_vm0, %v4037_v3 }
 0x742   : > { %3506 = vmatprep.subr.bf16.mxu1 %v4037_v3 }
 0x748   : > { %3503 = vmatmul.mubr.msk.bf16.vlgmr.msra.gmra.mxu1 %vm1265_vm1, %v1599_v24 }
 0x749   : > { %3508 = vmatprep.mubr.msk.bf16.mxu1 %vm4038_vm0, %v4037_v3 }
 0x800   : > { %v1590_v25 = vpop.f32.mrf.mxu1 }
 0x801   : > { %1596 = vst.msk [vmem:[#allocation2 + $0x8] sm:$0xff] %vm1265_vm1, %v1590_v25 }
 0x802   : > { %v3498_v26 = vpop.f32.mrf.mxu1 }
 0x804   : > { %v1593_v27 = vpop.f32.mrf.mxu1 }
 0x806   : > { %v3499_v28 = vpop.f32.mrf.mxu1 }
 0x808   : > { %v1643_v29 = vpop.f32.mrf.mxu1 }
 0x809   : > { %v1644_v30 = vadd.f32 %v4218_v56, %v1643_v29  ;;  %v1751_v29 = vld [vmem:[%s4658_s5] sm:$0x3] }
 0x80a   : > { %v3504_v31 = vpop.f32.mrf.mxu1 }
 0x80b   : > { %v1649_v32 = vsel %vm1312_vm2, %v1644_v30, -inf  ;;  %v1760_v31 = vrot.slane %v1751_v29, %v4249_v49 }
 0x80c   : > { %1650 = vmax.xlane.f32.xlu1 %v1649_v32  ;;  %v1646_v33 = vpop.f32.mrf.mxu1 }
 0x80e   : > { %v3505_v34 = vpop.f32.mrf.mxu1 }
 0x80f   : > { %v3962_v34 = vld [vmem:[%s4176_s20] sm:$0xff] }
 0x81d   : > { %1662 = vrot.lane.b32.xlu1 %v1258_v59, %s4039_s23  ;;  %v3714_v59 = vld [vmem:[%s4657_s4 + $0x14] ss:$8 sps:$4 sm:$0xff]  }
 0x81e   : > { %1935 = vmatprep.subr.bf16.mxu0 %v3714_v59  ;;  %v3763_v59 = vld [vmem:[%s4661_s8 + $0x88] ss:$16 sps:$4 sm:$0xff]  }
 0x81f   : > { %1936 = vmatpush1.bf16.msra.mxu0 %v3712_v60  ;;  %v3768_v60 = vld [vmem:[%s4661_s8 + $0x64] ss:$16 sps:$4 sm:$0xff]  }
 0x820   : > { %1937 = vmatprep.subr.bf16.mxu0 %v3717_v61  ;;  %v3771_v61 = vld [vmem:[%s4661_s8 + $0x6c] ss:$16 sps:$4 sm:$0xff]  }
 0x821   : > { %1487 = vrot.lane.b32.xlu1 %v1480_v7, %s4039_s23  ;;  %v3715_v7 = vld [vmem:[%s4657_s4] ss:$8 sps:$4 sm:$0xff]  }
 0x823   : > { %1938 = vmatpush1.bf16.msra.mxu0 %v3715_v7  ;;  %v3766_v7 = vld [vmem:[%s4661_s8 + $0x60] ss:$16 sps:$4 sm:$0xff]  }
 0x824   : > { %1939 = vmatprep.subr.bf16.mxu0 %v3720_v62  ;;  %v3769_v62 = vld [vmem:[%s4661_s8 + $0x68] ss:$16 sps:$4 sm:$0xff]  }
 0x827   : > { %1940 = vmatpush2.bf16.msra.mxu0 %v3718_v63  ;;  %v3774_v63 = vld [vmem:[%s4661_s8 + $0x44] ss:$16 sps:$4 sm:$0xff]  }
 0x828   : > { %1941 = vmatprep.subr.bf16.mxu0 %v3723_v0  ;;  %v3777_v0 = vld [vmem:[%s4661_s8 + $0x4c] ss:$16 sps:$4 sm:$0xff]  }
 0x82b   : > { %1942 = vmatpush2.bf16.msra.mxu0 %v3721_v1  ;;  %v3772_v1 = vld [vmem:[%s4661_s8 + $0x40] ss:$16 sps:$4 sm:$0xff]  }
 0x82c   : > { %1943 = vmatprep.subr.bf16.mxu0 %v3726_v18  ;;  %v3775_v18 = vld [vmem:[%s4661_s8 + $0x48] ss:$16 sps:$4 sm:$0xff]  }
 0x82f   : > { %1944 = vmatpush2.bf16.msra.mxu0 %v3724_v2  ;;  %v3780_v2 = vld [vmem:[%s4661_s8 + $0x24] ss:$16 sps:$4 sm:$0xff]  }
 0x830   : > { %1945 = vmatprep.subr.bf16.mxu0 %v3729_v4  ;;  %v3783_v4 = vld [vmem:[%s4661_s8 + $0x2c] ss:$16 sps:$4 sm:$0xff]  }
 0x833   : > { %1946 = vmatpush2.bf16.msra.mxu0 %v3727_v9  ;;  %v3778_v9 = vld [vmem:[%s4661_s8 + $0x20] ss:$16 sps:$4 sm:$0xff]  }
 0x834   : > { %1947 = vmatprep.subr.bf16.mxu0 %v3732_v10  ;;  %v3781_v10 = vld [vmem:[%s4661_s8 + $0x28] ss:$16 sps:$4 sm:$0xff]  }
 0x837   : > { %1948 = vmatpush2.bf16.msra.mxu0 %v3730_v11  ;;  %v3786_v11 = vld [vmem:[%s4661_s8 + $0x4] ss:$16 sps:$4 sm:$0xff]  }
 0x838   : > { %1949 = vmatprep.subr.bf16.mxu0 %v3735_v12  ;;  %v3789_v12 = vld [vmem:[%s4661_s8 + $0xc] ss:$16 sps:$4 sm:$0xff]  }
 0x83b   : > { %1950 = vmatpush2.bf16.msra.mxu0 %v3733_v14  ;;  %v3784_v14 = vld [vmem:[%s4661_s8] ss:$16 sps:$4 sm:$0xff]  }
 0x83c   : > { %1951 = vmatprep.subr.bf16.mxu0 %v3738_v16  ;;  %v3792_v16 = vld [vmem:[%s4661_s8 + $0x1e4] ss:$16 sps:$4 sm:$0xff]  }
 0x83f   : > { %1952 = vmatpush2.bf16.msra.mxu0 %v3736_v15  ;;  %v3787_v15 = vld [vmem:[%s4661_s8 + $0x8] ss:$16 sps:$4 sm:$0xff]  }
 0x840   : > { %1953 = vmatprep.subr.bf16.mxu0 %v3741_v17  ;;  %v3795_v17 = vld [vmem:[%s4661_s8 + $0x1ec] ss:$16 sps:$4 sm:$0xff]  }
 0x843   : > { %1954 = vmatpush2.bf16.msra.mxu0 %v3739_v19  ;;  %v3790_v19 = vld [vmem:[%s4661_s8 + $0x1e0] ss:$16 sps:$4 sm:$0xff]  }
 0x844   : > { %2462 = vmatprep.subr.bf16.mxu0 %v3747_v46  ;;  %v3823_v46 = vld [vmem:[%s4661_s8 + $0x148] ss:$16 sps:$4 sm:$0xff]  }
 0x895   : > { %v1651_v3 = vpop.xlane.xlu1 %1650 }
 0x896   : > { %v1652_v35 = vsub.f32 %v1644_v30, %v1651_v3  ;;  %v1756_v30 = vrot.slane %v1751_v29, %v4195_v8  ;;  %v1964_v3 = vunpack.c.l.bf16 %v3962_v34 }
 0x898   : > { %v1653_v36 = vmul.f32 1.442695, %v1652_v35  ;;  %v1965_v35 = vunpack.c.h.bf16 %v3962_v34  ;;  %v3802_v34 = vld [vmem:[%s4661_s8 + $0x1a0] ss:$16 sps:$4 sm:$0xff]  }
 0x899   : > { %v1663_v37 = vpop.permute.xlu1 %1662 }
 0x89a   : > { %3946 = vpow2.f32 %v1653_v36  ;;  %v1668_v38 = vsel %vm1328_vm3, %v1663_v37, 0 }
 0x89b   : > { %3507 = vmatpush3.bf16.msra.mxu1 %v1668_v38 }
 0x89d   : > { %v1488_v56 = vpop.permute.xlu1 %1487 }
 0x89e   : > { %1491 = vst.msk [vmem:[#allocation2] sm:$0xff] %vm1490_vm4, %v1488_v56 }
 0x8a5   : > { %v1715_v25 = vld [vmem:[#allocation2] sm:$0xff] }
 0x8a6   : > { %v1717_v28 = vpack.c.bf16 %v1715_v25, %v1715_v25 }
 0x8a7   : > { %v3947_v39 = vpop.eup %3946 }
 0x8a8   : > { %v1655_v40 = vsel %vm1312_vm2, %v3947_v39, 0.0 }
 0x8a9   : > { %1656 = vadd.xlane.f32.xlu0 %v1655_v40 }
 0x932   : > { %v1657_v41 = vpop.xlane.xlu0 %1656 }
 0x933   : > { %3948 = vrcp.f32 %v1657_v41 }
 0x940   : > { %v3949_v42 = vpop.eup %3948 }
 0x941   : > { %v1659_v43 = vmul.f32 %v3949_v42, %v3947_v39  ;;  %v3742_v42 = vld [vmem:[%s4661_s8 + $0xe0] ss:$16 sps:$4 sm:$0xff]  }
 0x943   : > { %v1660_v44 = vpack.c.bf16 %v1659_v43, %v1659_v43  ;;  %v3744_v43 = vld [vmem:[%s4661_s8 + $0xe4] ss:$16 sps:$4 sm:$0xff]  }
 0x944   : > { %2421 = vmatprep.subr.bf16.mxu1 %v3744_v43  ;;  %v3825_v43 = vld [vmem:[%s4661_s8 + $0x14c] ss:$16 sps:$4 sm:$0xff]  }
 0x945   : > { %3509 = vmatmul.mubr.msk.bf16.vlgmr.msra.gmra.mxu1 %vm1312_vm2, %v1660_v44  ;;  %v3745_v44 = vld [vmem:[%s4661_s8 + $0xe8] ss:$16 sps:$4 sm:$0xff]  }
 0x946   : > { %2422 = vmatpush1.bf16.msra.mxu1 %v3742_v42  ;;  %v3822_v42 = vld [vmem:[%s4661_s8 + $0x144] ss:$16 sps:$4 sm:$0xff]  }
 0x947   : > { %2423 = vmatprep.subr.bf16.mxu1 %v3750_v47  ;;  %v3828_v47 = vld [vmem:[%s4661_s8 + $0x124] ss:$16 sps:$4 sm:$0xff]  }
 0x94a   : > { %2424 = vmatpush1.bf16.msra.mxu1 %v3748_v50  ;;  %v3826_v50 = vld [vmem:[%s4661_s8 + $0x120] ss:$16 sps:$4 sm:$0xff]  }
 0x94b   : > { %2425 = vmatprep.subr.bf16.mxu1 %v3756_v52  ;;  %v3834_v52 = vld [vmem:[%s4661_s8 + $0x104] ss:$16 sps:$4 sm:$0xff]  }
 0x94e   : > { %2426 = vmatpush1.bf16.msra.mxu1 %v3754_v54  ;;  %v3832_v54 = vld [vmem:[%s4661_s8 + $0x100] ss:$16 sps:$4 sm:$0xff]  }
 0x94f   : > { %2427 = vmatprep.subr.bf16.mxu1 %v3762_v57  ;;  %v3840_v57 = vld [vmem:[#allocation5 + $0x74] ss:$8 sps:$4 sm:$0xff]  }
 0x952   : > { %2428 = vmatpush1.bf16.msra.mxu1 %v3760_v13 }
 0x953   : > { %2429 = vmatprep.subr.bf16.mxu1 %v3768_v60 }
 0x956   : > { %2430 = vmatpush1.bf16.msra.mxu1 %v3766_v7  ;;  %v1969_v7 = vld [vmem:[%s4660_s7] sm:$0x3] }
 0x957   : > { %2431 = vmatprep.subr.bf16.mxu1 %v3774_v63 }
 0x95a   : > { %2432 = vmatpush1.bf16.msra.mxu1 %v3772_v1 }
 0x95b   : > { %2433 = vmatprep.subr.bf16.mxu1 %v3780_v2  ;;  %v2008_v2 = vrot.slane %v1969_v7, %v4249_v49 }
 0x95e   : > { %2434 = vmatpush1.bf16.msra.mxu1 %v3778_v9 }
 0x95f   : > { %2435 = vmatprep.subr.bf16.mxu1 %v3786_v11 }
 0x962   : > { %2436 = vmatpush1.bf16.msra.mxu1 %v3784_v14 }
 0x963   : > { %2437 = vmatprep.subr.bf16.mxu1 %v3792_v16  ;;  %v3838_v16 = vld [vmem:[#allocation5 + $0x70] ss:$8 sps:$4 sm:$0xff]  }
 0x966   : > { %2438 = vmatpush2.bf16.msra.mxu1 %v3790_v19  ;;  %v3846_v19 = vld [vmem:[#allocation5 + $0x64] ss:$8 sps:$4 sm:$0xff]  }
 0xa05   : > { %v1704_v20 = vpop.f32.mrf.mxu1 }
 0xa06   : > { %1711 = vrot.lane.b32.xlu0 %v1704_v20, %s4039_s23  ;;  %v3793_v20 = vld [vmem:[%s4661_s8 + $0x1e8] ss:$16 sps:$4 sm:$0xff]  }
 0xa07   : > { %v3510_v21 = vpop.f32.mrf.mxu1 }
 0xa08   : > { %v3798_v21 = vld [vmem:[%s4661_s8 + $0x1c4] ss:$16 sps:$4 sm:$0xff]  }
 0xa09   : > { %v1707_v22 = vpop.f32.mrf.mxu1  ;;  %2439 = vmatprep.subr.bf16.mxu1 %v3798_v21  ;;  %v3844_v21 = vld [vmem:[#allocation5 + $0x60] ss:$8 sps:$4 sm:$0xff]  }
 0xa0a   : > { %v3801_v22 = vld [vmem:[%s4661_s8 + $0x1cc] ss:$16 sps:$4 sm:$0xff]  }
 0xa0b   : > { %v3511_v23 = vpop.f32.mrf.mxu1 }
 0xa0c   : > { %v3796_v23 = vld [vmem:[%s4661_s8 + $0x1c0] ss:$16 sps:$4 sm:$0xff]  }
 0xa0d   : > { %2440 = vmatpush2.bf16.msra.mxu1 %v3796_v23  ;;  %v3852_v23 = vld [vmem:[#allocation5 + $0x54] ss:$8 sps:$4 sm:$0xff]  }
 0xa78   : > { %v1712_v24 = vpop.permute.xlu0 %1711 }
 0xa79   : > { %1714 = vst.msk [vmem:[#allocation2 + $0x8] sm:$0xff] %vm1490_vm4, %v1712_v24  ;;  %v3799_v24 = vld [vmem:[%s4661_s8 + $0x1c8] ss:$16 sps:$4 sm:$0xff]  }
 0xa80   : > { %v1716_v26 = vld [vmem:[#allocation2 + $0x8] sm:$0xff] }
 0xa81   : > { %v1718_v27 = vpack.c.bf16 %v1716_v26, %v1716_v26 }
 0xa83   : > { %1955 = vmatprep.mubr.bf16.mxu0 %v1718_v27 }
 0xa84   : > { %1956 = vmatmul.mubr.bf16.vlgmr.msra.gmra.mxu0 %v1717_v28 }
 0xa85   : > { %2463 = vmatpush1.bf16.msra.mxu0 %v3745_v44  ;;  %v3820_v44 = vld [vmem:[%s4661_s8 + $0x140] ss:$16 sps:$4 sm:$0xff]  }
 0xa86   : > { %2464 = vmatprep.subr.bf16.mxu0 %v3753_v48  ;;  %v3831_v48 = vld [vmem:[%s4661_s8 + $0x12c] ss:$16 sps:$4 sm:$0xff]  }
 0xa89   : > { %2465 = vmatpush1.bf16.msra.mxu0 %v3751_v51  ;;  %v3829_v51 = vld [vmem:[%s4661_s8 + $0x128] ss:$16 sps:$4 sm:$0xff]  }
 0xa8a   : > { %2466 = vmatprep.subr.bf16.mxu0 %v3759_v53  ;;  %v3837_v53 = vld [vmem:[%s4661_s8 + $0x10c] ss:$16 sps:$4 sm:$0xff]  }
 0xa8d   : > { %2467 = vmatpush1.bf16.msra.mxu0 %v3757_v55  ;;  %v3835_v55 = vld [vmem:[%s4661_s8 + $0x108] ss:$16 sps:$4 sm:$0xff]  }
 0xa8e   : > { %2468 = vmatprep.subr.bf16.mxu0 %v3765_v58  ;;  %v3843_v58 = vld [vmem:[#allocation5 + $0x174] ss:$8 sps:$4 sm:$0xff]  }
 0xa91   : > { %2469 = vmatpush1.bf16.msra.mxu0 %v3763_v59 }
 0xa92   : > { %2470 = vmatprep.subr.bf16.mxu0 %v3771_v61  ;;  %v1968_v61 = vld [vmem:[%s4659_s6] sm:$0x3] }
 0xa93   : > { %v1995_v63 = vrot.slane %v1968_v61, %v4249_v49 }
 0xa95   : > { %2471 = vmatpush1.bf16.msra.mxu0 %v3769_v62  ;;  %v1991_v62 = vrot.slane %v1968_v61, %v4195_v8  ;;  %v3907_v61 = vld [vmem:[#allocation5 + $0x1c0] ss:$8 sps:$4 sm:$0xff]  }
 0xa96   : > { %2472 = vmatprep.subr.bf16.mxu0 %v3777_v0 }
 0xa99   : > { %2473 = vmatpush1.bf16.msra.mxu0 %v3775_v18  ;;  %v2004_v18 = vrot.slane %v1969_v7, %v4195_v8  ;;  %v3909_v7 = vld [vmem:[#allocation5 + $0x1c4] ss:$8 sps:$4 sm:$0xff]  }
 0xa9a   : > { %2474 = vmatprep.subr.bf16.mxu0 %v3783_v4 }
 0xa9d   : > { %2475 = vmatpush1.bf16.msra.mxu0 %v3781_v10 }
 0xa9e   : > { %2476 = vmatprep.subr.bf16.mxu0 %v3789_v12 }
 0xaa1   : > { %2477 = vmatpush1.bf16.msra.mxu0 %v3787_v15 }
 0xaa2   : > { %2478 = vmatprep.subr.bf16.mxu0 %v3795_v17  ;;  %v3841_v17 = vld [vmem:[#allocation5 + $0x170] ss:$8 sps:$4 sm:$0xff]  }
 0xaa5   : > { %2479 = vmatpush2.bf16.msra.mxu0 %v3793_v20  ;;  %v3849_v20 = vld [vmem:[#allocation5 + $0x164] ss:$8 sps:$4 sm:$0xff]  }
 0xaa6   : > { %2480 = vmatprep.subr.bf16.mxu0 %v3801_v22  ;;  %v3847_v22 = vld [vmem:[#allocation5 + $0x160] ss:$8 sps:$4 sm:$0xff]  }
 0xaa9   : > { %2481 = vmatpush2.bf16.msra.mxu0 %v3799_v24  ;;  %v3855_v24 = vld [vmem:[#allocation5 + $0x154] ss:$8 sps:$4 sm:$0xff]  }
 0xb44   : > { %v1957_v32 = vpop.f32.mrf.mxu0 }
 0xb45   : > { %v1958_v33 = vadd.f32 %v1957_v32, %v1756_v30  ;;  %v3804_v32 = vld [vmem:[%s4661_s8 + $0x1a4] ss:$16 sps:$4 sm:$0xff]  }
 0xb46   : > { %v1959_v36 = vpop.f32.mrf.mxu0  ;;  %2441 = vmatprep.subr.bf16.mxu1 %v3804_v32  ;;  %v3867_v32 = vld [vmem:[#allocation5 + $0x134] ss:$8 sps:$4 sm:$0xff]  }
 0xb47   : > { %v1960_v37 = vadd.f32 %v1959_v36, %v1760_v31  ;;  %v4391_v56 = vadd.f32 %v1964_v3, %v1958_v33  ;;  %v3807_v33 = vld [vmem:[%s4661_s8 + $0x1ac] ss:$16 sps:$4 sm:$0xff]   ;;  %v3805_v3 = vld [vmem:[%s4661_s8 + $0x1a8] ss:$16 sps:$4 sm:$0xff]   ;;  %2442 = vmatpush2.bf16.msra.mxu1 %v3802_v34  ;;  %v3808_v36 = vld [vmem:[%s4661_s8 + $0x180] ss:$16 sps:$4 sm:$0xff]  }
 0xb48   : > { %v1961_v38 = vpop.f32.mrf.mxu0  ;;  %2482 = vmatprep.subr.bf16.mxu0 %v3807_v33  ;;  %v3862_v33 = vld [vmem:[#allocation5 + $0x30] ss:$8 sps:$4 sm:$0xff]  }
 0xb49   : > { %v4393_v39 = vadd.f32 %v1965_v35, %v1960_v37  ;;  %v3810_v35 = vld [vmem:[%s4661_s8 + $0x184] ss:$16 sps:$4 sm:$0xff]   ;;  %2483 = vmatpush2.bf16.msra.mxu0 %v3805_v3  ;;  %v3811_v37 = vld [vmem:[%s4661_s8 + $0x188] ss:$16 sps:$4 sm:$0xff]   ;;  %v3813_v38 = vld [vmem:[%s4661_s8 + $0x18c] ss:$16 sps:$4 sm:$0xff]  }
 0xb4a   : > { %v1962_v40 = vpop.f32.mrf.mxu0  ;;  %2443 = vmatprep.subr.bf16.mxu1 %v3810_v35  ;;  %2484 = vmatprep.subr.bf16.mxu0 %v3813_v38  ;;  %v3865_v34 = vld [vmem:[#allocation5 + $0x130] ss:$8 sps:$4 sm:$0xff]   ;;  %v3870_v3 = vld [vmem:[#allocation5 + $0x24] ss:$8 sps:$4 sm:$0xff]   ;;  %v3876_v38 = vld [vmem:[#allocation5 + $0x14] ss:$8 sps:$4 sm:$0xff]  }
 0xb4b   : > { %v1970_v41 = vadd.f32 %v4393_v39, %v4391_v56  ;;  %2444 = vmatpush2.bf16.msra.mxu1 %v3808_v36  ;;  %v3814_v40 = vld [vmem:[%s4661_s8 + $0x160] ss:$16 sps:$4 sm:$0xff]   ;;  %v3873_v35 = vld [vmem:[#allocation5 + $0x124] ss:$8 sps:$4 sm:$0xff]  }
 0xb4c   : > { %v3868_v36 = vld [vmem:[#allocation5 + $0x20] ss:$8 sps:$4 sm:$0xff]  }
 0xb4d   : > { %1971 = vadd.xlane.f32.xlu1 %v1970_v41  ;;  %2485 = vmatpush2.bf16.msra.mxu0 %v3811_v37  ;;  %v3817_v41 = vld [vmem:[%s4661_s8 + $0x168] ss:$16 sps:$4 sm:$0xff]  }
 0xb4e   : > { %v3871_v37 = vld [vmem:[#allocation5 + $0x120] ss:$8 sps:$4 sm:$0xff]  }
 0xbd6   : > { %v1972_v25 = vpop.xlane.xlu1 %1971 }
 0xbd7   : > { %v1974_v26 = vmul.f32 0.00390625, %v1972_v25  ;;  %v3850_v25 = vld [vmem:[#allocation5 + $0x50] ss:$8 sps:$4 sm:$0xff]  }
 0xbd9   : > { %v4518_v27 = vsub.f32 %v4391_v56, %v1974_v26  ;;  %v4521_v28 = vsub.f32 %v4393_v39, %v1974_v26  ;;  %v3816_v56 = vld [vmem:[%s4661_s8 + $0x164] ss:$16 sps:$4 sm:$0xff]   ;;  %v3819_v39 = vld [vmem:[%s4661_s8 + $0x16c] ss:$16 sps:$4 sm:$0xff]   ;;  %v3853_v26 = vld [vmem:[#allocation5 + $0x150] ss:$8 sps:$4 sm:$0xff]  }
 0xbda   : > { %2445 = vmatprep.subr.bf16.mxu1 %v3816_v56  ;;  %2486 = vmatprep.subr.bf16.mxu0 %v3819_v39  ;;  %v3879_v56 = vld [vmem:[#allocation5 + $0x114] ss:$8 sps:$4 sm:$0xff]   ;;  %v3874_v39 = vld [vmem:[#allocation5 + $0x10] ss:$8 sps:$4 sm:$0xff]  }
 0xbdb   : > { %v1977_v29 = vmul.f32 %v4518_v27, %v4518_v27  ;;  %v1978_v30 = vmul.f32 %v4521_v28, %v4521_v28  ;;  %2446 = vmatpush2.bf16.msra.mxu1 %v3814_v40  ;;  %2487 = vmatpush2.bf16.msra.mxu0 %v3817_v41  ;;  %v3877_v40 = vld [vmem:[#allocation5 + $0x110] ss:$8 sps:$4 sm:$0xff]   ;;  %v3882_v41 = vld [vmem:[#allocation5 + $0x4] ss:$8 sps:$4 sm:$0xff]  }
 0xbdc   : > { %2447 = vmatprep.subr.bf16.mxu1 %v3822_v42  ;;  %2488 = vmatprep.subr.bf16.mxu0 %v3825_v43  ;;  %v3885_v42 = vld [vmem:[#allocation5 + $0x104] ss:$8 sps:$4 sm:$0xff]   ;;  %v3880_v43 = vld [vmem:[#allocation5] ss:$8 sps:$4 sm:$0xff]  }
 0xbdd   : > { %v1979_v31 = vadd.f32 %v1978_v30, %v1977_v29  ;;  %v3856_v29 = vld [vmem:[#allocation5 + $0x40] ss:$8 sps:$4 sm:$0xff]  }
 0xbde   : > { %v3859_v30 = vld [vmem:[#allocation5 + $0x140] ss:$8 sps:$4 sm:$0xff]  }
 0xbdf   : > { %1980 = vadd.xlane.f32.xlu0 %v1979_v31  ;;  %2448 = vmatpush2.bf16.msra.mxu1 %v3820_v44  ;;  %v3864_v31 = vld [vmem:[#allocation5 + $0x34] ss:$8 sps:$4 sm:$0xff]   ;;  %v3883_v44 = vld [vmem:[#allocation5 + $0x100] ss:$8 sps:$4 sm:$0xff]  }
 0xbe0   : > { %2489 = vmatpush2.bf16.msra.mxu0 %v3823_v46  ;;  %2449 = vmatprep.subr.bf16.mxu1 %v3828_v47  ;;  %v3888_v46 = vld [vmem:[#allocation5 + $0xf4] ss:$8 sps:$4 sm:$0xff]  }
 0xbe1   : > { %2490 = vmatprep.subr.bf16.mxu0 %v3831_v48  ;;  %v3891_v47 = vld [vmem:[#allocation5 + $0x1f4] ss:$8 sps:$4 sm:$0xff]   ;;  %v3886_v48 = vld [vmem:[#allocation5 + $0xf0] ss:$8 sps:$4 sm:$0xff]  }
 0xbe3   : > { %2450 = vmatpush2.bf16.msra.mxu1 %v3826_v50  ;;  %v3889_v50 = vld [vmem:[#allocation5 + $0x1f0] ss:$8 sps:$4 sm:$0xff]  }
 0xbe4   : > { %2491 = vmatpush2.bf16.msra.mxu0 %v3829_v51  ;;  %2451 = vmatprep.subr.bf16.mxu1 %v3834_v52  ;;  %v3894_v51 = vld [vmem:[#allocation5 + $0xe4] ss:$8 sps:$4 sm:$0xff]  }
 0xbe5   : > { %2492 = vmatprep.subr.bf16.mxu0 %v3837_v53  ;;  %v3897_v52 = vld [vmem:[#allocation5 + $0x1e4] ss:$8 sps:$4 sm:$0xff]   ;;  %v3892_v53 = vld [vmem:[#allocation5 + $0xe0] ss:$8 sps:$4 sm:$0xff]  }
 0xbe7   : > { %2452 = vmatpush2.bf16.msra.mxu1 %v3832_v54  ;;  %v3895_v54 = vld [vmem:[#allocation5 + $0x1e0] ss:$8 sps:$4 sm:$0xff]  }
 0xbe8   : > { %2493 = vmatpush2.bf16.msra.mxu0 %v3835_v55  ;;  %2939 = vmatprep.subr.bf16.mxu1 %v3840_v57  ;;  %v3900_v55 = vld [vmem:[#allocation5 + $0xd4] ss:$8 sps:$4 sm:$0xff]  }
 0xbe9   : > { %2980 = vmatprep.subr.bf16.mxu0 %v3843_v58  ;;  %v3903_v57 = vld [vmem:[#allocation5 + $0x1d4] ss:$8 sps:$4 sm:$0xff]   ;;  %v3898_v58 = vld [vmem:[#allocation5 + $0xd0] ss:$8 sps:$4 sm:$0xff]  }
 0xc68   : > { %v1981_v13 = vpop.xlane.xlu0 %1980 }
 0xc69   : > { %v1982_v59 = vmul.f32 0.00390625, %v1981_v13  ;;  %v3901_v13 = vld [vmem:[#allocation5 + $0x1d0] ss:$8 sps:$4 sm:$0xff]  }
 0xc6b   : > { %v1983_v60 = vadd.f32 1e-12, %v1982_v59  ;;  %v3904_v59 = vld [vmem:[#allocation5 + $0xc0] ss:$8 sps:$4 sm:$0xff]  }
 0xc6d   : > { %3950 = vrsqrt.f32 %v1983_v60  ;;  %v3906_v60 = vld [vmem:[#allocation5 + $0xc4] ss:$8 sps:$4 sm:$0xff]  }
 0xc7a   : > { %v3951_v0 = vpop.eup %3950 }
 0xc7b   : > { %v1986_v1 = vmul.f32 %v3951_v0, %v4521_v28  ;;  %v1985_v4 = vmul.f32 %v3951_v0, %v4518_v27  ;;  %v3858_v27 = vld [vmem:[#allocation5 + $0x44] ss:$8 sps:$4 sm:$0xff]   ;;  %v3910_v0 = vld [vmem:[#allocation5 + $0xb0] ss:$8 sps:$4 sm:$0xff]  }
 0xc7c   : > { %v3861_v28 = vld [vmem:[#allocation5 + $0x144] ss:$8 sps:$4 sm:$0xff]  }
 0xc7d   : > { %v1999_v9 = vmul.f32 %v1995_v63, %v1986_v1  ;;  %v1998_v10 = vmul.f32 %v1991_v62, %v1985_v4  ;;  %v3912_v62 = vld [vmem:[#allocation5 + $0xb4] ss:$8 sps:$4 sm:$0xff]   ;;  %v3913_v1 = vld [vmem:[#allocation5 + $0x1b0] ss:$8 sps:$4 sm:$0xff]   ;;  %v3916_v4 = vld [vmem:[#allocation5 + $0xa0] ss:$8 sps:$4 sm:$0xff]  }
 0xc7e   : > { %v3915_v63 = vld [vmem:[#allocation5 + $0x1b4] ss:$8 sps:$4 sm:$0xff]  }
 0xc7f   : > { %v4611_v11 = vadd.f32 %v2008_v2, %v1999_v9  ;;  %v4613_v12 = vadd.f32 %v2004_v18, %v1998_v10  ;;  %v3918_v18 = vld [vmem:[#allocation5 + $0xa4] ss:$8 sps:$4 sm:$0xff]   ;;  %v3919_v9 = vld [vmem:[#allocation5 + $0x1a0] ss:$8 sps:$4 sm:$0xff]   ;;  %v3924_v10 = vld [vmem:[#allocation5 + $0x94] ss:$8 sps:$4 sm:$0xff]  }
 0xc80   : > { %v3921_v2 = vld [vmem:[#allocation5 + $0x1a4] ss:$8 sps:$4 sm:$0xff]  }
 0xc81   : > { %v2014_v14 = vpack.c.bf16 %v4611_v11, %v4611_v11  ;;  %v2013_v15 = vpack.c.bf16 %v4613_v12, %v4613_v12 }
 0xc83   : > { %2453 = vmatprep.mubr.bf16.mxu1 %v2014_v14  ;;  %2494 = vmatprep.mubr.bf16.mxu0 %v2014_v14  ;;  %v3927_v14 = vld [vmem:[#allocation5 + $0x194] ss:$8 sps:$4 sm:$0xff]  }
 0xc84   : > { %2454 = vmatmul.mubr.bf16.vlgmr.msra.gmra.mxu1 %v2013_v15  ;;  %2495 = vmatmul.mubr.bf16.vlgmr.msra.gmra.mxu0 %v2013_v15  ;;  %v3922_v15 = vld [vmem:[#allocation5 + $0x90] ss:$8 sps:$4 sm:$0xff]  }
 0xc85   : > { %2940 = vmatpush1.bf16.msra.mxu1 %v3838_v16  ;;  %2981 = vmatpush1.bf16.msra.mxu0 %v3841_v17  ;;  %v3925_v16 = vld [vmem:[#allocation5 + $0x190] ss:$8 sps:$4 sm:$0xff]   ;;  %v3930_v17 = vld [vmem:[#allocation5 + $0x84] ss:$8 sps:$4 sm:$0xff]  }
 0xc86   : > { %2941 = vmatprep.subr.bf16.mxu1 %v3846_v19  ;;  %2982 = vmatprep.subr.bf16.mxu0 %v3849_v20  ;;  %v3933_v19 = vld [vmem:[#allocation5 + $0x184] ss:$8 sps:$4 sm:$0xff]   ;;  %v3928_v20 = vld [vmem:[#allocation5 + $0x80] ss:$8 sps:$4 sm:$0xff]  }
 0xc89   : > { %2942 = vmatpush1.bf16.msra.mxu1 %v3844_v21  ;;  %2983 = vmatpush1.bf16.msra.mxu0 %v3847_v22  ;;  %v3931_v21 = vld [vmem:[#allocation5 + $0x180] ss:$8 sps:$4 sm:$0xff]   ;;  %v2079_v22 = vld [vmem:[%s4662_s9] sm:$0xf] }
 0xc8a   : > { %2943 = vmatprep.subr.bf16.mxu1 %v3852_v23  ;;  %2984 = vmatprep.subr.bf16.mxu0 %v3855_v24  ;;  %v2084_v23 = vrot.slane %v2079_v22, %v4195_v8  ;;  %v2092_v24 = vrot.slane %v2079_v22, %v623_v6 }
 0xc8d   : > { %2944 = vmatpush1.bf16.msra.mxu1 %v3850_v25  ;;  %2985 = vmatpush1.bf16.msra.mxu0 %v3853_v26  ;;  %v2088_v25 = vrot.slane %v2079_v22, %v4249_v49  ;;  %v2096_v26 = vrot.slane %v2079_v22, %v627_v45 }
 0xc8e   : > { %2945 = vmatprep.subr.bf16.mxu1 %v3858_v27  ;;  %2986 = vmatprep.subr.bf16.mxu0 %v3861_v28 }
 0xc91   : > { %2946 = vmatpush1.bf16.msra.mxu1 %v3856_v29  ;;  %2987 = vmatpush1.bf16.msra.mxu0 %v3859_v30 }
 0xc92   : > { %2947 = vmatprep.subr.bf16.mxu1 %v3864_v31  ;;  %2988 = vmatprep.subr.bf16.mxu0 %v3867_v32 }
 0xc95   : > { %2948 = vmatpush1.bf16.msra.mxu1 %v3862_v33  ;;  %2989 = vmatpush1.bf16.msra.mxu0 %v3865_v34 }
 0xc96   : > { %2949 = vmatprep.subr.bf16.mxu1 %v3870_v3  ;;  %2990 = vmatprep.subr.bf16.mxu0 %v3873_v35 }
 0xc99   : > { %2950 = vmatpush1.bf16.msra.mxu1 %v3868_v36  ;;  %2991 = vmatpush1.bf16.msra.mxu0 %v3871_v37 }
 0xc9a   : > { %2951 = vmatprep.subr.bf16.mxu1 %v3876_v38  ;;  %2992 = vmatprep.subr.bf16.mxu0 %v3879_v56 }
 0xc9d   : > { %2952 = vmatpush1.bf16.msra.mxu1 %v3874_v39  ;;  %2993 = vmatpush1.bf16.msra.mxu0 %v3877_v40 }
 0xc9e   : > { %2953 = vmatprep.subr.bf16.mxu1 %v3882_v41  ;;  %2994 = vmatprep.subr.bf16.mxu0 %v3885_v42 }
 0xca1   : > { %2954 = vmatpush1.bf16.msra.mxu1 %v3880_v43  ;;  %2995 = vmatpush1.bf16.msra.mxu0 %v3883_v44 }
 0xca2   : > { %2955 = vmatprep.subr.bf16.mxu1 %v3888_v46  ;;  %2996 = vmatprep.subr.bf16.mxu0 %v3891_v47 }
 0xca5   : > { %2956 = vmatpush2.bf16.msra.mxu1 %v3886_v48  ;;  %2997 = vmatpush2.bf16.msra.mxu0 %v3889_v50 }
 0xca6   : > { %2957 = vmatprep.subr.bf16.mxu1 %v3894_v51  ;;  %2998 = vmatprep.subr.bf16.mxu0 %v3897_v52 }
 0xca9   : > { %2958 = vmatpush2.bf16.msra.mxu1 %v3892_v53  ;;  %2999 = vmatpush2.bf16.msra.mxu0 %v3895_v54 }
 0xcaa   : > { %2959 = vmatprep.subr.bf16.mxu1 %v3900_v55  ;;  %3000 = vmatprep.subr.bf16.mxu0 %v3903_v57 }
 0xcad   : > { %2960 = vmatpush2.bf16.msra.mxu1 %v3898_v58  ;;  %3001 = vmatpush2.bf16.msra.mxu0 %v3901_v13 }
 0xcae   : > { %2961 = vmatprep.subr.bf16.mxu1 %v3906_v60  ;;  %3002 = vmatprep.subr.bf16.mxu0 %v3909_v7 }
 0xcb1   : > { %2962 = vmatpush2.bf16.msra.mxu1 %v3904_v59  ;;  %3003 = vmatpush2.bf16.msra.mxu0 %v3907_v61 }
 0xcb2   : > { %2963 = vmatprep.subr.bf16.mxu1 %v3912_v62  ;;  %3004 = vmatprep.subr.bf16.mxu0 %v3915_v63 }
 0xcb5   : > { %2964 = vmatpush2.bf16.msra.mxu1 %v3910_v0  ;;  %3005 = vmatpush2.bf16.msra.mxu0 %v3913_v1 }
 0xcb6   : > { %2965 = vmatprep.subr.bf16.mxu1 %v3918_v18  ;;  %3006 = vmatprep.subr.bf16.mxu0 %v3921_v2 }
 0xcb9   : > { %2966 = vmatpush2.bf16.msra.mxu1 %v3916_v4  ;;  %3007 = vmatpush2.bf16.msra.mxu0 %v3919_v9 }
 0xcba   : > { %2967 = vmatprep.subr.bf16.mxu1 %v3924_v10  ;;  %3008 = vmatprep.subr.bf16.mxu0 %v3927_v14 }
 0xcbd   : > { %2968 = vmatpush2.bf16.msra.mxu1 %v3922_v15  ;;  %3009 = vmatpush2.bf16.msra.mxu0 %v3925_v16 }
 0xcbe   : > { %2969 = vmatprep.subr.bf16.mxu1 %v3930_v17  ;;  %3010 = vmatprep.subr.bf16.mxu0 %v3933_v19  ;;  %v2607_v19 = vld [vmem:[%s4664_s11] sm:$0x3] }
 0xcc1   : > { %2970 = vmatpush2.bf16.msra.mxu1 %v3928_v20  ;;  %3011 = vmatpush2.bf16.msra.mxu0 %v3931_v21  ;;  %v2612_v20 = vrot.slane %v2607_v19, %v4195_v8  ;;  %v2616_v21 = vrot.slane %v2607_v19, %v4249_v49 }
 0xd44   : > { %v2455_v27 = vpop.f32.mrf.mxu1  ;;  %v2496_v28 = vpop.f32.mrf.mxu0 }
 0xd45   : > { %v2456_v29 = vadd.f32 %v2455_v27, %v2084_v23  ;;  %v2497_v30 = vadd.f32 %v2496_v28, %v2092_v24 }
 0xd46   : > { %v2457_v31 = vpop.f32.mrf.mxu1  ;;  %v2498_v32 = vpop.f32.mrf.mxu0 }
 0xd47   : > { %v2503_v33 = vmul.f32 %v2456_v29, %v2456_v29  ;;  %v2505_v34 = vmul.f32 %v2497_v30, %v2497_v30  ;;  %v2458_v3 = vadd.f32 %v2457_v31, %v2088_v25  ;;  %v2499_v35 = vadd.f32 %v2498_v32, %v2096_v26 }
 0xd48   : > { %v2459_v36 = vpop.f32.mrf.mxu1  ;;  %v2500_v37 = vpop.f32.mrf.mxu0 }
 0xd49   : > { %v2507_v38 = vmul.f32 %v2503_v33, %v2456_v29  ;;  %v2509_v56 = vmul.f32 %v2505_v34, %v2497_v30  ;;  %v2504_v6 = vmul.f32 %v2458_v3, %v2458_v3  ;;  %v2506_v39 = vmul.f32 %v2499_v35, %v2499_v35 }
 0xd4a   : > { %v2460_v40 = vpop.f32.mrf.mxu1  ;;  %v2501_v41 = vpop.f32.mrf.mxu0 }
 0xd4b   : > { %v2511_v5 = vmul.f32 0.044715, %v2507_v38  ;;  %v2513_v45 = vmul.f32 0.044715, %v2509_v56  ;;  %v2508_v42 = vmul.f32 %v2504_v6, %v2458_v3  ;;  %v2510_v43 = vmul.f32 %v2506_v39, %v2499_v35 }
 0xd4d   : > { %v2515_v44 = vadd.f32 %v2511_v5, %v2456_v29  ;;  %v2517_v46 = vadd.f32 %v2513_v45, %v2497_v30  ;;  %v2512_v47 = vmul.f32 0.044715, %v2508_v42  ;;  %v2514_v48 = vmul.f32 0.044715, %v2510_v43 }
 0xd4f   : > { %v2519_v50 = vmul.f32 0.7978846, %v2515_v44  ;;  %v2521_v51 = vmul.f32 0.7978846, %v2517_v46  ;;  %v2516_v52 = vadd.f32 %v2512_v47, %v2458_v3  ;;  %v2518_v53 = vadd.f32 %v2514_v48, %v2499_v35 }
 0xd51   : > { %3952 = vtanh.f32 %v2519_v50  ;;  %v2520_v54 = vmul.f32 0.7978846, %v2516_v52  ;;  %v2522_v55 = vmul.f32 0.7978846, %v2518_v53 }
 0xd52   : > { %3954 = vtanh.f32 %v2521_v51 }
 0xd53   : > { %3956 = vtanh.f32 %v2520_v54 }
 0xd54   : > { %3958 = vtanh.f32 %v2522_v55 }
 0xd5e   : > { %v3953_v57 = vpop.eup %3952 }
 0xd5f   : > { %v3955_v58 = vpop.eup %3954  ;;  %v2527_v13 = vadd.f32 1.0, %v3953_v57 }
 0xd60   : > { %v3957_v59 = vpop.eup %3956  ;;  %v2529_v60 = vadd.f32 1.0, %v3955_v58 }
 0xd61   : > { %v3959_v61 = vpop.eup %3958  ;;  %v2528_v7 = vadd.f32 1.0, %v3957_v59  ;;  %v2531_v62 = vmul.f32 0.5, %v2527_v13 }
 0xd62   : > { %v2530_v63 = vadd.f32 1.0, %v3959_v61  ;;  %v2533_v0 = vmul.f32 0.5, %v2529_v60 }
 0xd63   : > { %v2532_v1 = vmul.f32 0.5, %v2528_v7  ;;  %v2535_v2 = vmul.f32 %v2531_v62, %v2456_v29 }
 0xd64   : > { %v2534_v18 = vmul.f32 0.5, %v2530_v63  ;;  %v2537_v9 = vmul.f32 %v2533_v0, %v2497_v30 }
 0xd65   : > { %v2536_v4 = vmul.f32 %v2532_v1, %v2458_v3  ;;  %v2539_v16 = vpack.c.bf16 %v2535_v2, %v2535_v2 }
 0xd66   : > { %v2538_v10 = vmul.f32 %v2534_v18, %v2499_v35  ;;  %v2541_v17 = vpack.c.bf16 %v2537_v9, %v2537_v9 }
 0xd67   : > { %v2540_v14 = vpack.c.bf16 %v2536_v4, %v2536_v4 }
 0xd68   : > { %v2542_v15 = vpack.c.bf16 %v2538_v10, %v2538_v10 }
 0xd69   : > { %2971 = vmatprep.mubr.bf16.mxu1 %v2540_v14 }
 0xd6a   : > { %3012 = vmatprep.mubr.bf16.mxu0 %v2542_v15  ;;  %2972 = vmatmul.mubr.bf16.vlgmr.msra.gmra.mxu1 %v2539_v16 }
 0xd6b   : > { %3013 = vmatmul.mubr.bf16.vlgmr.msra.gmra.mxu0 %v2541_v17 }
 0xe2a   : > { %v2973_v22 = vpop.f32.mrf.mxu1 }
 0xe2b   : > { %v2974_v23 = vadd.f32 %v2973_v22, %v2612_v20  ;;  %v3014_v24 = vpop.f32.mrf.mxu0 }
 0xe2c   : > { %v2975_v25 = vpop.f32.mrf.mxu1 }
 0xe2d   : > { %v3015_v26 = vadd.f32 %v3014_v24, %v2974_v23  ;;  %v2976_v27 = vadd.f32 %v2975_v25, %v2616_v21  ;;  %v3016_v28 = vpop.f32.mrf.mxu0 }
 0xe2e   : > { %v2977_v29 = vpop.f32.mrf.mxu1 }
 0xe2f   : > { %v3017_v30 = vadd.f32 %v3016_v28, %v2976_v27  ;;  %v3018_v31 = vpop.f32.mrf.mxu0  ;;  %v3021_v33 = vadd.f32 %v3015_v26, %v4613_v12  ;;  %v3024_v12 = vld [vmem:[%s4666_s13] sm:$0x3] }
 0xe30   : > { %v2978_v32 = vpop.f32.mrf.mxu1  ;;  %v3058_v46 = vrot.slane %v3024_v12, %v4195_v8  ;;  %v3062_v47 = vrot.slane %v3024_v12, %v4249_v49 }
 0xe31   : > { %v3022_v34 = vadd.f32 %v3017_v30, %v4611_v11  ;;  %v3019_v3 = vpop.f32.mrf.mxu0  ;;  %v3023_v11 = vld [vmem:[%s4665_s12] sm:$0x3] }
 0xe32   : > { %v3045_v42 = vrot.slane %v3023_v11, %v4195_v8  ;;  %v3049_v43 = vrot.slane %v3023_v11, %v4249_v49 }
 0xe33   : > { %v3025_v35 = vadd.f32 %v3022_v34, %v3021_v33 }
 0xe35   : > { %3026 = vadd.xlane.f32.xlu1 %v3025_v35 }
 0xebe   : > { %v3027_v36 = vpop.xlane.xlu1 %3026 }
 0xebf   : > { %v3028_v37 = vmul.f32 0.00390625, %v3027_v36 }
 0xec1   : > { %v3029_v38 = vsub.f32 %v3021_v33, %v3028_v37  ;;  %v3030_v56 = vsub.f32 %v3022_v34, %v3028_v37 }
 0xec3   : > { %v3031_v6 = vmul.f32 %v3029_v38, %v3029_v38  ;;  %v3032_v39 = vmul.f32 %v3030_v56, %v3030_v56 }
 0xec5   : > { %v3033_v40 = vadd.f32 %v3032_v39, %v3031_v6 }
 0xec7   : > { %3034 = vadd.xlane.f32.xlu1 %v3033_v40 }
 0xf50   : > { %v3035_v41 = vpop.xlane.xlu1 %3034 }
 0xf51   : > { %v3036_v5 = vmul.f32 0.00390625, %v3035_v41 }
 0xf53   : > { %v3037_v45 = vadd.f32 1e-12, %v3036_v5 }
 0xf55   : > { %3960 = vrsqrt.f32 %v3037_v45 }
 0xf62   : > { %v3961_v44 = vpop.eup %3960 }
 0xf63   : > { %v3039_v48 = vmul.f32 %v3961_v44, %v3029_v38  ;;  %v3040_v50 = vmul.f32 %v3961_v44, %v3030_v56 }
 0xf65   : > { %v3052_v51 = vmul.f32 %v3045_v42, %v3039_v48  ;;  %v3053_v52 = vmul.f32 %v3049_v43, %v3040_v50 }
 0xf67   : > { %v3065_v53 = vadd.f32 %v3058_v46, %v3052_v51  ;;  %v3066_v54 = vadd.f32 %v3062_v47, %v3053_v52 }
 0xf69   : > { %v3447_v55 = vpack.c.bf16 %v3066_v54, %v3065_v53 }
 0xf6b   : > { %3075 = vst [vmem:[%s511_s26] sm:$0xff] %v3447_v55 }
 0xf6c PF: > { %s26_s29 = sadd.s32 1, %s4029_s29  }
 0xf6d   : > { %p23_p3 = scmp.ge.s32.totalorder %s26_s29, 4  }
 0xf6f   :  { %25 = sbr.rel (!%p23_p3) target bundleno = 2 (0x2), region = 118 }
 0xf74   :  { %3097 = vsyncpa [#allocation4], 1 }
 0xf75   :  { %3099 = vsyncpa [#allocation4 + $0x1], 1 }
 0xf76   :  { %3100 = vsyncpa [#allocation6], 1 }

</bundles_post_ra>
